<compile_context>
chip_gen: v7x
topology: tpu7x:2x2x1
jax: 0.10.0
libtpu: 0.0.40
codegen_flags: <defaults>
</compile_context>

<pallas_src>
import jax
import jax.numpy as jnp
from jax.experimental import pallas as pl
from jax.experimental.pallas import tpu as pltpu

# Logical dims (PyTorch) and lane-dense padded dims (multiples of 128).
DIMS = [784, 520, 320, 240, 120, 10]
PAD = [896, 640, 384, 256, 128, 128]
TB = 128  # batch tile (rows per grid step)


def mlp_kernel(x_ref,
               w1_ref, b1_ref, w2_ref, b2_ref, w3_ref, b3_ref,
               w4_ref, b4_ref, w5_ref, b5_ref,
               o_ref):
    """Whole MLP fused on one (TB, 896) batch tile.

    Weights are bf16 and VMEM-resident across all grid steps (constant
    index_maps); matmuls accumulate in f32 via preferred_element_type.
    """
    h = x_ref[...]  # (TB, 896) bf16
    layers = ((w1_ref, b1_ref, False),
              (w2_ref, b2_ref, False),
              (w3_ref, b3_ref, False),
              (w4_ref, b4_ref, False),
              (w5_ref, b5_ref, True))
    for w_ref, b_ref, is_last in layers:
        h = jnp.dot(h, w_ref[...], preferred_element_type=jnp.float32)
        h = h + b_ref[...]
        if not is_last:
            h = jnp.maximum(h, 0.0).astype(jnp.bfloat16)
    o_ref[...] = h.astype(o_ref.dtype)


def make_params(key):
    """PyTorch-style init U(-1/sqrt(fan_in), 1/sqrt(fan_in)); weights as (in, out)."""
    params = []
    for i in range(5):
        fan_in, fan_out = DIMS[i], DIMS[i + 1]
        key, kw, kb = jax.random.split(key, 3)
        bound = 1.0 / jnp.sqrt(fan_in)
        w = jax.random.uniform(kw, (fan_in, fan_out), jnp.float32, -bound, bound)
        b = jax.random.uniform(kb, (1, fan_out), jnp.float32, -bound, bound)
        params.append((w, b))
    return params


def prepare_params(params):
    """Zero-pad to lane-dense shapes and cast weights to bf16 (biases stay f32)."""
    padded = []
    for i, (w, b) in enumerate(params):
        din, dout = DIMS[i], DIMS[i + 1]
        pdin, pdout = PAD[i], PAD[i + 1]
        wp = jnp.zeros((pdin, pdout), jnp.float32).at[:din, :dout].set(w)
        bp = jnp.zeros((1, pdout), jnp.float32).at[:, :dout].set(b)
        padded.append((wp.astype(jnp.bfloat16), bp))
    return padded


@jax.jit
def net_forward(x_nchw, padded_params):
    B = x_nchw.shape[0]
    x = x_nchw.reshape(B, 784)                        # x.view(-1, 784)
    Bp = ((B + TB - 1) // TB) * TB                    # pad batch to tile multiple

    x_pad = jnp.zeros((Bp, PAD[0]), jnp.bfloat16)
    x_pad = x_pad.at[:B, :784].set(x.astype(jnp.bfloat16))

    flat_params = []
    for w, b in padded_params:
        flat_params.extend([w, b])

    grid = (Bp // TB,)
    in_specs = [pl.BlockSpec((TB, PAD[0]), lambda i: (i, 0))]  # x: tiled over batch
    for layer in range(5):
        din, dout = PAD[layer], PAD[layer + 1]
        in_specs.append(pl.BlockSpec((din, dout), lambda i: (0, 0)))  # W resident
        in_specs.append(pl.BlockSpec((1, dout), lambda i: (0, 0)))    # b resident
    out_spec = pl.BlockSpec((TB, PAD[5]), lambda i: (i, 0))

    flops = 2 * Bp * sum(PAD[i] * PAD[i + 1] for i in range(5))
    weight_bytes = sum(w.size * w.dtype.itemsize + b.size * b.dtype.itemsize
                       for w, b in padded_params)
    bytes_accessed = x_pad.size * x_pad.dtype.itemsize + weight_bytes + Bp * PAD[5] * 4

    out_pad = pl.pallas_call(
        mlp_kernel,
        grid=grid,
        in_specs=in_specs,
        out_specs=out_spec,
        out_shape=jax.ShapeDtypeStruct((Bp, PAD[5]), jnp.float32),
        compiler_params=pltpu.CompilerParams(
            dimension_semantics=("parallel",),
            vmem_limit_bytes=32 << 20,
        ),
        cost_estimate=pl.CostEstimate(
            flops=flops, transcendentals=0, bytes_accessed=bytes_accessed),
    )(x_pad, *flat_params)

    return out_pad[:B, :10]


def reference_forward_f32(x_nchw, params):
    """Pure f32 reference matching the PyTorch module exactly."""
    B = x_nchw.shape[0]
    h = x_nchw.reshape(B, 784).astype(jnp.float32)
    for i, (w, b) in enumerate(params):
        h = h @ w + b
        if i < 4:
            h = jnp.maximum(h, 0.0)
    return h


def reference_forward_bf16(x_nchw, padded_params):
    """Pure-JAX reference applying the same padding/bf16 casts as the kernel."""
    B = x_nchw.shape[0]
    x = x_nchw.reshape(B, 784)
    h = jnp.zeros((B, PAD[0]), jnp.bfloat16).at[:, :784].set(x.astype(jnp.bfloat16))
    for i, (w, b) in enumerate(padded_params):
        h = jnp.dot(h, w, preferred_element_type=jnp.float32) + b
        if i < 4:
            h = jnp.maximum(h, 0.0).astype(jnp.bfloat16)
    return h[:, :10]


if __name__ == "__main__":
    key = jax.random.PRNGKey(0)
    key, kx = jax.random.split(key)

    # MNIST-like input: batch=2, NCHW (2, 1, 28, 28)
    x = jax.random.normal(kx, (2, 1, 28, 28), jnp.float32)
    params = make_params(key)
    padded_params = prepare_params(params)

    out = net_forward(x, padded_params)
    out = jax.block_until_ready(out)

    assert out.shape == (2, 10)
    # Tight check vs. a pure-JAX pipeline with identical bf16/padding numerics.
    ref_bf16 = reference_forward_bf16(x, padded_params)
    assert jnp.allclose(out, ref_bf16, atol=1e-2, rtol=1e-2)
    # Loose check vs. the exact f32 PyTorch-equivalent math (bf16 weight error).
    ref_f32 = reference_forward_f32(x, params)
    assert jnp.allclose(out, ref_f32, atol=1e-1, rtol=1e-1)

    print("KERNEL_OK")
</pallas_src>

<mosaic_0001>
module attributes {stable_mosaic.version = 11 : i64} {
  func.func @mlp_kernel(%arg0: i32, %arg1: memref<128x896xbf16, #tpu.memory_space<vmem>>, %arg2: memref<896x640xbf16, #tpu.memory_space<vmem>>, %arg3: memref<1x640xf32, #tpu.memory_space<vmem>>, %arg4: memref<640x384xbf16, #tpu.memory_space<vmem>>, %arg5: memref<1x384xf32, #tpu.memory_space<vmem>>, %arg6: memref<384x256xbf16, #tpu.memory_space<vmem>>, %arg7: memref<1x256xf32, #tpu.memory_space<vmem>>, %arg8: memref<256x128xbf16, #tpu.memory_space<vmem>>, %arg9: memref<1x128xf32, #tpu.memory_space<vmem>>, %arg10: memref<128x128xbf16, #tpu.memory_space<vmem>>, %arg11: memref<1x128xf32, #tpu.memory_space<vmem>>, %arg12: memref<128x128xf32, #tpu.memory_space<vmem>>) attributes {dimension_semantics = [#tpu.dimension_semantics<parallel>], iteration_bounds = array<i64: 1>, scalar_prefetch = 0 : i64, scratch_operands = 0 : i64, tpu.core_type = #tpu.core_type<tc>, window_params = [{transform_indices = @transform_0, window_bounds = array<i64: 128, 896>}, {pipeline_mode = #tpu.pipeline_mode<synchronous>, transform_indices = @transform_1, window_bounds = array<i64: 896, 640>}, {pipeline_mode = #tpu.pipeline_mode<synchronous>, transform_indices = @transform_2, window_bounds = array<i64: 1, 640>}, {pipeline_mode = #tpu.pipeline_mode<synchronous>, transform_indices = @transform_3, window_bounds = array<i64: 640, 384>}, {pipeline_mode = #tpu.pipeline_mode<synchronous>, transform_indices = @transform_4, window_bounds = array<i64: 1, 384>}, {pipeline_mode = #tpu.pipeline_mode<synchronous>, transform_indices = @transform_5, window_bounds = array<i64: 384, 256>}, {pipeline_mode = #tpu.pipeline_mode<synchronous>, transform_indices = @transform_6, window_bounds = array<i64: 1, 256>}, {pipeline_mode = #tpu.pipeline_mode<synchronous>, transform_indices = @transform_7, window_bounds = array<i64: 256, 128>}, {pipeline_mode = #tpu.pipeline_mode<synchronous>, transform_indices = @transform_8, window_bounds = array<i64: 1, 128>}, {pipeline_mode = #tpu.pipeline_mode<synchronous>, transform_indices = @transform_9, window_bounds = array<i64: 128, 128>}, {pipeline_mode = #tpu.pipeline_mode<synchronous>, transform_indices = @transform_10, window_bounds = array<i64: 1, 128>}, {transform_indices = @transform_11, window_bounds = array<i64: 128, 128>}]} {
    %c0 = arith.constant 0 : index
    %c0_0 = arith.constant 0 : index
    %0 = vector.load %arg1[%c0, %c0_0] : memref<128x896xbf16, #tpu.memory_space<vmem>>, vector<128x896xbf16>
    %c0_1 = arith.constant 0 : index
    %c0_2 = arith.constant 0 : index
    %1 = vector.load %arg2[%c0_1, %c0_2] : memref<896x640xbf16, #tpu.memory_space<vmem>>, vector<896x640xbf16>
    %cst = arith.constant dense<0.000000e+00> : vector<128x640xf32>
    %2 = tpu.matmul %0, %1, %cst {dimension_numbers = #tpu.dot_dimension_numbers<[1], [0], [0], [1], [0, 0, 1, 1], [], []>} : vector<128x896xbf16>, vector<896x640xbf16>, vector<128x640xf32> -> vector<128x640xf32>
    %c0_3 = arith.constant 0 : index
    %c0_4 = arith.constant 0 : index
    %3 = vector.load %arg3[%c0_3, %c0_4] : memref<1x640xf32, #tpu.memory_space<vmem>>, vector<1x640xf32>
    %4 = vector.broadcast %3 : vector<1x640xf32> to vector<128x640xf32>
    %5 = arith.addf %2, %4 : vector<128x640xf32>
    %cst_5 = arith.constant 0.000000e+00 : f32
    %6 = vector.broadcast %cst_5 : f32 to vector<128x640xf32>
    %7 = arith.maximumf %5, %6 : vector<128x640xf32>
    %8 = arith.truncf %7 : vector<128x640xf32> to vector<128x640xbf16>
    %c0_6 = arith.constant 0 : index
    %c0_7 = arith.constant 0 : index
    %9 = vector.load %arg4[%c0_6, %c0_7] : memref<640x384xbf16, #tpu.memory_space<vmem>>, vector<640x384xbf16>
    %cst_8 = arith.constant dense<0.000000e+00> : vector<128x384xf32>
    %10 = tpu.matmul %8, %9, %cst_8 {dimension_numbers = #tpu.dot_dimension_numbers<[1], [0], [0], [1], [0, 0, 1, 1], [], []>} : vector<128x640xbf16>, vector<640x384xbf16>, vector<128x384xf32> -> vector<128x384xf32>
    %c0_9 = arith.constant 0 : index
    %c0_10 = arith.constant 0 : index
    %11 = vector.load %arg5[%c0_9, %c0_10] : memref<1x384xf32, #tpu.memory_space<vmem>>, vector<1x384xf32>
    %12 = vector.broadcast %11 : vector<1x384xf32> to vector<128x384xf32>
    %13 = arith.addf %10, %12 : vector<128x384xf32>
    %cst_11 = arith.constant 0.000000e+00 : f32
    %14 = vector.broadcast %cst_11 : f32 to vector<128x384xf32>
    %15 = arith.maximumf %13, %14 : vector<128x384xf32>
    %16 = arith.truncf %15 : vector<128x384xf32> to vector<128x384xbf16>
    %c0_12 = arith.constant 0 : index
    %c0_13 = arith.constant 0 : index
    %17 = vector.load %arg6[%c0_12, %c0_13] : memref<384x256xbf16, #tpu.memory_space<vmem>>, vector<384x256xbf16>
    %cst_14 = arith.constant dense<0.000000e+00> : vector<128x256xf32>
    %18 = tpu.matmul %16, %17, %cst_14 {dimension_numbers = #tpu.dot_dimension_numbers<[1], [0], [0], [1], [0, 0, 1, 1], [], []>} : vector<128x384xbf16>, vector<384x256xbf16>, vector<128x256xf32> -> vector<128x256xf32>
    %c0_15 = arith.constant 0 : index
    %c0_16 = arith.constant 0 : index
    %19 = vector.load %arg7[%c0_15, %c0_16] : memref<1x256xf32, #tpu.memory_space<vmem>>, vector<1x256xf32>
    %20 = vector.broadcast %19 : vector<1x256xf32> to vector<128x256xf32>
    %21 = arith.addf %18, %20 : vector<128x256xf32>
    %cst_17 = arith.constant 0.000000e+00 : f32
    %22 = vector.broadcast %cst_17 : f32 to vector<128x256xf32>
    %23 = arith.maximumf %21, %22 : vector<128x256xf32>
    %24 = arith.truncf %23 : vector<128x256xf32> to vector<128x256xbf16>
    %c0_18 = arith.constant 0 : index
    %c0_19 = arith.constant 0 : index
    %25 = vector.load %arg8[%c0_18, %c0_19] : memref<256x128xbf16, #tpu.memory_space<vmem>>, vector<256x128xbf16>
    %cst_20 = arith.constant dense<0.000000e+00> : vector<128x128xf32>
    %26 = tpu.matmul %24, %25, %cst_20 {dimension_numbers = #tpu.dot_dimension_numbers<[1], [0], [0], [1], [0, 0, 1, 1], [], []>} : vector<128x256xbf16>, vector<256x128xbf16>, vector<128x128xf32> -> vector<128x128xf32>
    %c0_21 = arith.constant 0 : index
    %c0_22 = arith.constant 0 : index
    %27 = vector.load %arg9[%c0_21, %c0_22] : memref<1x128xf32, #tpu.memory_space<vmem>>, vector<1x128xf32>
    %28 = vector.broadcast %27 : vector<1x128xf32> to vector<128x128xf32>
    %29 = arith.addf %26, %28 : vector<128x128xf32>
    %cst_23 = arith.constant 0.000000e+00 : f32
    %30 = vector.broadcast %cst_23 : f32 to vector<128x128xf32>
    %31 = arith.maximumf %29, %30 : vector<128x128xf32>
    %32 = arith.truncf %31 : vector<128x128xf32> to vector<128x128xbf16>
    %c0_24 = arith.constant 0 : index
    %c0_25 = arith.constant 0 : index
    %33 = vector.load %arg10[%c0_24, %c0_25] : memref<128x128xbf16, #tpu.memory_space<vmem>>, vector<128x128xbf16>
    %cst_26 = arith.constant dense<0.000000e+00> : vector<128x128xf32>
    %34 = tpu.matmul %32, %33, %cst_26 {dimension_numbers = #tpu.dot_dimension_numbers<[1], [0], [0], [1], [0, 0, 1, 1], [], []>} : vector<128x128xbf16>, vector<128x128xbf16>, vector<128x128xf32> -> vector<128x128xf32>
    %c0_27 = arith.constant 0 : index
    %c0_28 = arith.constant 0 : index
    %35 = vector.load %arg11[%c0_27, %c0_28] : memref<1x128xf32, #tpu.memory_space<vmem>>, vector<1x128xf32>
    %36 = vector.broadcast %35 : vector<1x128xf32> to vector<128x128xf32>
    %37 = arith.addf %34, %36 : vector<128x128xf32>
    %c0_29 = arith.constant 0 : index
    %c0_30 = arith.constant 0 : index
    %38 = vector.load %arg12[%c0_29, %c0_30] : memref<128x128xf32, #tpu.memory_space<vmem>>, vector<128x128xf32>
    tpu.vector_store %arg12[%c0_29, %c0_30], %37 {strides = array<i32>} : memref<128x128xf32, #tpu.memory_space<vmem>>, vector<128x128xf32>,
    return
  }
  func.func @transform_0(%arg0: i32) -> (i32, i32) {
    %c0_i32 = arith.constant 0 : i32
    %c0_i32_0 = arith.constant 0 : i32
    return %arg0, %c0_i32 : i32, i32
  }
  func.func @transform_1(%arg0: i32) -> (i32, i32) {
    %c0_i32 = arith.constant 0 : i32
    %c0_i32_0 = arith.constant 0 : i32
    %c0_i32_1 = arith.constant 0 : i32
    return %c0_i32, %c0_i32_0 : i32, i32
  }
  func.func @transform_2(%arg0: i32) -> (i32, i32) {
    %c0_i32 = arith.constant 0 : i32
    %c0_i32_0 = arith.constant 0 : i32
    %c0_i32_1 = arith.constant 0 : i32
    return %c0_i32, %c0_i32_0 : i32, i32
  }
  func.func @transform_3(%arg0: i32) -> (i32, i32) {
    %c0_i32 = arith.constant 0 : i32
    %c0_i32_0 = arith.constant 0 : i32
    %c0_i32_1 = arith.constant 0 : i32
    return %c0_i32, %c0_i32_0 : i32, i32
  }
  func.func @transform_4(%arg0: i32) -> (i32, i32) {
    %c0_i32 = arith.constant 0 : i32
    %c0_i32_0 = arith.constant 0 : i32
    %c0_i32_1 = arith.constant 0 : i32
    return %c0_i32, %c0_i32_0 : i32, i32
  }
  func.func @transform_5(%arg0: i32) -> (i32, i32) {
    %c0_i32 = arith.constant 0 : i32
    %c0_i32_0 = arith.constant 0 : i32
    %c0_i32_1 = arith.constant 0 : i32
    return %c0_i32, %c0_i32_0 : i32, i32
  }
  func.func @transform_6(%arg0: i32) -> (i32, i32) {
    %c0_i32 = arith.constant 0 : i32
    %c0_i32_0 = arith.constant 0 : i32
    %c0_i32_1 = arith.constant 0 : i32
    return %c0_i32, %c0_i32_0 : i32, i32
  }
  func.func @transform_7(%arg0: i32) -> (i32, i32) {
    %c0_i32 = arith.constant 0 : i32
    %c0_i32_0 = arith.constant 0 : i32
    %c0_i32_1 = arith.constant 0 : i32
    return %c0_i32, %c0_i32_0 : i32, i32
  }
  func.func @transform_8(%arg0: i32) -> (i32, i32) {
    %c0_i32 = arith.constant 0 : i32
    %c0_i32_0 = arith.constant 0 : i32
    %c0_i32_1 = arith.constant 0 : i32
    return %c0_i32, %c0_i32_0 : i32, i32
  }
  func.func @transform_9(%arg0: i32) -> (i32, i32) {
    %c0_i32 = arith.constant 0 : i32
    %c0_i32_0 = arith.constant 0 : i32
    %c0_i32_1 = arith.constant 0 : i32
    return %c0_i32, %c0_i32_0 : i32, i32
  }
  func.func @transform_10(%arg0: i32) -> (i32, i32) {
    %c0_i32 = arith.constant 0 : i32
    %c0_i32_0 = arith.constant 0 : i32
    %c0_i32_1 = arith.constant 0 : i32
    return %c0_i32, %c0_i32_0 : i32, i32
  }
  func.func @transform_11(%arg0: i32) -> (i32, i32) {
    %c0_i32 = arith.constant 0 : i32
    %c0_i32_0 = arith.constant 0 : i32
    return %arg0, %c0_i32 : i32, i32
  }
}

</mosaic_0001>

<bundles_post_ra>
// kernel: net_forward.1
= control target key start
LH: loop header
LB: loop body
LE: loop exit
PB: predicated region body
PF: predicated region fallthrough
CT: control target
= control target key end

     0   :  { %16 = vsyncpa [#allocation3], 0  ;;  %s9875_s0 = inlined_call_operand.vmem [shape: bf16[128,896], index: 0, kind: input, shape index: {}]   ;;  %s9876_s1 = inlined_call_operand.hbm [shape: bf16[896,640], index: 1, kind: input, shape index: {}]   ;;  %s9877_s2 = inlined_call_operand.hbm [shape: f32[1,640], index: 2, kind: input, shape index: {}]   ;;  %s9878_s3 = inlined_call_operand.hbm [shape: bf16[640,384], index: 3, kind: input, shape index: {}]   ;;  %s9879_s4 = inlined_call_operand.hbm [shape: f32[1,384], index: 4, kind: input, shape index: {}]   ;;  %s9880_s5 = inlined_call_operand.hbm [shape: bf16[384,256], index: 5, kind: input, shape index: {}]   ;;  %s9881_s6 = inlined_call_operand.hbm [shape: f32[1,256], index: 6, kind: input, shape index: {}]   ;;  %s9882_s7 = inlined_call_operand.hbm [shape: bf16[256,128], index: 7, kind: input, shape index: {}]   ;;  %s9883_s8 = inlined_call_operand.hbm [shape: f32[1,128], index: 8, kind: input, shape index: {}]   ;;  %s9884_s9 = inlined_call_operand.hbm [shape: bf16[128,128], index: 9, kind: input, shape index: {}]   ;;  %s9885_s10 = inlined_call_operand.hbm [shape: f32[1,128], index: 10, kind: input, shape index: {}]   ;;  %s9886_s11 = inlined_call_operand.vmem [shape: f32[128,128], index: 11, kind: output, shape index: {}]  }
   0x1   :  { %17 = vsyncpa [#allocation5], 0 }
   0x2   :  { %18 = vsyncpa [#allocation8], 0 }
   0x3   :  { %19 = vsyncpa [#allocation11], 0 }
   0x4   :  { %20 = vsyncpa [#allocation14], 0 }
   0x5   :  { %21 = vsyncpa [#allocation17], 0  ;;  %s8792_s17 = smov [#allocation4]   ;;  %s8793_s19 = smov [#allocation7]  }
   0x6   :  { %s42_s18 = sshll.u32 %s8792_s17, 4  ;;  %s64_s20 = sshll.u32 %s8793_s19, 4  ;;  %s43_s18 = int_to_ptr.vmem [resolvable:$true] %s42_s18  ;;  %s65_s20 = int_to_ptr.vmem [resolvable:$true] %s64_s20 }
   0x7   :  { %s8560_s23 = scalar_lea.hbm %s9877_s2, 80 }
   0x8   :  { %p8561_p0 = scmp.ne.s32.totalorder %s9877_s2, %s8560_s23  ;;  %p8564_p1 = scmp.lt.u32.totalorder %s8560_s23, %s9877_s2 }
   0xa   :  { %p8566_p2 = pnand %p8564_p1, %p8561_p0 }
   0xc   :  { %8569 = shalt.err (!%p8566_p2)
}
   0xd   :  { %s8570_s28 = scalar_lea.vmem %s43_s18, 80  ;;  %s8574_s29 = scalar_lea.vmem %s43_s18, 96 }
   0xe   :  { %p8571_p3 = scmp.ne.s32.totalorder %s43_s18, %s8570_s28  ;;  %p8575_p4 = scmp.lt.s32.totalorder %s43_s18, %s43_s18 }
   0xf   :  { %p8576_p5 = scmp.lt.s32.totalorder %s8574_s29, %s8570_s28 }
  0x11   :  { %p8577_p6 = por %p8576_p5, %p8575_p4 }
  0x13   :  { %p8578_p7 = pnand %p8577_p6, %p8571_p3 }
  0x15   :  { %8581 = shalt.err (!%p8578_p7)
}
  0x16   :  { %45 = dma.hbm_to_vmem [thread:$0]  %s9877_s2, 80, %s43_s18, [#allocation5]  }
  0x17   :  { %s8582_s15 = scalar_lea.hbm %s9879_s4, 48 }
  0x18   :  { %p8583_p8 = scmp.ne.s32.totalorder %s9879_s4, %s8582_s15  ;;  %p8586_p9 = scmp.lt.u32.totalorder %s8582_s15, %s9879_s4 }
  0x1a   :  { %p8588_p10 = pnand %p8586_p9, %p8583_p8 }
  0x1c   :  { %8591 = shalt.err (!%p8588_p10)
}
  0x1d   :  { %s8592_s22 = scalar_lea.vmem %s65_s20, 48  ;;  %s8596_s23 = scalar_lea.vmem %s65_s20, 64 }
  0x1e   :  { %p8593_p11 = scmp.ne.s32.totalorder %s65_s20, %s8592_s22  ;;  %p8597_p12 = scmp.lt.s32.totalorder %s65_s20, %s65_s20 }
  0x1f   :  { %p8598_p13 = scmp.lt.s32.totalorder %s8596_s23, %s8592_s22 }
  0x21   :  { %p8599_p0 = por %p8598_p13, %p8597_p12 }
  0x23   :  { %p8600_p1 = pnand %p8599_p0, %p8593_p11 }
  0x25   :  { %8603 = shalt.err (!%p8600_p1)
}
  0x26   :  { %67 = dma.hbm_to_vmem [thread:$0]  %s9879_s4, 48, %s65_s20, [#allocation8]  }
  0x27   :  { %s8794_s24 = smov [#allocation10]   ;;  %s8795_s26 = smov [#allocation13]  }
  0x28   :  { %s86_s25 = sshll.u32 %s8794_s24, 4  ;;  %s108_s27 = sshll.u32 %s8795_s26, 4  ;;  %s87_s25 = int_to_ptr.vmem [resolvable:$true] %s86_s25  ;;  %s109_s27 = int_to_ptr.vmem [resolvable:$true] %s108_s27 }
  0x29   :  { %s8604_s30 = scalar_lea.hbm %s9881_s6, 32 }
  0x2a   :  { %p8605_p2 = scmp.ne.s32.totalorder %s9881_s6, %s8604_s30  ;;  %p8608_p3 = scmp.lt.u32.totalorder %s8604_s30, %s9881_s6 }
  0x2c   :  { %p8610_p4 = pnand %p8608_p3, %p8605_p2 }
  0x2e   :  { %8613 = shalt.err (!%p8610_p4)
}
  0x2f   :  { %s8614_s4 = scalar_lea.vmem %s87_s25, 32  ;;  %p8619_p6 = scmp.lt.s32.totalorder %s87_s25, %s87_s25 }
  0x30   :  { %p8615_p5 = scmp.ne.s32.totalorder %s87_s25, %s8614_s4  ;;  %p8620_p7 = scmp.lt.s32.totalorder %s8614_s4, %s8614_s4 }
  0x32   :  { %p8621_p8 = por %p8620_p7, %p8619_p6 }
  0x34   :  { %p8622_p9 = pnand %p8621_p8, %p8615_p5 }
  0x36   :  { %8625 = shalt.err (!%p8622_p9)
}
  0x37   :  { %89 = dma.hbm_to_vmem [thread:$0]  %s9881_s6, 32, %s87_s25, [#allocation11]  }
  0x38   :  { %s8626_s21 = scalar_lea.hbm %s9883_s8, 16 }
  0x39   :  { %p8627_p10 = scmp.ne.s32.totalorder %s9883_s8, %s8626_s21  ;;  %p8630_p11 = scmp.lt.u32.totalorder %s8626_s21, %s9883_s8 }
  0x3b   :  { %p8632_p12 = pnand %p8630_p11, %p8627_p10 }
  0x3d   :  { %8635 = shalt.err (!%p8632_p12)
}
  0x3e   :  { %s8636_s24 = scalar_lea.vmem %s109_s27, 16  ;;  %s8640_s26 = scalar_lea.vmem %s109_s27, 32 }
  0x3f   :  { %p8637_p13 = scmp.ne.s32.totalorder %s109_s27, %s8636_s24  ;;  %p8641_p0 = scmp.lt.s32.totalorder %s109_s27, %s109_s27 }
  0x40   :  { %p8642_p1 = scmp.lt.s32.totalorder %s8640_s26, %s8636_s24 }
  0x42   :  { %p8643_p2 = por %p8642_p1, %p8641_p0 }
  0x44   :  { %p8644_p3 = pnand %p8643_p2, %p8637_p13 }
  0x46   :  { %8647 = shalt.err (!%p8644_p3)
}
  0x47   :  { %111 = dma.hbm_to_vmem [thread:$0]  %s9883_s8, 16, %s109_s27, [#allocation14]  }
  0x48   :  { %s8796_s28 = smov [#allocation2]   ;;  %s8648_s13 = scalar_lea.hbm %s9876_s1, 35840 }
  0x49   :  { %s29_s29 = sshll.u32 %s8796_s28, 4  ;;  %p8649_p4 = scmp.ne.s32.totalorder %s9876_s1, %s8648_s13  ;;  %s30_s29 = int_to_ptr.vmem [resolvable:$true] %s29_s29 }
  0x4a   :  { %p8652_p5 = scmp.lt.u32.totalorder %s8648_s13, %s9876_s1 }
  0x4c   :  { %p8654_p6 = pnand %p8652_p5, %p8649_p4 }
  0x4e   :  { %8657 = shalt.err (!%p8654_p6)
}
  0x4f   :  { %s8658_s16 = scalar_lea.vmem %s30_s29, 35840  ;;  %p8663_p8 = scmp.lt.s32.totalorder %s30_s29, %s30_s29 }
  0x50   :  { %p8659_p7 = scmp.ne.s32.totalorder %s30_s29, %s8658_s16  ;;  %p8664_p9 = scmp.lt.s32.totalorder %s8658_s16, %s8658_s16 }
  0x52   :  { %p8665_p10 = por %p8664_p9, %p8663_p8 }
  0x54   :  { %p8666_p11 = pnand %p8665_p10, %p8659_p7 }
  0x56   :  { %8669 = shalt.err (!%p8666_p11)
}
  0x57   :  { %s8797_s8 = smov 320   ;;  %s8798_s27 = smov 20  }
  0x58   :  { %35 = dma.hbm_to_vmem [thread:$0]  %s9876_s1, 35840, %s30_s29, [#allocation3], %s8797_s8, %s8797_s8, %s8798_s27  }
  0x59   :  { %s8799_s21 = smov [#allocation6]   ;;  %s8670_s18 = scalar_lea.hbm %s9878_s3, 15360 }
  0x5a   :  { %s51_s22 = sshll.u32 %s8799_s21, 4  ;;  %p8671_p12 = scmp.ne.s32.totalorder %s9878_s3, %s8670_s18  ;;  %s52_s22 = int_to_ptr.vmem [resolvable:$true] %s51_s22 }
  0x5b   :  { %p8674_p13 = scmp.lt.u32.totalorder %s8670_s18, %s9878_s3 }
  0x5d   :  { %p8676_p0 = pnand %p8674_p13, %p8671_p12 }
  0x5f   :  { %8679 = shalt.err (!%p8676_p0)
}
  0x60   :  { %s8680_s28 = scalar_lea.vmem %s52_s22, 15360  ;;  %p8685_p2 = scmp.lt.s32.totalorder %s52_s22, %s52_s22 }
  0x61   :  { %p8681_p1 = scmp.ne.s32.totalorder %s52_s22, %s8680_s28  ;;  %p8686_p3 = scmp.lt.s32.totalorder %s8680_s28, %s8680_s28 }
  0x63   :  { %p8687_p4 = por %p8686_p3, %p8685_p2 }
  0x65   :  { %p8688_p5 = pnand %p8687_p4, %p8681_p1 }
  0x67   :  { %8691 = shalt.err (!%p8688_p5)
}
  0x68   :  { %s8800_s1 = smov 192   ;;  %s8801_s29 = smov 12  }
  0x69   :  { %57 = dma.hbm_to_vmem [thread:$0]  %s9878_s3, 15360, %s52_s22, [#allocation5], %s8800_s1, %s8800_s1, %s8801_s29  }
  0x6a   :  { %s8802_s13 = smov [#allocation9]   ;;  %s8692_s20 = scalar_lea.hbm %s9880_s5, 6144 }
  0x6b   :  { %s73_s14 = sshll.u32 %s8802_s13, 4  ;;  %p8693_p6 = scmp.ne.s32.totalorder %s9880_s5, %s8692_s20  ;;  %s74_s14 = int_to_ptr.vmem [resolvable:$true] %s73_s14 }
  0x6c   :  { %p8696_p7 = scmp.lt.u32.totalorder %s8692_s20, %s9880_s5 }
  0x6e   :  { %p8698_p8 = pnand %p8696_p7, %p8693_p6 }
  0x70   :  { %8701 = shalt.err (!%p8698_p8)
}
  0x71   :  { %s8702_s19 = scalar_lea.vmem %s74_s14, 6144  ;;  %p8707_p10 = scmp.lt.s32.totalorder %s74_s14, %s74_s14 }
  0x72   :  { %p8703_p9 = scmp.ne.s32.totalorder %s74_s14, %s8702_s19  ;;  %p8708_p11 = scmp.lt.s32.totalorder %s8702_s19, %s8702_s19 }
  0x74   :  { %p8709_p12 = por %p8708_p11, %p8707_p10 }
  0x76   :  { %p8710_p13 = pnand %p8709_p12, %p8703_p9 }
  0x78   :  { %8713 = shalt.err (!%p8710_p13)
}
  0x79   :  { %s8803_s3 = smov 128   ;;  %s8804_s21 = smov 8  }
  0x7a   :  { %79 = dma.hbm_to_vmem [thread:$0]  %s9880_s5, 6144, %s74_s14, [#allocation8], %s8803_s3, %s8803_s3, %s8804_s21  }
  0x7b   :  { %s8805_s2 = smov [#allocation12]   ;;  %s8714_s6 = scalar_lea.hbm %s9882_s7, 2048 }
  0x7c   :  { %s95_s18 = sshll.u32 %s8805_s2, 4  ;;  %p8715_p0 = scmp.ne.s32.totalorder %s9882_s7, %s8714_s6  ;;  %s96_s18 = int_to_ptr.vmem [resolvable:$true] %s95_s18 }
  0x7d   :  { %p8718_p1 = scmp.lt.u32.totalorder %s8714_s6, %s9882_s7 }
  0x7f   :  { %p8720_p2 = pnand %p8718_p1, %p8715_p0 }
  0x81   :  { %8723 = shalt.err (!%p8720_p2)
}
  0x82   :  { %s8724_s30 = scalar_lea.vmem %s96_s18, 2048  ;;  %p8729_p4 = scmp.lt.s32.totalorder %s96_s18, %s96_s18 }
  0x83   :  { %p8725_p3 = scmp.ne.s32.totalorder %s96_s18, %s8724_s30  ;;  %p8730_p5 = scmp.lt.s32.totalorder %s8724_s30, %s8724_s30 }
  0x85   :  { %p8731_p6 = por %p8730_p5, %p8729_p4 }
  0x87   :  { %p8732_p7 = pnand %p8731_p6, %p8725_p3 }
  0x89   :  { %8735 = shalt.err (!%p8732_p7)
}
  0x8a   :  { %s8806_s5 = smov 64   ;;  %s8807_s12 = smov 4  }
  0x8b   :  { %101 = dma.hbm_to_vmem [thread:$0]  %s9882_s7, 2048, %s96_s18, [#allocation11], %s8806_s5, %s8806_s5, %s8807_s12  }
  0x8c   :  { %s8808_s15 = smov [#allocation15]   ;;  %s8809_s20 = smov [#allocation16]  }
  0x8d   :  { %s117_s4 = sshll.u32 %s8808_s15, 4  ;;  %s130_s16 = sshll.u32 %s8809_s20, 4  ;;  %s118_s4 = int_to_ptr.vmem [resolvable:$true] %s117_s4  ;;  %s131_s16 = int_to_ptr.vmem [resolvable:$true] %s130_s16 }
  0x8e   :  { %s8736_s17 = scalar_lea.hbm %s9884_s9, 1024 }
  0x8f   :  { %p8737_p8 = scmp.ne.s32.totalorder %s9884_s9, %s8736_s17  ;;  %p8740_p9 = scmp.lt.u32.totalorder %s8736_s17, %s9884_s9 }
  0x91   :  { %p8742_p10 = pnand %p8740_p9, %p8737_p8 }
  0x93   :  { %8745 = shalt.err (!%p8742_p10)
}
  0x94   :  { %s8746_s7 = scalar_lea.vmem %s118_s4, 1024  ;;  %p8751_p12 = scmp.lt.s32.totalorder %s118_s4, %s118_s4 }
  0x95   :  { %p8747_p11 = scmp.ne.s32.totalorder %s118_s4, %s8746_s7  ;;  %p8752_p13 = scmp.lt.s32.totalorder %s8746_s7, %s8746_s7 }
  0x97   :  { %p8753_p0 = por %p8752_p13, %p8751_p12 }
  0x99   :  { %p8754_p1 = pnand %p8753_p0, %p8747_p11 }
  0x9b   :  { %8757 = shalt.err (!%p8754_p1)
}
  0x9c   :  { %123 = dma.hbm_to_vmem [thread:$0]  %s9884_s9, 1024, %s118_s4, [#allocation14], %s8806_s5, %s8806_s5, %s8807_s12  }
  0x9d   :  { %s8758_s26 = scalar_lea.hbm %s9885_s10, 16 }
  0x9e   :  { %p8759_p2 = scmp.ne.s32.totalorder %s9885_s10, %s8758_s26  ;;  %p8762_p3 = scmp.lt.u32.totalorder %s8758_s26, %s9885_s10 }
  0xa0   :  { %p8764_p4 = pnand %p8762_p3, %p8759_p2 }
  0xa2   :  { %8767 = shalt.err (!%p8764_p4)
}
  0xa3   :  { %s8768_s29 = scalar_lea.vmem %s131_s16, 16  ;;  %s8772_s30 = scalar_lea.vmem %s131_s16, 32 }
  0xa4   :  { %p8769_p5 = scmp.ne.s32.totalorder %s131_s16, %s8768_s29  ;;  %p8773_p6 = scmp.lt.s32.totalorder %s131_s16, %s131_s16 }
  0xa5   :  { %p8774_p7 = scmp.lt.s32.totalorder %s8772_s30, %s8768_s29 }
  0xa7   :  { %p8775_p8 = por %p8774_p7, %p8773_p6 }
  0xa9   :  { %p8776_p9 = pnand %p8775_p8, %p8769_p5 }
  0xab   :  { %8779 = shalt.err (!%p8776_p9)
}
  0xac   :  { %133 = dma.hbm_to_vmem [thread:$0]  %s9885_s10, 16, %s131_s16, [#allocation17]  }
  0xad   :  { %8780 = dma.done.wait [#allocation3], 35840  }
  0xae   :  { %8781 = vsyncadd [#allocation3], 4294931456 }
  0xaf   :  { %8782 = dma.done.wait [#allocation5], 15440  }
  0xb0   :  { %8783 = vsyncadd [#allocation5], 4294951856 }
  0xb1   :  { %8784 = dma.done.wait [#allocation8], 6192  }
  0xb2   :  { %8785 = vsyncadd [#allocation8], 4294961104 }
  0xb3   :  { %8786 = dma.done.wait [#allocation11], 2080  }
  0xb4   :  { %8787 = vsyncadd [#allocation11], 4294965216 }
  0xb5   :  { %8788 = dma.done.wait [#allocation14], 1040  }
  0xb6   :  { %8789 = vsyncadd [#allocation14], 4294966256 }
  0xb7   :  { %8790 = dma.done.wait [#allocation17], 16  }
  0xb8   :  { %8791 = vsyncadd [#allocation17], 4294967280  ;;  %v7784_v0 = vld [vmem:[#allocation2 + $0x4] ss:$20 sps:$4 sm:$0xff]   ;;  %v7786_v1 = vld [vmem:[#allocation2 + $0xc] ss:$20 sps:$4 sm:$0xff]  }
  0xb9   :  { %2336 = vmatprep.subr.bf16.mxu0 %v7784_v0  ;;  %v7788_v2 = vld [vmem:[#allocation2] ss:$20 sps:$4 sm:$0xff]   ;;  %v7789_v3 = vld [vmem:[#allocation2 + $0x8] ss:$20 sps:$4 sm:$0xff]   ;;  %2788 = vmatprep.subr.bf16.mxu1 %v7786_v1  ;;  %v7795_v7 = vld [vmem:[#allocation2 + $0x30] ss:$20 sps:$4 sm:$0xff]  }
  0xba   :  { %v7790_v4 = vld [vmem:[#allocation2 + $0x2c] ss:$20 sps:$4 sm:$0xff]   ;;  %2337 = vmatpush1.bf16.msra.mxu0 %v7788_v2  ;;  %2789 = vmatpush1.bf16.msra.mxu1 %v7789_v3  ;;  %v7792_v5 = vld [vmem:[#allocation2 + $0x34] ss:$20 sps:$4 sm:$0xff]   ;;  %v7798_v9 = vld [vmem:[#allocation2 + $0x5c] ss:$20 sps:$4 sm:$0xff]  }
  0xbb   :  { %v7794_v6 = vld [vmem:[#allocation2 + $0x28] ss:$20 sps:$4 sm:$0xff]   ;;  %2338 = vmatprep.subr.bf16.mxu0 %v7790_v4  ;;  %2790 = vmatprep.subr.bf16.mxu1 %v7792_v5  ;;  %v7800_v10 = vld [vmem:[#allocation2 + $0x50] ss:$20 sps:$4 sm:$0xff]   ;;  %v7801_v11 = vld [vmem:[#allocation2 + $0x58] ss:$20 sps:$4 sm:$0xff]  }
  0xbc   :  { %v7796_v8 = vld [vmem:[#allocation2 + $0x54] ss:$20 sps:$4 sm:$0xff]   ;;  %v7802_v12 = vld [vmem:[#allocation2 + $0x7c] ss:$20 sps:$4 sm:$0xff]   ;;  %v7804_v13 = vld [vmem:[#allocation2 + $0x84] ss:$20 sps:$4 sm:$0xff]  }
  0xbd   :  { %v7806_v14 = vld [vmem:[#allocation2 + $0x78] ss:$20 sps:$4 sm:$0xff]   ;;  %v7807_v15 = vld [vmem:[#allocation2 + $0x80] ss:$20 sps:$4 sm:$0xff]   ;;  %v7813_v19 = vld [vmem:[#allocation2 + $0xa8] ss:$20 sps:$4 sm:$0xff]  }
  0xbe   :  { %2339 = vmatpush1.bf16.msra.mxu0 %v7794_v6  ;;  %2791 = vmatpush1.bf16.msra.mxu1 %v7795_v7  ;;  %v7808_v16 = vld [vmem:[#allocation2 + $0xa4] ss:$20 sps:$4 sm:$0xff]   ;;  %v7810_v17 = vld [vmem:[#allocation2 + $0xac] ss:$20 sps:$4 sm:$0xff]   ;;  %v7816_v21 = vld [vmem:[#allocation2 + $0xd4] ss:$20 sps:$4 sm:$0xff]  }
  0xbf   :  { %2340 = vmatprep.subr.bf16.mxu0 %v7796_v8  ;;  %2792 = vmatprep.subr.bf16.mxu1 %v7798_v9  ;;  %v7812_v18 = vld [vmem:[#allocation2 + $0xa0] ss:$20 sps:$4 sm:$0xff]   ;;  %v7818_v22 = vld [vmem:[#allocation2 + $0xc8] ss:$20 sps:$4 sm:$0xff]   ;;  %v7819_v23 = vld [vmem:[#allocation2 + $0xd0] ss:$20 sps:$4 sm:$0xff]  }
  0xc0   :  { %v7814_v20 = vld [vmem:[#allocation2 + $0xcc] ss:$20 sps:$4 sm:$0xff]   ;;  %v7820_v24 = vld [vmem:[#allocation2 + $0xf4] ss:$20 sps:$4 sm:$0xff]   ;;  %v7822_v25 = vld [vmem:[#allocation2 + $0xfc] ss:$20 sps:$4 sm:$0xff]  }
  0xc1   :  { %v7824_v26 = vld [vmem:[#allocation2 + $0xf0] ss:$20 sps:$4 sm:$0xff]   ;;  %v7825_v27 = vld [vmem:[#allocation2 + $0xf8] ss:$20 sps:$4 sm:$0xff]   ;;  %v7831_v31 = vld [vmem:[#allocation2 + $0x120] ss:$20 sps:$4 sm:$0xff]  }
  0xc2   :  { %2341 = vmatpush1.bf16.msra.mxu0 %v7800_v10  ;;  %2793 = vmatpush1.bf16.msra.mxu1 %v7801_v11  ;;  %v7826_v28 = vld [vmem:[#allocation2 + $0x11c] ss:$20 sps:$4 sm:$0xff]   ;;  %v7828_v29 = vld [vmem:[#allocation2 + $0x124] ss:$20 sps:$4 sm:$0xff]   ;;  %v7834_v33 = vld [vmem:[#allocation2 + $0x14c] ss:$20 sps:$4 sm:$0xff]  }
  0xc3   :  { %2342 = vmatprep.subr.bf16.mxu0 %v7802_v12  ;;  %2794 = vmatprep.subr.bf16.mxu1 %v7804_v13  ;;  %v7830_v30 = vld [vmem:[#allocation2 + $0x118] ss:$20 sps:$4 sm:$0xff]   ;;  %v7836_v34 = vld [vmem:[#allocation2 + $0x140] ss:$20 sps:$4 sm:$0xff]   ;;  %v7837_v35 = vld [vmem:[#allocation2 + $0x148] ss:$20 sps:$4 sm:$0xff]  }
  0xc4   :  { %v7832_v32 = vld [vmem:[#allocation2 + $0x144] ss:$20 sps:$4 sm:$0xff]   ;;  %v7838_v36 = vld [vmem:[#allocation2 + $0x16c] ss:$20 sps:$4 sm:$0xff]   ;;  %v7840_v37 = vld [vmem:[#allocation2 + $0x174] ss:$20 sps:$4 sm:$0xff]  }
  0xc5   :  { %v7842_v38 = vld [vmem:[#allocation2 + $0x168] ss:$20 sps:$4 sm:$0xff]   ;;  %v7843_v39 = vld [vmem:[#allocation2 + $0x170] ss:$20 sps:$4 sm:$0xff]   ;;  %v7849_v43 = vld [vmem:[#allocation2 + $0x198] ss:$20 sps:$4 sm:$0xff]  }
  0xc6   :  { %2343 = vmatpush1.bf16.msra.mxu0 %v7806_v14  ;;  %2795 = vmatpush1.bf16.msra.mxu1 %v7807_v15  ;;  %v7844_v40 = vld [vmem:[#allocation2 + $0x194] ss:$20 sps:$4 sm:$0xff]   ;;  %v7846_v41 = vld [vmem:[#allocation2 + $0x19c] ss:$20 sps:$4 sm:$0xff]   ;;  %v7852_v45 = vld [vmem:[#allocation2 + $0x1c4] ss:$20 sps:$4 sm:$0xff]  }
  0xc7   :  { %2344 = vmatprep.subr.bf16.mxu0 %v7808_v16  ;;  %2796 = vmatprep.subr.bf16.mxu1 %v7810_v17  ;;  %v7848_v42 = vld [vmem:[#allocation2 + $0x190] ss:$20 sps:$4 sm:$0xff]   ;;  %v7854_v46 = vld [vmem:[#allocation2 + $0x1b8] ss:$20 sps:$4 sm:$0xff]   ;;  %v7855_v47 = vld [vmem:[#allocation2 + $0x1c0] ss:$20 sps:$4 sm:$0xff]  }
  0xc8   :  { %v7850_v44 = vld [vmem:[#allocation2 + $0x1bc] ss:$20 sps:$4 sm:$0xff]   ;;  %v7880_v48 = vld [vmem:[%s9875_s0 + $0x4] ss:$28 sps:$4 sm:$0xff]   ;;  %v7864_v54 = vld [vmem:[#allocation2 + $0x214] ss:$20 sps:$4 sm:$0xff]  }
  0xc9   :  { %v7856_v49 = vld [vmem:[#allocation2 + $0x1e4] ss:$20 sps:$4 sm:$0xff]   ;;  %v7858_v50 = vld [vmem:[#allocation2 + $0x1ec] ss:$20 sps:$4 sm:$0xff]   ;;  %2368 = vmatprep.mubr.bf16.mxu0 %v7880_v48  ;;  %2820 = vmatprep.mubr.bf16.mxu1 %v7880_v48  ;;  %v7861_v52 = vld [vmem:[#allocation2 + $0x1e8] ss:$20 sps:$4 sm:$0xff]  }
  0xca   :  { %2345 = vmatpush1.bf16.msra.mxu0 %v7812_v18  ;;  %2797 = vmatpush1.bf16.msra.mxu1 %v7813_v19  ;;  %v7860_v51 = vld [vmem:[#allocation2 + $0x1e0] ss:$20 sps:$4 sm:$0xff]   ;;  %v7866_v55 = vld [vmem:[#allocation2 + $0x208] ss:$20 sps:$4 sm:$0xff]   ;;  %v7867_v56 = vld [vmem:[#allocation2 + $0x210] ss:$20 sps:$4 sm:$0xff]  }
  0xcb   :  { %2346 = vmatprep.subr.bf16.mxu0 %v7814_v20  ;;  %2798 = vmatprep.subr.bf16.mxu1 %v7816_v21  ;;  %v7862_v53 = vld [vmem:[#allocation2 + $0x20c] ss:$20 sps:$4 sm:$0xff]   ;;  %v7868_v57 = vld [vmem:[#allocation2 + $0x234] ss:$20 sps:$4 sm:$0xff]   ;;  %v7870_v58 = vld [vmem:[#allocation2 + $0x23c] ss:$20 sps:$4 sm:$0xff]  }
  0xcc   :  { %v7872_v59 = vld [vmem:[#allocation2 + $0x230] ss:$20 sps:$4 sm:$0xff]   ;;  %v7873_v60 = vld [vmem:[#allocation2 + $0x238] ss:$20 sps:$4 sm:$0xff]   ;;  %v7879_v0 = vld [vmem:[#allocation2 + $0x260] ss:$20 sps:$4 sm:$0xff]  }
  0xcd   :  { %v7874_v61 = vld [vmem:[#allocation2 + $0x25c] ss:$20 sps:$4 sm:$0xff]   ;;  %v7876_v62 = vld [vmem:[#allocation2 + $0x264] ss:$20 sps:$4 sm:$0xff]   ;;  %v7888_v2 = vld [vmem:[#allocation2 + $0x28c] ss:$20 sps:$4 sm:$0xff]  }
  0xce   :  { %2347 = vmatpush1.bf16.msra.mxu0 %v7818_v22  ;;  %2799 = vmatpush1.bf16.msra.mxu1 %v7819_v23  ;;  %v7878_v63 = vld [vmem:[#allocation2 + $0x258] ss:$20 sps:$4 sm:$0xff]   ;;  %v7882_v3 = vld [vmem:[%s9875_s0] ss:$28 sps:$4 sm:$0xff]   ;;  %v7894_v7 = vld [vmem:[#allocation2 + $0x2b4] ss:$20 sps:$4 sm:$0xff]  }
  0xcf   :  { %2348 = vmatprep.subr.bf16.mxu0 %v7820_v24  ;;  %2800 = vmatprep.subr.bf16.mxu1 %v7822_v25  ;;  %v7885_v1 = vld [vmem:[#allocation2 + $0x284] ss:$20 sps:$4 sm:$0xff]   ;;  %v7883_v4 = vld [vmem:[#allocation2 + $0x280] ss:$20 sps:$4 sm:$0xff]   ;;  %v7886_v5 = vld [vmem:[#allocation2 + $0x288] ss:$20 sps:$4 sm:$0xff]  }
  0xd0   :  { %v7891_v6 = vld [vmem:[#allocation2 + $0x2ac] ss:$20 sps:$4 sm:$0xff]   ;;  %v7895_v8 = vld [vmem:[%s9875_s0 + $0x3c] ss:$28 sps:$4 sm:$0xff]   ;;  %v7892_v10 = vld [vmem:[#allocation2 + $0x2b0] ss:$20 sps:$4 sm:$0xff]  }
  0xd1   :  { %v7889_v9 = vld [vmem:[#allocation2 + $0x2a8] ss:$20 sps:$4 sm:$0xff]   ;;  %v7897_v13 = vld [vmem:[%s9875_s0 + $0x38] ss:$28 sps:$4 sm:$0xff]   ;;  %v7898_v14 = vld [vmem:[#allocation2 + $0x2d0] ss:$20 sps:$4 sm:$0xff]  }
  0xd2   :  { %2349 = vmatpush1.bf16.msra.mxu0 %v7824_v26  ;;  %2801 = vmatpush1.bf16.msra.mxu1 %v7825_v27  ;;  %v7900_v11 = vld [vmem:[#allocation2 + $0x2d4] ss:$20 sps:$4 sm:$0xff]   ;;  %v7903_v12 = vld [vmem:[#allocation2 + $0x2dc] ss:$20 sps:$4 sm:$0xff]   ;;  %v7901_v15 = vld [vmem:[#allocation2 + $0x2d8] ss:$20 sps:$4 sm:$0xff]  }
  0xd3   :  { %2350 = vmatprep.subr.bf16.mxu0 %v7826_v28  ;;  %2802 = vmatprep.subr.bf16.mxu1 %v7828_v29  ;;  %v7906_v16 = vld [vmem:[#allocation2 + $0x2fc] ss:$20 sps:$4 sm:$0xff]   ;;  %v7909_v17 = vld [vmem:[#allocation2 + $0x304] ss:$20 sps:$4 sm:$0xff]   ;;  %v7907_v20 = vld [vmem:[#allocation2 + $0x300] ss:$20 sps:$4 sm:$0xff]  }
  0xd4   :  { %v7910_v18 = vld [vmem:[%s9875_s0 + $0x74] ss:$28 sps:$4 sm:$0xff]   ;;  %v7904_v19 = vld [vmem:[#allocation2 + $0x2f8] ss:$20 sps:$4 sm:$0xff]   ;;  %v7916_v25 = vld [vmem:[#allocation2 + $0x328] ss:$20 sps:$4 sm:$0xff]  }
  0xd5   :  { %v7915_v21 = vld [vmem:[#allocation2 + $0x324] ss:$20 sps:$4 sm:$0xff]   ;;  %v7918_v22 = vld [vmem:[#allocation2 + $0x32c] ss:$20 sps:$4 sm:$0xff]   ;;  %v7924_v27 = vld [vmem:[#allocation2 + $0x354] ss:$20 sps:$4 sm:$0xff]  }
  0xd6   :  { %2351 = vmatpush1.bf16.msra.mxu0 %v7830_v30  ;;  %2803 = vmatpush1.bf16.msra.mxu1 %v7831_v31  ;;  %v7912_v23 = vld [vmem:[%s9875_s0 + $0x70] ss:$28 sps:$4 sm:$0xff]   ;;  %v7913_v24 = vld [vmem:[#allocation2 + $0x320] ss:$20 sps:$4 sm:$0xff]   ;;  %v7919_v29 = vld [vmem:[#allocation2 + $0x348] ss:$20 sps:$4 sm:$0xff]  }
  0xd7   :  { %2352 = vmatprep.subr.bf16.mxu0 %v7832_v32  ;;  %2804 = vmatprep.subr.bf16.mxu1 %v7834_v33  ;;  %v7921_v26 = vld [vmem:[#allocation2 + $0x34c] ss:$20 sps:$4 sm:$0xff]   ;;  %v7922_v30 = vld [vmem:[#allocation2 + $0x350] ss:$20 sps:$4 sm:$0xff]   ;;  %v7930_v31 = vld [vmem:[#allocation2 + $0x374] ss:$20 sps:$4 sm:$0xff]  }
  0xd8   :  { %v7925_v28 = vld [vmem:[%s9875_s0 + $0xac] ss:$28 sps:$4 sm:$0xff]   ;;  %v7933_v32 = vld [vmem:[#allocation2 + $0x37c] ss:$20 sps:$4 sm:$0xff]  }
  0xd9   :  { %v7927_v33 = vld [vmem:[%s9875_s0 + $0xa8] ss:$28 sps:$4 sm:$0xff]   ;;  %v7955_v48 = vld [vmem:[%s9875_s0 + $0x11c] ss:$28 sps:$4 sm:$0xff]  }
  0xda   :  { %2353 = vmatpush1.bf16.msra.mxu0 %v7836_v34  ;;  %2805 = vmatpush1.bf16.msra.mxu1 %v7837_v35  ;;  %v7928_v34 = vld [vmem:[#allocation2 + $0x370] ss:$20 sps:$4 sm:$0xff]   ;;  %v7931_v35 = vld [vmem:[#allocation2 + $0x378] ss:$20 sps:$4 sm:$0xff]  }
  0xdb   :  { %2354 = vmatprep.subr.bf16.mxu0 %v7838_v36  ;;  %2806 = vmatprep.subr.bf16.mxu1 %v7840_v37  ;;  %v7936_v36 = vld [vmem:[#allocation2 + $0x39c] ss:$20 sps:$4 sm:$0xff]   ;;  %v7939_v37 = vld [vmem:[#allocation2 + $0x3a4] ss:$20 sps:$4 sm:$0xff]  }
  0xde   :  { %2355 = vmatpush1.bf16.msra.mxu0 %v7842_v38  ;;  %2807 = vmatpush1.bf16.msra.mxu1 %v7843_v39  ;;  %v7940_v38 = vld [vmem:[%s9875_s0 + $0xe4] ss:$28 sps:$4 sm:$0xff]   ;;  %v7934_v39 = vld [vmem:[#allocation2 + $0x398] ss:$20 sps:$4 sm:$0xff]  }
  0xdf   :  { %2356 = vmatprep.subr.bf16.mxu0 %v7844_v40  ;;  %2808 = vmatprep.subr.bf16.mxu1 %v7846_v41  ;;  %v7937_v40 = vld [vmem:[#allocation2 + $0x3a0] ss:$20 sps:$4 sm:$0xff]   ;;  %v7945_v41 = vld [vmem:[#allocation2 + $0x3c4] ss:$20 sps:$4 sm:$0xff]  }
  0xe2   :  { %2357 = vmatpush1.bf16.msra.mxu0 %v7848_v42  ;;  %2809 = vmatpush1.bf16.msra.mxu1 %v7849_v43  ;;  %v7948_v42 = vld [vmem:[#allocation2 + $0x3cc] ss:$20 sps:$4 sm:$0xff]  }
  0xe3   :  { %2358 = vmatprep.subr.bf16.mxu0 %v7850_v44  ;;  %2810 = vmatprep.subr.bf16.mxu1 %v7852_v45  ;;  %v7942_v43 = vld [vmem:[%s9875_s0 + $0xe0] ss:$28 sps:$4 sm:$0xff]  }
  0xe4   :  { %v7943_v44 = vld [vmem:[#allocation2 + $0x3c0] ss:$20 sps:$4 sm:$0xff]   ;;  %v7946_v45 = vld [vmem:[#allocation2 + $0x3c8] ss:$20 sps:$4 sm:$0xff]  }
  0xe6   :  { %2359 = vmatpush1.bf16.msra.mxu0 %v7854_v46  ;;  %2811 = vmatpush1.bf16.msra.mxu1 %v7855_v47  ;;  %v7951_v46 = vld [vmem:[#allocation2 + $0x3ec] ss:$20 sps:$4 sm:$0xff]   ;;  %v7954_v47 = vld [vmem:[#allocation2 + $0x3f4] ss:$20 sps:$4 sm:$0xff]  }
  0xe7   :  { %2360 = vmatprep.subr.bf16.mxu0 %v7856_v49  ;;  %2812 = vmatprep.subr.bf16.mxu1 %v7858_v50  ;;  %v7949_v49 = vld [vmem:[#allocation2 + $0x3e8] ss:$20 sps:$4 sm:$0xff]   ;;  %v7952_v50 = vld [vmem:[#allocation2 + $0x3f0] ss:$20 sps:$4 sm:$0xff]  }
  0xea   :  { %2361 = vmatpush1.bf16.msra.mxu0 %v7860_v51  ;;  %2813 = vmatpush1.bf16.msra.mxu1 %v7861_v52  ;;  %v7960_v51 = vld [vmem:[#allocation2 + $0x414] ss:$20 sps:$4 sm:$0xff]   ;;  %v7963_v52 = vld [vmem:[#allocation2 + $0x41c] ss:$20 sps:$4 sm:$0xff]  }
  0xeb   :  { %2362 = vmatprep.subr.bf16.mxu0 %v7862_v53  ;;  %2814 = vmatprep.subr.bf16.mxu1 %v7864_v54  ;;  %v7957_v53 = vld [vmem:[%s9875_s0 + $0x118] ss:$28 sps:$4 sm:$0xff]   ;;  %v7958_v54 = vld [vmem:[#allocation2 + $0x410] ss:$20 sps:$4 sm:$0xff]  }
  0xee   :  { %2363 = vmatpush1.bf16.msra.mxu0 %v7866_v55  ;;  %2815 = vmatpush1.bf16.msra.mxu1 %v7867_v56  ;;  %v7961_v55 = vld [vmem:[#allocation2 + $0x418] ss:$20 sps:$4 sm:$0xff]   ;;  %v7966_v56 = vld [vmem:[#allocation2 + $0x43c] ss:$20 sps:$4 sm:$0xff]  }
  0xef   :  { %2364 = vmatprep.subr.bf16.mxu0 %v7868_v57  ;;  %2816 = vmatprep.subr.bf16.mxu1 %v7870_v58  ;;  %v7969_v57 = vld [vmem:[#allocation2 + $0x444] ss:$20 sps:$4 sm:$0xff]   ;;  %v7970_v58 = vld [vmem:[%s9875_s0 + $0x154] ss:$28 sps:$4 sm:$0xff]  }
  0xf2   :  { %2365 = vmatpush1.bf16.msra.mxu0 %v7872_v59  ;;  %2817 = vmatpush1.bf16.msra.mxu1 %v7873_v60  ;;  %v7964_v59 = vld [vmem:[#allocation2 + $0x438] ss:$20 sps:$4 sm:$0xff]   ;;  %v7967_v60 = vld [vmem:[#allocation2 + $0x440] ss:$20 sps:$4 sm:$0xff]  }
  0xf3   :  { %2366 = vmatprep.subr.bf16.mxu0 %v7874_v61  ;;  %2818 = vmatprep.subr.bf16.mxu1 %v7876_v62  ;;  %v7975_v61 = vld [vmem:[#allocation2 + $0x464] ss:$20 sps:$4 sm:$0xff]   ;;  %v7978_v62 = vld [vmem:[#allocation2 + $0x46c] ss:$20 sps:$4 sm:$0xff]  }
  0xf6   :  { %2367 = vmatpush1.bf16.msra.mxu0 %v7878_v63  ;;  %2819 = vmatpush1.bf16.msra.mxu1 %v7879_v0  ;;  %v7972_v63 = vld [vmem:[%s9875_s0 + $0x150] ss:$28 sps:$4 sm:$0xff]   ;;  %v7973_v0 = vld [vmem:[#allocation2 + $0x460] ss:$20 sps:$4 sm:$0xff]  }
  0xf7   :  { %2449 = vmatprep.subr.bf16.mxu0 %v7885_v1  ;;  %2901 = vmatprep.subr.bf16.mxu1 %v7888_v2  ;;  %v7976_v1 = vld [vmem:[#allocation2 + $0x468] ss:$20 sps:$4 sm:$0xff]   ;;  %v7981_v2 = vld [vmem:[#allocation2 + $0x48c] ss:$20 sps:$4 sm:$0xff]  }
  0xf9   :  { %2369 = vmatmul.mubr.bf16.vlgmr.msra.gmra.mrb[0].mxu0 %v7882_v3  ;;  %2821 = vmatmul.mubr.bf16.vlgmr.msra.gmra.mrb[0].mxu1 %v7882_v3  ;;  %v7984_v3 = vld [vmem:[#allocation2 + $0x494] ss:$20 sps:$4 sm:$0xff]  }
  0xfa   :  { %2450 = vmatpush1.bf16.msra.mxu0 %v7883_v4  ;;  %2902 = vmatpush1.bf16.msra.mxu1 %v7886_v5  ;;  %v7985_v4 = vld [vmem:[%s9875_s0 + $0x18c] ss:$28 sps:$4 sm:$0xff]  }
  0xfb   :  { %2451 = vmatprep.subr.bf16.mxu0 %v7891_v6  ;;  %2903 = vmatprep.subr.bf16.mxu1 %v7894_v7  ;;  %v7979_v5 = vld [vmem:[#allocation2 + $0x488] ss:$20 sps:$4 sm:$0xff]   ;;  %v7982_v6 = vld [vmem:[#allocation2 + $0x490] ss:$20 sps:$4 sm:$0xff]  }
  0xfc   :  { %2378 = vmatprep.mubr.bf16.mxu0 %v7895_v8  ;;  %2830 = vmatprep.mubr.bf16.mxu1 %v7895_v8  ;;  %v7990_v7 = vld [vmem:[#allocation2 + $0x4b4] ss:$20 sps:$4 sm:$0xff]   ;;  %v7993_v8 = vld [vmem:[#allocation2 + $0x4bc] ss:$20 sps:$4 sm:$0xff]  }
  0xfe   :  { %2452 = vmatpush1.bf16.msra.mxu0 %v7889_v9  ;;  %2904 = vmatpush1.bf16.msra.mxu1 %v7892_v10  ;;  %v7987_v9 = vld [vmem:[%s9875_s0 + $0x188] ss:$28 sps:$4 sm:$0xff]  }
  0xff   :  { %2453 = vmatprep.subr.bf16.mxu0 %v7900_v11  ;;  %2905 = vmatprep.subr.bf16.mxu1 %v7903_v12  ;;  %v7988_v10 = vld [vmem:[#allocation2 + $0x4b0] ss:$20 sps:$4 sm:$0xff]   ;;  %v7991_v11 = vld [vmem:[#allocation2 + $0x4b8] ss:$20 sps:$4 sm:$0xff]  }
 0x100   :  { %v7996_v12 = vld [vmem:[#allocation2 + $0x4dc] ss:$20 sps:$4 sm:$0xff]  }
 0x101   :  { %2379 = vmatmul.mubr.bf16.gmra.mrb[4].mxu0 %v7897_v13  ;;  %2831 = vmatmul.mubr.bf16.gmra.mrb[4].mxu1 %v7897_v13  ;;  %v7999_v13 = vld [vmem:[#allocation2 + $0x4e4] ss:$20 sps:$4 sm:$0xff]  }
 0x102   :  { %2454 = vmatpush1.bf16.msra.mxu0 %v7898_v14  ;;  %2906 = vmatpush1.bf16.msra.mxu1 %v7901_v15  ;;  %v8002_v14 = vld [vmem:[%s9875_s0 + $0xc] ss:$28 sps:$4 sm:$0xff]  }
 0x103   :  { %2455 = vmatprep.subr.bf16.mxu0 %v7906_v16  ;;  %2907 = vmatprep.subr.bf16.mxu1 %v7909_v17  ;;  %v7994_v15 = vld [vmem:[#allocation2 + $0x4d8] ss:$20 sps:$4 sm:$0xff]   ;;  %v7997_v16 = vld [vmem:[#allocation2 + $0x4e0] ss:$20 sps:$4 sm:$0xff]  }
 0x104   :  { %2388 = vmatprep.mubr.bf16.mxu0 %v7910_v18  ;;  %2840 = vmatprep.mubr.bf16.mxu1 %v7910_v18  ;;  %v8005_v17 = vld [vmem:[#allocation2 + $0x504] ss:$20 sps:$4 sm:$0xff]   ;;  %v8008_v18 = vld [vmem:[#allocation2 + $0x50c] ss:$20 sps:$4 sm:$0xff]  }
 0x106   :  { %2456 = vmatpush1.bf16.msra.mxu0 %v7904_v19  ;;  %2908 = vmatpush1.bf16.msra.mxu1 %v7907_v20  ;;  %v8000_v19 = vld [vmem:[%s9875_s0 + $0x8] ss:$28 sps:$4 sm:$0xff]   ;;  %v8003_v20 = vld [vmem:[#allocation2 + $0x500] ss:$20 sps:$4 sm:$0xff]  }
 0x107   :  { %2457 = vmatprep.subr.bf16.mxu0 %v7915_v21  ;;  %2909 = vmatprep.subr.bf16.mxu1 %v7918_v22  ;;  %v8006_v21 = vld [vmem:[#allocation2 + $0x508] ss:$20 sps:$4 sm:$0xff]   ;;  %v8011_v22 = vld [vmem:[#allocation2 + $0x52c] ss:$20 sps:$4 sm:$0xff]  }
 0x109   :  { %2389 = vmatmul.mubr.bf16.gmra.mrb[8].mxu0 %v7912_v23  ;;  %2841 = vmatmul.mubr.bf16.gmra.mrb[8].mxu1 %v7912_v23  ;;  %v8014_v23 = vld [vmem:[#allocation2 + $0x534] ss:$20 sps:$4 sm:$0xff]  }
 0x10a   :  { %2458 = vmatpush1.bf16.msra.mxu0 %v7913_v24  ;;  %2910 = vmatpush1.bf16.msra.mxu1 %v7916_v25  ;;  %v8015_v24 = vld [vmem:[%s9875_s0 + $0x44] ss:$28 sps:$4 sm:$0xff]   ;;  %v8009_v25 = vld [vmem:[#allocation2 + $0x528] ss:$20 sps:$4 sm:$0xff]  }
 0x10b   :  { %2459 = vmatprep.subr.bf16.mxu0 %v7921_v26  ;;  %2911 = vmatprep.subr.bf16.mxu1 %v7924_v27  ;;  %v8012_v26 = vld [vmem:[#allocation2 + $0x530] ss:$20 sps:$4 sm:$0xff]   ;;  %v8020_v27 = vld [vmem:[#allocation2 + $0x554] ss:$20 sps:$4 sm:$0xff]  }
 0x10c   :  { %2398 = vmatprep.mubr.bf16.mxu0 %v7925_v28  ;;  %2850 = vmatprep.mubr.bf16.mxu1 %v7925_v28  ;;  %v8023_v28 = vld [vmem:[#allocation2 + $0x55c] ss:$20 sps:$4 sm:$0xff]  }
 0x10e   :  { %2460 = vmatpush1.bf16.msra.mxu0 %v7919_v29  ;;  %2912 = vmatpush1.bf16.msra.mxu1 %v7922_v30  ;;  %v8017_v29 = vld [vmem:[%s9875_s0 + $0x40] ss:$28 sps:$4 sm:$0xff]   ;;  %v8018_v30 = vld [vmem:[#allocation2 + $0x550] ss:$20 sps:$4 sm:$0xff]  }
 0x10f   :  { %2461 = vmatprep.subr.bf16.mxu0 %v7930_v31  ;;  %2913 = vmatprep.subr.bf16.mxu1 %v7933_v32  ;;  %v8021_v31 = vld [vmem:[#allocation2 + $0x558] ss:$20 sps:$4 sm:$0xff]   ;;  %v8026_v32 = vld [vmem:[#allocation2 + $0x57c] ss:$20 sps:$4 sm:$0xff]  }
 0x111   :  { %2399 = vmatmul.mubr.bf16.gmra.mrb[12].mxu0 %v7927_v33  ;;  %2851 = vmatmul.mubr.bf16.gmra.mrb[12].mxu1 %v7927_v33  ;;  %v8029_v33 = vld [vmem:[#allocation2 + $0x584] ss:$20 sps:$4 sm:$0xff]  }
 0x112   :  { %2462 = vmatpush1.bf16.msra.mxu0 %v7928_v34  ;;  %2914 = vmatpush1.bf16.msra.mxu1 %v7931_v35  ;;  %v8030_v34 = vld [vmem:[%s9875_s0 + $0x7c] ss:$28 sps:$4 sm:$0xff]  }
 0x113   :  { %2463 = vmatprep.subr.bf16.mxu0 %v7936_v36  ;;  %2915 = vmatprep.subr.bf16.mxu1 %v7939_v37  ;;  %v8024_v35 = vld [vmem:[#allocation2 + $0x578] ss:$20 sps:$4 sm:$0xff]   ;;  %v8027_v36 = vld [vmem:[#allocation2 + $0x580] ss:$20 sps:$4 sm:$0xff]  }
 0x114   :  { %2408 = vmatprep.mubr.bf16.mxu0 %v7940_v38  ;;  %2860 = vmatprep.mubr.bf16.mxu1 %v7940_v38  ;;  %v8035_v37 = vld [vmem:[#allocation2 + $0x5a4] ss:$20 sps:$4 sm:$0xff]   ;;  %v8038_v38 = vld [vmem:[#allocation2 + $0x5ac] ss:$20 sps:$4 sm:$0xff]  }
 0x116   :  { %2464 = vmatpush1.bf16.msra.mxu0 %v7934_v39  ;;  %2916 = vmatpush1.bf16.msra.mxu1 %v7937_v40  ;;  %v8032_v39 = vld [vmem:[%s9875_s0 + $0x78] ss:$28 sps:$4 sm:$0xff]  }
 0x117   :  { %2465 = vmatprep.subr.bf16.mxu0 %v7945_v41  ;;  %2917 = vmatprep.subr.bf16.mxu1 %v7948_v42  ;;  %v8033_v40 = vld [vmem:[#allocation2 + $0x5a0] ss:$20 sps:$4 sm:$0xff]   ;;  %v8036_v41 = vld [vmem:[#allocation2 + $0x5a8] ss:$20 sps:$4 sm:$0xff]  }
 0x118   :  { %v8041_v42 = vld [vmem:[#allocation2 + $0x5cc] ss:$20 sps:$4 sm:$0xff]  }
 0x119   :  { %2409 = vmatmul.mubr.bf16.gmra.mrb[16].mxu0 %v7942_v43  ;;  %2861 = vmatmul.mubr.bf16.gmra.mrb[16].mxu1 %v7942_v43  ;;  %v8044_v43 = vld [vmem:[#allocation2 + $0x5d4] ss:$20 sps:$4 sm:$0xff]  }
 0x11a   :  { %2466 = vmatpush1.bf16.msra.mxu0 %v7943_v44  ;;  %2918 = vmatpush1.bf16.msra.mxu1 %v7946_v45  ;;  %v8045_v44 = vld [vmem:[%s9875_s0 + $0xb4] ss:$28 sps:$4 sm:$0xff]   ;;  %v8039_v45 = vld [vmem:[#allocation2 + $0x5c8] ss:$20 sps:$4 sm:$0xff]  }
 0x11b   :  { %2467 = vmatprep.subr.bf16.mxu0 %v7951_v46  ;;  %2919 = vmatprep.subr.bf16.mxu1 %v7954_v47  ;;  %v8042_v46 = vld [vmem:[#allocation2 + $0x5d0] ss:$20 sps:$4 sm:$0xff]   ;;  %v8050_v47 = vld [vmem:[#allocation2 + $0x5f4] ss:$20 sps:$4 sm:$0xff]  }
 0x11c   :  { %2418 = vmatprep.mubr.bf16.mxu0 %v7955_v48  ;;  %2870 = vmatprep.mubr.bf16.mxu1 %v7955_v48  ;;  %v8053_v48 = vld [vmem:[#allocation2 + $0x5fc] ss:$20 sps:$4 sm:$0xff]  }
 0x11e   :  { %2468 = vmatpush1.bf16.msra.mxu0 %v7949_v49  ;;  %2920 = vmatpush1.bf16.msra.mxu1 %v7952_v50  ;;  %v8047_v49 = vld [vmem:[%s9875_s0 + $0xb0] ss:$28 sps:$4 sm:$0xff]  }
 0x11f   :  { %2469 = vmatprep.subr.bf16.mxu0 %v7960_v51  ;;  %2921 = vmatprep.subr.bf16.mxu1 %v7963_v52  ;;  %v8048_v50 = vld [vmem:[#allocation2 + $0x5f0] ss:$20 sps:$4 sm:$0xff]   ;;  %v8051_v51 = vld [vmem:[#allocation2 + $0x5f8] ss:$20 sps:$4 sm:$0xff]  }
 0x120   :  { %v8056_v52 = vld [vmem:[#allocation2 + $0x61c] ss:$20 sps:$4 sm:$0xff]  }
 0x121   :  { %2419 = vmatmul.mubr.bf16.gmra.mrb[20].mxu0 %v7957_v53  ;;  %2871 = vmatmul.mubr.bf16.gmra.mrb[20].mxu1 %v7957_v53  ;;  %v8059_v53 = vld [vmem:[#allocation2 + $0x624] ss:$20 sps:$4 sm:$0xff]  }
 0x122   :  { %2470 = vmatpush1.bf16.msra.mxu0 %v7958_v54  ;;  %2922 = vmatpush1.bf16.msra.mxu1 %v7961_v55  ;;  %v8060_v54 = vld [vmem:[%s9875_s0 + $0xec] ss:$28 sps:$4 sm:$0xff]  }
 0x123   :  { %2471 = vmatprep.subr.bf16.mxu0 %v7966_v56  ;;  %2923 = vmatprep.subr.bf16.mxu1 %v7969_v57  ;;  %v8054_v55 = vld [vmem:[#allocation2 + $0x618] ss:$20 sps:$4 sm:$0xff]   ;;  %v8057_v56 = vld [vmem:[#allocation2 + $0x620] ss:$20 sps:$4 sm:$0xff]  }
 0x124   :  { %2428 = vmatprep.mubr.bf16.mxu0 %v7970_v58  ;;  %2880 = vmatprep.mubr.bf16.mxu1 %v7970_v58  ;;  %v8065_v57 = vld [vmem:[#allocation2 + $0x644] ss:$20 sps:$4 sm:$0xff]   ;;  %v8068_v58 = vld [vmem:[#allocation2 + $0x64c] ss:$20 sps:$4 sm:$0xff]  }
 0x126   :  { %2472 = vmatpush1.bf16.msra.mxu0 %v7964_v59  ;;  %2924 = vmatpush1.bf16.msra.mxu1 %v7967_v60  ;;  %v8062_v59 = vld [vmem:[%s9875_s0 + $0xe8] ss:$28 sps:$4 sm:$0xff]   ;;  %v8063_v60 = vld [vmem:[#allocation2 + $0x640] ss:$20 sps:$4 sm:$0xff]  }
 0x127   :  { %2473 = vmatprep.subr.bf16.mxu0 %v7975_v61  ;;  %2925 = vmatprep.subr.bf16.mxu1 %v7978_v62  ;;  %v8066_v61 = vld [vmem:[#allocation2 + $0x648] ss:$20 sps:$4 sm:$0xff]   ;;  %v8071_v62 = vld [vmem:[#allocation2 + $0x66c] ss:$20 sps:$4 sm:$0xff]  }
 0x129   :  { %2429 = vmatmul.mubr.bf16.gmra.mrb[24].mxu0 %v7972_v63  ;;  %2881 = vmatmul.mubr.bf16.gmra.mrb[24].mxu1 %v7972_v63  ;;  %v8074_v63 = vld [vmem:[#allocation2 + $0x674] ss:$20 sps:$4 sm:$0xff]  }
 0x12a   :  { %2474 = vmatpush1.bf16.msra.mxu0 %v7973_v0  ;;  %2926 = vmatpush1.bf16.msra.mxu1 %v7976_v1  ;;  %v8075_v0 = vld [vmem:[%s9875_s0 + $0x124] ss:$28 sps:$4 sm:$0xff]   ;;  %v8069_v1 = vld [vmem:[#allocation2 + $0x668] ss:$20 sps:$4 sm:$0xff]  }
 0x12b   :  { %2475 = vmatprep.subr.bf16.mxu0 %v7981_v2  ;;  %2927 = vmatprep.subr.bf16.mxu1 %v7984_v3  ;;  %v8072_v2 = vld [vmem:[#allocation2 + $0x670] ss:$20 sps:$4 sm:$0xff]   ;;  %v8080_v3 = vld [vmem:[#allocation2 + $0x694] ss:$20 sps:$4 sm:$0xff]  }
 0x12c   :  { %2438 = vmatprep.mubr.bf16.mxu0 %v7985_v4  ;;  %2890 = vmatprep.mubr.bf16.mxu1 %v7985_v4  ;;  %v8083_v4 = vld [vmem:[#allocation2 + $0x69c] ss:$20 sps:$4 sm:$0xff]  }
 0x12e   :  { %2476 = vmatpush1.bf16.msra.mxu0 %v7979_v5  ;;  %2928 = vmatpush1.bf16.msra.mxu1 %v7982_v6  ;;  %v8077_v5 = vld [vmem:[%s9875_s0 + $0x120] ss:$28 sps:$4 sm:$0xff]   ;;  %v8078_v6 = vld [vmem:[#allocation2 + $0x690] ss:$20 sps:$4 sm:$0xff]  }
 0x12f   :  { %2477 = vmatprep.subr.bf16.mxu0 %v7990_v7  ;;  %2929 = vmatprep.subr.bf16.mxu1 %v7993_v8  ;;  %v8081_v7 = vld [vmem:[#allocation2 + $0x698] ss:$20 sps:$4 sm:$0xff]   ;;  %v8086_v8 = vld [vmem:[#allocation2 + $0x6bc] ss:$20 sps:$4 sm:$0xff]  }
 0x131   :  { %2439 = vmatmul.mubr.bf16.gmra.mrb[28].mxu0 %v7987_v9  ;;  %2891 = vmatmul.mubr.bf16.gmra.mrb[28].mxu1 %v7987_v9  ;;  %v8089_v9 = vld [vmem:[#allocation2 + $0x6c4] ss:$20 sps:$4 sm:$0xff]  }
 0x132   :  { %2478 = vmatpush1.bf16.msra.mxu0 %v7988_v10  ;;  %2930 = vmatpush1.bf16.msra.mxu1 %v7991_v11  ;;  %v8090_v10 = vld [vmem:[%s9875_s0 + $0x15c] ss:$28 sps:$4 sm:$0xff]  }
 0x133   :  { %2479 = vmatprep.subr.bf16.mxu0 %v7996_v12  ;;  %2931 = vmatprep.subr.bf16.mxu1 %v7999_v13  ;;  %v8084_v11 = vld [vmem:[#allocation2 + $0x6b8] ss:$20 sps:$4 sm:$0xff]   ;;  %v8087_v12 = vld [vmem:[#allocation2 + $0x6c0] ss:$20 sps:$4 sm:$0xff]  }
 0x134   :  { %2481 = vmatprep.mubr.bf16.mxu0 %v8002_v14  ;;  %2933 = vmatprep.mubr.bf16.mxu1 %v8002_v14  ;;  %v8095_v13 = vld [vmem:[#allocation2 + $0x6e4] ss:$20 sps:$4 sm:$0xff]   ;;  %v8098_v14 = vld [vmem:[#allocation2 + $0x6ec] ss:$20 sps:$4 sm:$0xff]  }
 0x136   :  { %2480 = vmatpush1.bf16.msra.mxu0 %v7994_v15  ;;  %2932 = vmatpush1.bf16.msra.mxu1 %v7997_v16  ;;  %v8092_v15 = vld [vmem:[%s9875_s0 + $0x158] ss:$28 sps:$4 sm:$0xff]  }
 0x137   :  { %2562 = vmatprep.subr.bf16.mxu0 %v8005_v17  ;;  %3014 = vmatprep.subr.bf16.mxu1 %v8008_v18  ;;  %v8093_v16 = vld [vmem:[#allocation2 + $0x6e0] ss:$20 sps:$4 sm:$0xff]   ;;  %v8096_v17 = vld [vmem:[#allocation2 + $0x6e8] ss:$20 sps:$4 sm:$0xff]  }
 0x138   :  { %v8101_v18 = vld [vmem:[#allocation2 + $0x70c] ss:$20 sps:$4 sm:$0xff]  }
 0x139   :  { %2482 = vmatmul.mubr.bf16.vlgmr.msra.gmra.mrb[0].mxu0 %v8000_v19  ;;  %2934 = vmatmul.mubr.bf16.vlgmr.msra.gmra.mrb[0].mxu1 %v8000_v19  ;;  %v8104_v19 = vld [vmem:[#allocation2 + $0x714] ss:$20 sps:$4 sm:$0xff]  }
 0x13a   :  { %2563 = vmatpush1.bf16.msra.mxu0 %v8003_v20  ;;  %3015 = vmatpush1.bf16.msra.mxu1 %v8006_v21  ;;  %v8105_v20 = vld [vmem:[%s9875_s0 + $0x194] ss:$28 sps:$4 sm:$0xff]   ;;  %v8099_v21 = vld [vmem:[#allocation2 + $0x708] ss:$20 sps:$4 sm:$0xff]  }
 0x13b   :  { %2564 = vmatprep.subr.bf16.mxu0 %v8011_v22  ;;  %3016 = vmatprep.subr.bf16.mxu1 %v8014_v23  ;;  %v8102_v22 = vld [vmem:[#allocation2 + $0x710] ss:$20 sps:$4 sm:$0xff]   ;;  %v8110_v23 = vld [vmem:[#allocation2 + $0x734] ss:$20 sps:$4 sm:$0xff]  }
 0x13c   :  { %2491 = vmatprep.mubr.bf16.mxu0 %v8015_v24  ;;  %2943 = vmatprep.mubr.bf16.mxu1 %v8015_v24  ;;  %v8107_v24 = vld [vmem:[%s9875_s0 + $0x190] ss:$28 sps:$4 sm:$0xff]  }
 0x13e   :  { %2565 = vmatpush1.bf16.msra.mxu0 %v8009_v25  ;;  %3017 = vmatpush1.bf16.msra.mxu1 %v8012_v26  ;;  %v8113_v25 = vld [vmem:[#allocation2 + $0x73c] ss:$20 sps:$4 sm:$0xff]  }
 0x13f   :  { %2566 = vmatprep.subr.bf16.mxu0 %v8020_v27  ;;  %3018 = vmatprep.subr.bf16.mxu1 %v8023_v28  ;;  %v8108_v26 = vld [vmem:[#allocation2 + $0x730] ss:$20 sps:$4 sm:$0xff]   ;;  %v8111_v27 = vld [vmem:[#allocation2 + $0x738] ss:$20 sps:$4 sm:$0xff]  }
 0x140   :  { %v8116_v28 = vld [vmem:[#allocation2 + $0x75c] ss:$20 sps:$4 sm:$0xff]  }
 0x141   :  { %2492 = vmatmul.mubr.bf16.gmra.mrb[4].mxu0 %v8017_v29  ;;  %2944 = vmatmul.mubr.bf16.gmra.mrb[4].mxu1 %v8017_v29  ;;  %v8119_v29 = vld [vmem:[#allocation2 + $0x764] ss:$20 sps:$4 sm:$0xff]  }
 0x142   :  { %2567 = vmatpush1.bf16.msra.mxu0 %v8018_v30  ;;  %3019 = vmatpush1.bf16.msra.mxu1 %v8021_v31  ;;  %v8114_v30 = vld [vmem:[#allocation2 + $0x758] ss:$20 sps:$4 sm:$0xff]   ;;  %v8122_v31 = vld [vmem:[%s9875_s0 + $0x14] ss:$28 sps:$4 sm:$0xff]  }
 0x143   :  { %2568 = vmatprep.subr.bf16.mxu0 %v8026_v32  ;;  %3020 = vmatprep.subr.bf16.mxu1 %v8029_v33  ;;  %v8117_v32 = vld [vmem:[#allocation2 + $0x760] ss:$20 sps:$4 sm:$0xff]   ;;  %v8125_v33 = vld [vmem:[#allocation2 + $0x784] ss:$20 sps:$4 sm:$0xff]  }
 0x144   :  { %2501 = vmatprep.mubr.bf16.mxu0 %v8030_v34  ;;  %2953 = vmatprep.mubr.bf16.mxu1 %v8030_v34  ;;  %v8120_v34 = vld [vmem:[%s9875_s0 + $0x10] ss:$28 sps:$4 sm:$0xff]  }
 0x146   :  { %2569 = vmatpush1.bf16.msra.mxu0 %v8024_v35  ;;  %3021 = vmatpush1.bf16.msra.mxu1 %v8027_v36  ;;  %v8128_v35 = vld [vmem:[#allocation2 + $0x78c] ss:$20 sps:$4 sm:$0xff]  }
 0x147   :  { %2570 = vmatprep.subr.bf16.mxu0 %v8035_v37  ;;  %3022 = vmatprep.subr.bf16.mxu1 %v8038_v38  ;;  %v8123_v36 = vld [vmem:[#allocation2 + $0x780] ss:$20 sps:$4 sm:$0xff]   ;;  %v8126_v37 = vld [vmem:[#allocation2 + $0x788] ss:$20 sps:$4 sm:$0xff]  }
 0x148   :  { %v8129_v38 = vld [vmem:[%s9875_s0 + $0x4c] ss:$28 sps:$4 sm:$0xff]  }
 0x149   :  { %2502 = vmatmul.mubr.bf16.gmra.mrb[8].mxu0 %v8032_v39  ;;  %2954 = vmatmul.mubr.bf16.gmra.mrb[8].mxu1 %v8032_v39  ;;  %v8134_v39 = vld [vmem:[#allocation2 + $0x7ac] ss:$20 sps:$4 sm:$0xff]  }
 0x14a   :  { %2571 = vmatpush1.bf16.msra.mxu0 %v8033_v40  ;;  %3023 = vmatpush1.bf16.msra.mxu1 %v8036_v41  ;;  %v8132_v40 = vld [vmem:[#allocation2 + $0x7a8] ss:$20 sps:$4 sm:$0xff]  }
 0x14b   :  { %2572 = vmatprep.subr.bf16.mxu0 %v8041_v42  ;;  %3024 = vmatprep.subr.bf16.mxu1 %v8044_v43  ;;  %v8137_v41 = vld [vmem:[#allocation2 + $0x7b4] ss:$20 sps:$4 sm:$0xff]   ;;  %v8135_v42 = vld [vmem:[#allocation2 + $0x7b0] ss:$20 sps:$4 sm:$0xff]  }
 0x14c   :  { %2511 = vmatprep.mubr.bf16.mxu0 %v8045_v44  ;;  %2963 = vmatprep.mubr.bf16.mxu1 %v8045_v44  ;;  %v8143_v43 = vld [vmem:[#allocation2 + $0x7d4] ss:$20 sps:$4 sm:$0xff]  }
 0x14d   :  { %v8131_v44 = vld [vmem:[%s9875_s0 + $0x48] ss:$28 sps:$4 sm:$0xff]  }
 0x14e   :  { %2573 = vmatpush1.bf16.msra.mxu0 %v8039_v45  ;;  %3025 = vmatpush1.bf16.msra.mxu1 %v8042_v46  ;;  %v8146_v45 = vld [vmem:[#allocation2 + $0x7dc] ss:$20 sps:$4 sm:$0xff]   ;;  %v8138_v46 = vld [vmem:[%s9875_s0 + $0x84] ss:$28 sps:$4 sm:$0xff]  }
 0x14f   :  { %2574 = vmatprep.subr.bf16.mxu0 %v8050_v47  ;;  %3026 = vmatprep.subr.bf16.mxu1 %v8053_v48  ;;  %v8141_v47 = vld [vmem:[#allocation2 + $0x7d0] ss:$20 sps:$4 sm:$0xff]   ;;  %v8144_v48 = vld [vmem:[#allocation2 + $0x7d8] ss:$20 sps:$4 sm:$0xff]  }
 0x151   :  { %2512 = vmatmul.mubr.bf16.gmra.mrb[12].mxu0 %v8047_v49  ;;  %2964 = vmatmul.mubr.bf16.gmra.mrb[12].mxu1 %v8047_v49  ;;  %v8152_v49 = vld [vmem:[#allocation2 + $0x7fc] ss:$20 sps:$4 sm:$0xff]  }
 0x152   :  { %2575 = vmatpush1.bf16.msra.mxu0 %v8048_v50  ;;  %3027 = vmatpush1.bf16.msra.mxu1 %v8051_v51  ;;  %v8155_v50 = vld [vmem:[#allocation2 + $0x804] ss:$20 sps:$4 sm:$0xff]  }
 0x153   :  { %2576 = vmatprep.subr.bf16.mxu0 %v8056_v52  ;;  %3028 = vmatprep.subr.bf16.mxu1 %v8059_v53  ;;  %v8150_v51 = vld [vmem:[#allocation2 + $0x7f8] ss:$20 sps:$4 sm:$0xff]   ;;  %v8153_v52 = vld [vmem:[#allocation2 + $0x800] ss:$20 sps:$4 sm:$0xff]  }
 0x154   :  { %2521 = vmatprep.mubr.bf16.mxu0 %v8060_v54  ;;  %2973 = vmatprep.mubr.bf16.mxu1 %v8060_v54  ;;  %v8140_v53 = vld [vmem:[%s9875_s0 + $0x80] ss:$28 sps:$4 sm:$0xff]   ;;  %v8161_v54 = vld [vmem:[#allocation2 + $0x824] ss:$20 sps:$4 sm:$0xff]  }
 0x156   :  { %2577 = vmatpush1.bf16.msra.mxu0 %v8054_v55  ;;  %3029 = vmatpush1.bf16.msra.mxu1 %v8057_v56  ;;  %v8147_v55 = vld [vmem:[%s9875_s0 + $0xbc] ss:$28 sps:$4 sm:$0xff]   ;;  %v8164_v56 = vld [vmem:[#allocation2 + $0x82c] ss:$20 sps:$4 sm:$0xff]  }
 0x157   :  { %2578 = vmatprep.subr.bf16.mxu0 %v8065_v57  ;;  %3030 = vmatprep.subr.bf16.mxu1 %v8068_v58  ;;  %v8159_v57 = vld [vmem:[#allocation2 + $0x820] ss:$20 sps:$4 sm:$0xff]   ;;  %v8162_v58 = vld [vmem:[#allocation2 + $0x828] ss:$20 sps:$4 sm:$0xff]  }
 0x159   :  { %2522 = vmatmul.mubr.bf16.gmra.mrb[16].mxu0 %v8062_v59  ;;  %2974 = vmatmul.mubr.bf16.gmra.mrb[16].mxu1 %v8062_v59  ;;  %v8170_v59 = vld [vmem:[#allocation2 + $0x84c] ss:$20 sps:$4 sm:$0xff]  }
 0x15a   :  { %2579 = vmatpush1.bf16.msra.mxu0 %v8063_v60  ;;  %3031 = vmatpush1.bf16.msra.mxu1 %v8066_v61  ;;  %v8173_v60 = vld [vmem:[#allocation2 + $0x854] ss:$20 sps:$4 sm:$0xff]  }
 0x15b   :  { %2580 = vmatprep.subr.bf16.mxu0 %v8071_v62  ;;  %3032 = vmatprep.subr.bf16.mxu1 %v8074_v63  ;;  %v8168_v61 = vld [vmem:[#allocation2 + $0x848] ss:$20 sps:$4 sm:$0xff]   ;;  %v8171_v62 = vld [vmem:[#allocation2 + $0x850] ss:$20 sps:$4 sm:$0xff]   ;;  %v8149_v63 = vld [vmem:[%s9875_s0 + $0xb8] ss:$28 sps:$4 sm:$0xff]  }
 0x15c   :  { %2531 = vmatprep.mubr.bf16.mxu0 %v8075_v0  ;;  %2983 = vmatprep.mubr.bf16.mxu1 %v8075_v0  ;;  %v8179_v0 = vld [vmem:[#allocation2 + $0x874] ss:$20 sps:$4 sm:$0xff]  }
 0x15e   :  { %2581 = vmatpush1.bf16.msra.mxu0 %v8069_v1  ;;  %3033 = vmatpush1.bf16.msra.mxu1 %v8072_v2  ;;  %v8156_v1 = vld [vmem:[%s9875_s0 + $0xf4] ss:$28 sps:$4 sm:$0xff]  }
 0x15f   :  { %2582 = vmatprep.subr.bf16.mxu0 %v8080_v3  ;;  %3034 = vmatprep.subr.bf16.mxu1 %v8083_v4  ;;  %v8182_v2 = vld [vmem:[#allocation2 + $0x87c] ss:$20 sps:$4 sm:$0xff]   ;;  %v8180_v4 = vld [vmem:[#allocation2 + $0x878] ss:$20 sps:$4 sm:$0xff]  }
 0x160   :  { %v8177_v3 = vld [vmem:[#allocation2 + $0x870] ss:$20 sps:$4 sm:$0xff]  }
 0x161   :  { %2532 = vmatmul.mubr.bf16.gmra.mrb[20].mxu0 %v8077_v5  ;;  %2984 = vmatmul.mubr.bf16.gmra.mrb[20].mxu1 %v8077_v5  ;;  %v8188_v5 = vld [vmem:[#allocation2 + $0x89c] ss:$20 sps:$4 sm:$0xff]  }
 0x162   :  { %2583 = vmatpush1.bf16.msra.mxu0 %v8078_v6  ;;  %3035 = vmatpush1.bf16.msra.mxu1 %v8081_v7  ;;  %v8191_v6 = vld [vmem:[#allocation2 + $0x8a4] ss:$20 sps:$4 sm:$0xff]  }
 0x163   :  { %2584 = vmatprep.subr.bf16.mxu0 %v8086_v8  ;;  %3036 = vmatprep.subr.bf16.mxu1 %v8089_v9  ;;  %v8186_v7 = vld [vmem:[#allocation2 + $0x898] ss:$20 sps:$4 sm:$0xff]   ;;  %v8189_v8 = vld [vmem:[#allocation2 + $0x8a0] ss:$20 sps:$4 sm:$0xff]   ;;  %v8193_v9 = vld [vmem:[#allocation2 + $0x150] ss:$20 sps:$4 sm:$0xff]  }
 0x164   :  { %2541 = vmatprep.mubr.bf16.mxu0 %v8090_v10  ;;  %2993 = vmatprep.mubr.bf16.mxu1 %v8090_v10  ;;  %v8195_v10 = vld [vmem:[#allocation2 + $0x3d0] ss:$20 sps:$4 sm:$0xff]  }
 0x166   :  { %2585 = vmatpush1.bf16.msra.mxu0 %v8084_v11  ;;  %3037 = vmatpush1.bf16.msra.mxu1 %v8087_v12  ;;  %v8158_v11 = vld [vmem:[%s9875_s0 + $0xf0] ss:$28 sps:$4 sm:$0xff]  }
 0x167   :  { %2586 = vmatprep.subr.bf16.mxu0 %v8095_v13  ;;  %3038 = vmatprep.subr.bf16.mxu1 %v8098_v14  ;;  %v8165_v12 = vld [vmem:[%s9875_s0 + $0x12c] ss:$28 sps:$4 sm:$0xff]   ;;  %v8174_v14 = vld [vmem:[%s9875_s0 + $0x164] ss:$28 sps:$4 sm:$0xff]  }
 0x168   :  { %v8167_v13 = vld [vmem:[%s9875_s0 + $0x128] ss:$28 sps:$4 sm:$0xff]  }
 0x169   :  { %2542 = vmatmul.mubr.bf16.gmra.mrb[24].mxu0 %v8092_v15  ;;  %2994 = vmatmul.mubr.bf16.gmra.mrb[24].mxu1 %v8092_v15  ;;  %v8176_v15 = vld [vmem:[%s9875_s0 + $0x160] ss:$28 sps:$4 sm:$0xff]  }
 0x16a   :  { %2587 = vmatpush1.bf16.msra.mxu0 %v8093_v16  ;;  %3039 = vmatpush1.bf16.msra.mxu1 %v8096_v17  ;;  %v8183_v16 = vld [vmem:[%s9875_s0 + $0x19c] ss:$28 sps:$4 sm:$0xff]  }
 0x16b   :  { %2588 = vmatprep.subr.bf16.mxu0 %v8101_v18  ;;  %3040 = vmatprep.subr.bf16.mxu1 %v8104_v19  ;;  %v8185_v17 = vld [vmem:[%s9875_s0 + $0x198] ss:$28 sps:$4 sm:$0xff]   ;;  %v8810_v18 = vmov 0  }
 0x16c   :  { %2551 = vmatprep.mubr.bf16.mxu0 %v8105_v20  ;;  %3003 = vmatprep.mubr.bf16.mxu1 %v8105_v20  ;;  %v9140_v19 = vld [vmem:[%s9875_s0 + $0x18] ss:$28 sps:$4 sm:$0xff]   ;;  %v8194_v20 = vld [vmem:[#allocation2 + $0x10] ss:$20 sps:$4 sm:$0xff]  }
 0x16e   :  { %2589 = vmatpush1.bf16.msra.mxu0 %v8099_v21  ;;  %3041 = vmatpush1.bf16.msra.mxu1 %v8102_v22  ;;  %v8196_v21 = vld [vmem:[#allocation2 + $0x290] ss:$20 sps:$4 sm:$0xff]   ;;  %v8198_v22 = vld [vmem:[#allocation2 + $0x178] ss:$20 sps:$4 sm:$0xff]  }
 0x16f   :  { %2590 = vmatprep.subr.bf16.mxu0 %v8110_v23  ;;  %3042 = vmatprep.subr.bf16.mxu1 %v8113_v25  ;;  %v8200_v23 = vld [vmem:[#allocation2 + $0x3f8] ss:$20 sps:$4 sm:$0xff]  }
 0x170   :  { %v8201_v25 = vld [vmem:[#allocation2 + $0x2b8] ss:$20 sps:$4 sm:$0xff]  }
 0x171   :  { %2552 = vmatmul.mubr.bf16.gmra.mrb[28].mxu0 %v8107_v24  ;;  %3004 = vmatmul.mubr.bf16.gmra.mrb[28].mxu1 %v8107_v24  ;;  %v8199_v24 = vld [vmem:[#allocation2 + $0x38] ss:$20 sps:$4 sm:$0xff]  }
 0x172   :  { %2591 = vmatpush1.bf16.msra.mxu0 %v8108_v26  ;;  %3043 = vmatpush1.bf16.msra.mxu1 %v8111_v27  ;;  %v8203_v26 = vld [vmem:[#allocation2 + $0x1a0] ss:$20 sps:$4 sm:$0xff]  }
 0x173   :  { %2592 = vmatprep.subr.bf16.mxu0 %v8116_v28  ;;  %3044 = vmatprep.subr.bf16.mxu1 %v8119_v29  ;;  %v8205_v27 = vld [vmem:[#allocation2 + $0x420] ss:$20 sps:$4 sm:$0xff]   ;;  %v9149_v28 = vld [vmem:[%s9875_s0 + $0x50] ss:$28 sps:$4 sm:$0xff]  }
 0x174   :  { %2594 = vmatprep.mubr.bf16.mxu0 %v8122_v31  ;;  %3046 = vmatprep.mubr.bf16.mxu1 %v8122_v31  ;;  %v8204_v29 = vld [vmem:[#allocation2 + $0x60] ss:$20 sps:$4 sm:$0xff]   ;;  %v8208_v31 = vld [vmem:[#allocation2 + $0x1c8] ss:$20 sps:$4 sm:$0xff]  }
 0x176   :  { %2593 = vmatpush1.bf16.msra.mxu0 %v8114_v30  ;;  %3045 = vmatpush1.bf16.msra.mxu1 %v8117_v32  ;;  %v8206_v30 = vld [vmem:[#allocation2 + $0x2e0] ss:$20 sps:$4 sm:$0xff]   ;;  %v8210_v32 = vld [vmem:[#allocation2 + $0x448] ss:$20 sps:$4 sm:$0xff]  }
 0x177   :  { %2675 = vmatprep.subr.bf16.mxu0 %v8125_v33  ;;  %3127 = vmatprep.subr.bf16.mxu1 %v8128_v35  ;;  %v8209_v33 = vld [vmem:[#allocation2 + $0x88] ss:$20 sps:$4 sm:$0xff]   ;;  %v8213_v35 = vld [vmem:[#allocation2 + $0x1f0] ss:$20 sps:$4 sm:$0xff]  }
 0x179   :  { %2595 = vmatmul.mubr.bf16.vlgmr.msra.gmra.mrb[0].mxu0 %v8120_v34  ;;  %3047 = vmatmul.mubr.bf16.vlgmr.msra.gmra.mrb[0].mxu1 %v8120_v34  ;;  %v8211_v34 = vld [vmem:[#allocation2 + $0x308] ss:$20 sps:$4 sm:$0xff]  }
 0x17a   :  { %2676 = vmatpush1.bf16.msra.mxu0 %v8123_v36  ;;  %3128 = vmatpush1.bf16.msra.mxu1 %v8126_v37  ;;  %v8215_v36 = vld [vmem:[#allocation2 + $0x470] ss:$20 sps:$4 sm:$0xff]  }
 0x17b   :  { %2604 = vmatprep.mubr.bf16.mxu0 %v8129_v38  ;;  %3056 = vmatprep.mubr.bf16.mxu1 %v8129_v38  ;;  %v9158_v37 = vld [vmem:[%s9875_s0 + $0x88] ss:$28 sps:$4 sm:$0xff]  }
 0x17c   :  { %2677 = vmatprep.subr.bf16.mxu0 %v8134_v39  ;;  %3129 = vmatprep.subr.bf16.mxu1 %v8137_v41  ;;  %v8214_v38 = vld [vmem:[#allocation2 + $0xb0] ss:$20 sps:$4 sm:$0xff]   ;;  %v8220_v41 = vld [vmem:[#allocation2 + $0x498] ss:$20 sps:$4 sm:$0xff]  }
 0x17d   :  { %v8216_v39 = vld [vmem:[#allocation2 + $0x330] ss:$20 sps:$4 sm:$0xff]  }
 0x17e   :  { %2678 = vmatpush1.bf16.msra.mxu0 %v8132_v40  ;;  %3130 = vmatpush1.bf16.msra.mxu1 %v8135_v42  ;;  %v8218_v40 = vld [vmem:[#allocation2 + $0x218] ss:$20 sps:$4 sm:$0xff]  }
 0x17f   :  { %2679 = vmatprep.subr.bf16.mxu0 %v8143_v43  ;;  %3131 = vmatprep.subr.bf16.mxu1 %v8146_v45  ;;  %v8219_v42 = vld [vmem:[#allocation2 + $0xd8] ss:$20 sps:$4 sm:$0xff]   ;;  %v8225_v45 = vld [vmem:[#allocation2 + $0x4c0] ss:$20 sps:$4 sm:$0xff]  }
 0x180   :  { %v8221_v43 = vld [vmem:[#allocation2 + $0x358] ss:$20 sps:$4 sm:$0xff]  }
 0x181   :  { %2605 = vmatmul.mubr.bf16.gmra.mrb[4].mxu0 %v8131_v44  ;;  %3057 = vmatmul.mubr.bf16.gmra.mrb[4].mxu1 %v8131_v44  ;;  %v8223_v44 = vld [vmem:[#allocation2 + $0x240] ss:$20 sps:$4 sm:$0xff]  }
 0x182   :  { %2614 = vmatprep.mubr.bf16.mxu0 %v8138_v46  ;;  %3066 = vmatprep.mubr.bf16.mxu1 %v8138_v46  ;;  %v9167_v46 = vld [vmem:[%s9875_s0 + $0xc0] ss:$28 sps:$4 sm:$0xff]  }
 0x183   :  { %2680 = vmatpush1.bf16.msra.mxu0 %v8141_v47  ;;  %3132 = vmatpush1.bf16.msra.mxu1 %v8144_v48  ;;  %v8224_v47 = vld [vmem:[#allocation2 + $0x100] ss:$20 sps:$4 sm:$0xff]  }
 0x184   :  { %2681 = vmatprep.subr.bf16.mxu0 %v8152_v49  ;;  %3133 = vmatprep.subr.bf16.mxu1 %v8155_v50  ;;  %v8226_v48 = vld [vmem:[#allocation2 + $0x380] ss:$20 sps:$4 sm:$0xff]   ;;  %v8228_v49 = vld [vmem:[#allocation2 + $0x268] ss:$20 sps:$4 sm:$0xff]  }
 0x185   :  { %v8230_v50 = vld [vmem:[#allocation2 + $0x4e8] ss:$20 sps:$4 sm:$0xff]  }
 0x187   :  { %2682 = vmatpush1.bf16.msra.mxu0 %v8150_v51  ;;  %3134 = vmatpush1.bf16.msra.mxu1 %v8153_v52  ;;  %v8229_v51 = vld [vmem:[#allocation2 + $0x128] ss:$20 sps:$4 sm:$0xff]  }
 0x188   :  { %2683 = vmatprep.subr.bf16.mxu0 %v8161_v54  ;;  %3135 = vmatprep.subr.bf16.mxu1 %v8164_v56  ;;  %v8231_v52 = vld [vmem:[#allocation2 + $0x3a8] ss:$20 sps:$4 sm:$0xff]   ;;  %v8234_v54 = vld [vmem:[#allocation2 + $0x790] ss:$20 sps:$4 sm:$0xff]  }
 0x189   :  { %2615 = vmatmul.mubr.bf16.gmra.mrb[8].mxu0 %v8140_v53  ;;  %3067 = vmatmul.mubr.bf16.gmra.mrb[8].mxu1 %v8140_v53  ;;  %v8232_v53 = vld [vmem:[#allocation2 + $0x650] ss:$20 sps:$4 sm:$0xff]  }
 0x18a   :  { %2624 = vmatprep.mubr.bf16.mxu0 %v8147_v55  ;;  %3076 = vmatprep.mubr.bf16.mxu1 %v8147_v55  ;;  %v9176_v55 = vld [vmem:[%s9875_s0 + $0xf8] ss:$28 sps:$4 sm:$0xff]   ;;  %v9185_v56 = vld [vmem:[%s9875_s0 + $0x130] ss:$28 sps:$4 sm:$0xff]  }
 0x18b   :  { %2684 = vmatpush1.bf16.msra.mxu0 %v8159_v57  ;;  %3136 = vmatpush1.bf16.msra.mxu1 %v8162_v58  ;;  %v9194_v57 = vld [vmem:[%s9875_s0 + $0x168] ss:$28 sps:$4 sm:$0xff]   ;;  %v9203_v58 = vld [vmem:[%s9875_s0 + $0x1a0] ss:$28 sps:$4 sm:$0xff]  }
 0x18c   :  { %2685 = vmatprep.subr.bf16.mxu0 %v8170_v59  ;;  %3137 = vmatprep.subr.bf16.mxu1 %v8173_v60  ;;  %v8512_v59 = vld [vmem:[%s9875_s0 + $0x4] ss:$28 sps:$4 sm:$0xff]   ;;  %v8513_v60 = vld [vmem:[%s9875_s0 + $0xc] ss:$28 sps:$4 sm:$0xff]  }
 0x18f   :  { %2686 = vmatpush1.bf16.msra.mxu0 %v8168_v61  ;;  %3138 = vmatpush1.bf16.msra.mxu1 %v8171_v62  ;;  %v8233_v61 = vld [vmem:[#allocation2 + $0x510] ss:$20 sps:$4 sm:$0xff]   ;;  %v8235_v62 = vld [vmem:[#allocation2 + $0x678] ss:$20 sps:$4 sm:$0xff]  }
 0x190   :  { %2687 = vmatprep.subr.bf16.mxu0 %v8179_v0  ;;  %3139 = vmatprep.subr.bf16.mxu1 %v8182_v2  ;;  %v8237_v0 = vld [vmem:[#allocation2 + $0x7b8] ss:$20 sps:$4 sm:$0xff]   ;;  %v8515_v2 = vld [vmem:[%s9875_s0 + $0x8] ss:$28 sps:$4 sm:$0xff]  }
 0x191   :  { %2625 = vmatmul.mubr.bf16.gmra.mrb[12].mxu0 %v8149_v63  ;;  %3077 = vmatmul.mubr.bf16.gmra.mrb[12].mxu1 %v8149_v63  ;;  %v8236_v63 = vld [vmem:[#allocation2 + $0x538] ss:$20 sps:$4 sm:$0xff]  }
 0x192   :  { %2634 = vmatprep.mubr.bf16.mxu0 %v8156_v1  ;;  %3086 = vmatprep.mubr.bf16.mxu1 %v8156_v1  ;;  %v8514_v1 = vld [vmem:[%s9875_s0] ss:$28 sps:$4 sm:$0xff]  }
 0x193   :  { %2688 = vmatpush1.bf16.msra.mxu0 %v8177_v3  ;;  %3140 = vmatpush1.bf16.msra.mxu1 %v8180_v4  ;;  %v8238_v3 = vld [vmem:[#allocation2 + $0x6a0] ss:$20 sps:$4 sm:$0xff]  }
 0x194   :  { %2689 = vmatprep.subr.bf16.mxu0 %v8188_v5  ;;  %3141 = vmatprep.subr.bf16.mxu1 %v8191_v6  ;;  %v8240_v4 = vld [vmem:[#allocation2 + $0x7e0] ss:$20 sps:$4 sm:$0xff]   ;;  %v8516_v5 = vld [vmem:[%s9875_s0 + $0x3c] ss:$28 sps:$4 sm:$0xff]  }
 0x195   :  { %v8517_v6 = vld [vmem:[%s9875_s0 + $0x44] ss:$28 sps:$4 sm:$0xff]  }
 0x197   :  { %2690 = vmatpush1.bf16.msra.mxu0 %v8186_v7  ;;  %3142 = vmatpush1.bf16.msra.mxu1 %v8189_v8  ;;  %v8239_v7 = vld [vmem:[#allocation2 + $0x560] ss:$20 sps:$4 sm:$0xff]   ;;  %v8241_v8 = vld [vmem:[#allocation2 + $0x6c8] ss:$20 sps:$4 sm:$0xff]  }
 0x198   :  { %6821 = vmatprep.subr.bf16.mxu0 %v8193_v9  ;;  %6885 = vmatprep.subr.bf16.mxu1 %v8195_v10  ;;  %v8243_v9 = vld [vmem:[#allocation2 + $0x808] ss:$20 sps:$4 sm:$0xff]   ;;  %v8518_v10 = vld [vmem:[%s9875_s0 + $0x38] ss:$28 sps:$4 sm:$0xff]  }
 0x199   :  { %2635 = vmatmul.mubr.bf16.gmra.mrb[16].mxu0 %v8158_v11  ;;  %3087 = vmatmul.mubr.bf16.gmra.mrb[16].mxu1 %v8158_v11  ;;  %v8519_v11 = vld [vmem:[%s9875_s0 + $0x40] ss:$28 sps:$4 sm:$0xff]  }
 0x19a   :  { %2644 = vmatprep.mubr.bf16.mxu0 %v8165_v12  ;;  %3096 = vmatprep.mubr.bf16.mxu1 %v8165_v12  ;;  %v8242_v12 = vld [vmem:[#allocation2 + $0x588] ss:$20 sps:$4 sm:$0xff]  }
 0x1a1   :  { %2645 = vmatmul.mubr.bf16.gmra.mrb[20].mxu0 %v8167_v13  ;;  %3097 = vmatmul.mubr.bf16.gmra.mrb[20].mxu1 %v8167_v13  ;;  %v8520_v13 = vld [vmem:[%s9875_s0 + $0x74] ss:$28 sps:$4 sm:$0xff]  }
 0x1a2   :  { %2654 = vmatprep.mubr.bf16.mxu0 %v8174_v14  ;;  %3106 = vmatprep.mubr.bf16.mxu1 %v8174_v14  ;;  %v8521_v14 = vld [vmem:[%s9875_s0 + $0x7c] ss:$28 sps:$4 sm:$0xff]  }
 0x1a9   :  { %2655 = vmatmul.mubr.bf16.gmra.mrb[24].mxu0 %v8176_v15  ;;  %3107 = vmatmul.mubr.bf16.gmra.mrb[24].mxu1 %v8176_v15  ;;  %v8244_v15 = vld [vmem:[#allocation2 + $0x6f0] ss:$20 sps:$4 sm:$0xff]  }
 0x1aa   :  { %2664 = vmatprep.mubr.bf16.mxu0 %v8183_v16  ;;  %3116 = vmatprep.mubr.bf16.mxu1 %v8183_v16  ;;  %v8246_v16 = vld [vmem:[#allocation2 + $0x830] ss:$20 sps:$4 sm:$0xff]  }
 0x1b1   :  { %2665 = vmatmul.mubr.bf16.gmra.mrb[28].mxu0 %v8185_v17  ;;  %3117 = vmatmul.mubr.bf16.gmra.mrb[28].mxu1 %v8185_v17  ;;  %v8245_v17 = vld [vmem:[#allocation2 + $0x5b0] ss:$20 sps:$4 sm:$0xff]  }
 0x1b2   :  { %2707 = vmatprep.mubr.bf16.mxu0 %v8810_v18  ;;  %3159 = vmatprep.mubr.bf16.mxu1 %v8810_v18 }
 0x1b9   :  { %2708 = vmatmul.mubr.bf16.vlgmr.msra.gmra.mrb[0].mxu0 %v9140_v19  ;;  %3160 = vmatmul.mubr.bf16.vlgmr.msra.gmra.mrb[0].mxu1 %v9140_v19 }
 0x1ba   :  { %6822 = vmatpush3.bf16.msra.mxu0 %v8194_v20  ;;  %6886 = vmatpush3.bf16.msra.mxu1 %v8196_v21  ;;  %v8247_v20 = vld [vmem:[#allocation2 + $0x718] ss:$20 sps:$4 sm:$0xff]  }
 0x1bb   :  { %2717 = vmatprep.mubr.bf16.mxu0 %v8810_v18  ;;  %3169 = vmatprep.mubr.bf16.mxu1 %v8810_v18  ;;  %v8249_v21 = vld [vmem:[#allocation2 + $0x858] ss:$20 sps:$4 sm:$0xff]  }
 0x1bc   :  { %6823 = vmatprep.subr.bf16.mxu0 %v8198_v22  ;;  %6887 = vmatprep.subr.bf16.mxu1 %v8200_v23  ;;  %v8522_v22 = vld [vmem:[%s9875_s0 + $0x70] ss:$28 sps:$4 sm:$0xff]   ;;  %v8523_v23 = vld [vmem:[%s9875_s0 + $0x78] ss:$28 sps:$4 sm:$0xff]  }
 0x1be   :  { %6824 = vmatpush3.bf16.msra.mxu0 %v8199_v24  ;;  %6888 = vmatpush3.bf16.msra.mxu1 %v8201_v25  ;;  %v8248_v24 = vld [vmem:[#allocation2 + $0x5d8] ss:$20 sps:$4 sm:$0xff]  }
 0x1bf   :  { %6825 = vmatprep.subr.bf16.mxu0 %v8203_v26  ;;  %6889 = vmatprep.subr.bf16.mxu1 %v8205_v27  ;;  %v8524_v25 = vld [vmem:[%s9875_s0 + $0xac] ss:$28 sps:$4 sm:$0xff]   ;;  %v8525_v26 = vld [vmem:[%s9875_s0 + $0xb4] ss:$28 sps:$4 sm:$0xff]  }
 0x1c0   :  { %v8250_v27 = vld [vmem:[#allocation2 + $0x740] ss:$20 sps:$4 sm:$0xff]  }
 0x1c1   :  { %2718 = vmatmul.mubr.bf16.gmra.mrb[4].mxu0 %v9149_v28  ;;  %3170 = vmatmul.mubr.bf16.gmra.mrb[4].mxu1 %v9149_v28 }
 0x1c2   :  { %2727 = vmatprep.mubr.bf16.mxu0 %v8810_v18  ;;  %3179 = vmatprep.mubr.bf16.mxu1 %v8810_v18 }
 0x1c3   :  { %6826 = vmatpush3.bf16.msra.mxu0 %v8204_v29  ;;  %6890 = vmatpush3.bf16.msra.mxu1 %v8206_v30  ;;  %v8252_v29 = vld [vmem:[#allocation2 + $0x880] ss:$20 sps:$4 sm:$0xff]  }
 0x1c4   :  { %6827 = vmatprep.subr.bf16.mxu0 %v8208_v31  ;;  %6891 = vmatprep.subr.bf16.mxu1 %v8210_v32  ;;  %v8251_v30 = vld [vmem:[#allocation2 + $0x600] ss:$20 sps:$4 sm:$0xff]   ;;  %v8253_v31 = vld [vmem:[#allocation2 + $0x768] ss:$20 sps:$4 sm:$0xff]  }
 0x1c5   :  { %v8255_v32 = vld [vmem:[#allocation2 + $0x8a8] ss:$20 sps:$4 sm:$0xff]  }
 0x1c7   :  { %6828 = vmatpush3.bf16.msra.mxu0 %v8209_v33  ;;  %6892 = vmatpush3.bf16.msra.mxu1 %v8211_v34  ;;  %v8526_v33 = vld [vmem:[%s9875_s0 + $0xa8] ss:$28 sps:$4 sm:$0xff]   ;;  %v8527_v34 = vld [vmem:[%s9875_s0 + $0xb0] ss:$28 sps:$4 sm:$0xff]  }
 0x1c8   :  { %6829 = vmatprep.subr.bf16.mxu0 %v8213_v35  ;;  %6893 = vmatprep.subr.bf16.mxu1 %v8215_v36  ;;  %v8528_v35 = vld [vmem:[%s9875_s0 + $0xe4] ss:$28 sps:$4 sm:$0xff]   ;;  %v8529_v36 = vld [vmem:[%s9875_s0 + $0xec] ss:$28 sps:$4 sm:$0xff]  }
 0x1c9   :  { %2728 = vmatmul.mubr.bf16.gmra.mrb[8].mxu0 %v9158_v37  ;;  %3180 = vmatmul.mubr.bf16.gmra.mrb[8].mxu1 %v9158_v37 }
 0x1ca   :  { %2737 = vmatprep.mubr.bf16.mxu0 %v8810_v18  ;;  %3189 = vmatprep.mubr.bf16.mxu1 %v8810_v18 }
 0x1cb   :  { %6830 = vmatpush3.bf16.msra.mxu0 %v8214_v38  ;;  %6894 = vmatpush3.bf16.msra.mxu1 %v8216_v39  ;;  %v8254_v38 = vld [vmem:[#allocation2 + $0x628] ss:$20 sps:$4 sm:$0xff]  }
 0x1cc   :  { %6831 = vmatprep.subr.bf16.mxu0 %v8218_v40  ;;  %6895 = vmatprep.subr.bf16.mxu1 %v8220_v41  ;;  %v8258_v39 = vld [vmem:[#allocation6 + $0x4] ss:$12 sps:$4 sm:$0xff]   ;;  %v8283_v40 = vld [vmem:[#allocation6 + $0xc8] ss:$12 sps:$4 sm:$0xff]  }
 0x1cd   :  { %v8530_v41 = vld [vmem:[%s9875_s0 + $0xe0] ss:$28 sps:$4 sm:$0xff]  }
 0x1cf   :  { %6832 = vmatpush3.bf16.msra.mxu0 %v8219_v42  ;;  %6896 = vmatpush3.bf16.msra.mxu1 %v8221_v43  ;;  %v8531_v42 = vld [vmem:[%s9875_s0 + $0xe8] ss:$28 sps:$4 sm:$0xff]   ;;  %v8532_v43 = vld [vmem:[%s9875_s0 + $0x11c] ss:$28 sps:$4 sm:$0xff]  }
 0x1d0   :  { %6833 = vmatprep.subr.bf16.mxu0 %v8223_v44  ;;  %6897 = vmatprep.subr.bf16.mxu1 %v8225_v45  ;;  %v8533_v44 = vld [vmem:[%s9875_s0 + $0x124] ss:$28 sps:$4 sm:$0xff]   ;;  %v8534_v45 = vld [vmem:[%s9875_s0 + $0x118] ss:$28 sps:$4 sm:$0xff]  }
 0x1d1   :  { %2738 = vmatmul.mubr.bf16.gmra.mrb[12].mxu0 %v9167_v46  ;;  %3190 = vmatmul.mubr.bf16.gmra.mrb[12].mxu1 %v9167_v46 }
 0x1d2   :  { %2747 = vmatprep.mubr.bf16.mxu0 %v8810_v18  ;;  %3199 = vmatprep.mubr.bf16.mxu1 %v8810_v18 }
 0x1d3   :  { %6834 = vmatpush3.bf16.msra.mxu0 %v8224_v47  ;;  %6898 = vmatpush3.bf16.msra.mxu1 %v8226_v48  ;;  %v8535_v47 = vld [vmem:[%s9875_s0 + $0x120] ss:$28 sps:$4 sm:$0xff]   ;;  %v8536_v48 = vld [vmem:[%s9875_s0 + $0x154] ss:$28 sps:$4 sm:$0xff]  }
 0x1d4   :  { %6835 = vmatprep.subr.bf16.mxu0 %v8228_v49  ;;  %6899 = vmatprep.subr.bf16.mxu1 %v8230_v50  ;;  %v8537_v49 = vld [vmem:[%s9875_s0 + $0x15c] ss:$28 sps:$4 sm:$0xff]   ;;  %v8538_v50 = vld [vmem:[%s9875_s0 + $0x150] ss:$28 sps:$4 sm:$0xff]  }
 0x1d7   :  { %6836 = vmatpush3.bf16.msra.mxu0 %v8229_v51  ;;  %6900 = vmatpush3.bf16.msra.mxu1 %v8231_v52  ;;  %v8539_v51 = vld [vmem:[%s9875_s0 + $0x158] ss:$28 sps:$4 sm:$0xff]   ;;  %v8540_v52 = vld [vmem:[%s9875_s0 + $0x18c] ss:$28 sps:$4 sm:$0xff]  }
 0x1d8   :  { %6949 = vmatprep.subr.bf16.mxu0 %v8232_v53  ;;  %7253 = vmatprep.subr.bf16.mxu1 %v8234_v54  ;;  %v8541_v53 = vld [vmem:[%s9875_s0 + $0x194] ss:$28 sps:$4 sm:$0xff]  }
 0x1d9   :  { %2748 = vmatmul.mubr.bf16.gmra.mrb[16].mxu0 %v9176_v55  ;;  %3200 = vmatmul.mubr.bf16.gmra.mrb[16].mxu1 %v9176_v55 }
 0x1da   :  { %2757 = vmatprep.mubr.bf16.mxu0 %v8810_v18  ;;  %3209 = vmatprep.mubr.bf16.mxu1 %v8810_v18 }
 0x1e1   :  { %2758 = vmatmul.mubr.bf16.gmra.mrb[20].mxu0 %v9185_v56  ;;  %3210 = vmatmul.mubr.bf16.gmra.mrb[20].mxu1 %v9185_v56 }
 0x1e2   :  { %2767 = vmatprep.mubr.bf16.mxu0 %v8810_v18  ;;  %3219 = vmatprep.mubr.bf16.mxu1 %v8810_v18 }
 0x1e9   :  { %2768 = vmatmul.mubr.bf16.gmra.mrb[24].mxu0 %v9194_v57  ;;  %3220 = vmatmul.mubr.bf16.gmra.mrb[24].mxu1 %v9194_v57 }
 0x1ea   :  { %2777 = vmatprep.mubr.bf16.mxu0 %v8810_v18  ;;  %3229 = vmatprep.mubr.bf16.mxu1 %v8810_v18 }
 0x1f1   :  { %2778 = vmatmul.mubr.bf16.gmra.mrb[28].mxu0 %v9203_v58  ;;  %3230 = vmatmul.mubr.bf16.gmra.mrb[28].mxu1 %v9203_v58 }
 0x1f2   :  { %3272 = vmatprep.mubr.bf16.mxu0 %v8512_v59  ;;  %3369 = vmatprep.mubr.bf16.mxu1 %v8513_v60  ;;  %v8543_v59 = vld [vmem:[%s9875_s0 + $0x190] ss:$28 sps:$4 sm:$0xff]  }
 0x1f3   :  { %v8544_v60 = vld [vmem:[%s9875_s0 + $0x14] ss:$28 sps:$4 sm:$0xff]  }
 0x1f9   :  { %3273 = vmatmul.mubr.bf16.vlgmr.msra.gmra.mrb[32].mxu0 %v8514_v1  ;;  %3370 = vmatmul.mubr.bf16.vlgmr.msra.gmra.mrb[32].mxu1 %v8515_v2  ;;  %v8545_v1 = vld [vmem:[%s9875_s0 + $0x10] ss:$28 sps:$4 sm:$0xff]  }
 0x1fa   :  { %6950 = vmatpush3.bf16.msra.mxu0 %v8233_v61  ;;  %7254 = vmatpush3.bf16.msra.mxu1 %v8234_v54  ;;  %v8542_v54 = vld [vmem:[%s9875_s0 + $0x188] ss:$28 sps:$4 sm:$0xff]  }
 0x1fb   :  { %3280 = vmatprep.mubr.bf16.mxu0 %v8516_v5  ;;  %6951 = vmatprep.subr.bf16.mxu0 %v8235_v62  ;;  %v8256_v61 = vld [vmem:[#allocation6] ss:$12 sps:$4 sm:$0xff]   ;;  %v8284_v62 = vld [vmem:[#allocation6 + $0x8] ss:$12 sps:$4 sm:$0xff]   ;;  %v8293_v5 = vld [vmem:[#allocation6 + $0xf8] ss:$12 sps:$4 sm:$0xff]  }
 0x1fc   :  { %3377 = vmatprep.mubr.bf16.mxu1 %v8517_v6  ;;  %7255 = vmatprep.subr.bf16.mxu1 %v8237_v0  ;;  %v8546_v2 = vld [vmem:[%s9875_s0 + $0x4c] ss:$28 sps:$4 sm:$0xff]   ;;  %v8262_v6 = vld [vmem:[#allocation6 + $0x30] ss:$12 sps:$4 sm:$0xff]  }
 0x1fe   :  { %6952 = vmatpush3.bf16.msra.mxu0 %v8236_v63  ;;  %7256 = vmatpush3.bf16.msra.mxu1 %v8237_v0  ;;  %v8261_v63 = vld [vmem:[#allocation6 + $0x1c] ss:$12 sps:$4 sm:$0xff]   ;;  %v8288_v0 = vld [vmem:[#allocation6 + $0xe0] ss:$12 sps:$4 sm:$0xff]  }
 0x1ff   :  { %6953 = vmatprep.subr.bf16.mxu0 %v8238_v3  ;;  %7257 = vmatprep.subr.bf16.mxu1 %v8240_v4  ;;  %v8289_v3 = vld [vmem:[#allocation6 + $0x20] ss:$12 sps:$4 sm:$0xff]  }
 0x201   :  { %3281 = vmatmul.mubr.bf16.gmra.mrb[36].mxu0 %v8518_v10  ;;  %3378 = vmatmul.mubr.bf16.gmra.mrb[36].mxu1 %v8519_v11  ;;  %v8265_v10 = vld [vmem:[#allocation6 + $0x48] ss:$12 sps:$4 sm:$0xff]   ;;  %v8299_v11 = vld [vmem:[#allocation6 + $0x50] ss:$12 sps:$4 sm:$0xff]  }
 0x202   :  { %3288 = vmatprep.mubr.bf16.mxu0 %v8520_v13  ;;  %3385 = vmatprep.mubr.bf16.mxu1 %v8521_v14  ;;  %v8303_v13 = vld [vmem:[#allocation6 + $0x128] ss:$12 sps:$4 sm:$0xff]   ;;  %v8268_v14 = vld [vmem:[#allocation6 + $0x60] ss:$12 sps:$4 sm:$0xff]  }
 0x203   :  { %6954 = vmatpush3.bf16.msra.mxu0 %v8239_v7  ;;  %7258 = vmatpush3.bf16.msra.mxu1 %v8240_v4  ;;  %v8264_v4 = vld [vmem:[#allocation6 + $0x34] ss:$12 sps:$4 sm:$0xff]   ;;  %v8294_v7 = vld [vmem:[#allocation6 + $0x38] ss:$12 sps:$4 sm:$0xff]  }
 0x204   :  { %6955 = vmatprep.subr.bf16.mxu0 %v8241_v8  ;;  %7259 = vmatprep.subr.bf16.mxu1 %v8243_v9  ;;  %v8298_v8 = vld [vmem:[#allocation6 + $0x110] ss:$12 sps:$4 sm:$0xff]  }
 0x207   :  { %6956 = vmatpush3.bf16.msra.mxu0 %v8242_v12  ;;  %7260 = vmatpush3.bf16.msra.mxu1 %v8243_v9  ;;  %v8548_v9 = vld [vmem:[%s9875_s0 + $0x84] ss:$28 sps:$4 sm:$0xff]   ;;  %v8270_v12 = vld [vmem:[#allocation6 + $0x64] ss:$12 sps:$4 sm:$0xff]  }
 0x208   :  { %6957 = vmatprep.subr.bf16.mxu0 %v8244_v15  ;;  %7261 = vmatprep.subr.bf16.mxu1 %v8246_v16  ;;  %v8304_v15 = vld [vmem:[#allocation6 + $0x68] ss:$12 sps:$4 sm:$0xff]  }
 0x209   :  { %3289 = vmatmul.mubr.bf16.gmra.mrb[40].mxu0 %v8522_v22  ;;  %3386 = vmatmul.mubr.bf16.gmra.mrb[40].mxu1 %v8523_v23  ;;  %v8276_v22 = vld [vmem:[#allocation6 + $0x94] ss:$12 sps:$4 sm:$0xff]   ;;  %v8313_v23 = vld [vmem:[#allocation6 + $0x158] ss:$12 sps:$4 sm:$0xff]  }
 0x20a   :  { %3296 = vmatprep.mubr.bf16.mxu0 %v8524_v25  ;;  %3393 = vmatprep.mubr.bf16.mxu1 %v8525_v26  ;;  %v8314_v25 = vld [vmem:[#allocation6 + $0x98] ss:$12 sps:$4 sm:$0xff]   ;;  %v8318_v26 = vld [vmem:[#allocation6 + $0x170] ss:$12 sps:$4 sm:$0xff]  }
 0x20b   :  { %6958 = vmatpush3.bf16.msra.mxu0 %v8245_v17  ;;  %7262 = vmatpush3.bf16.msra.mxu1 %v8246_v16  ;;  %v8308_v16 = vld [vmem:[#allocation6 + $0x140] ss:$12 sps:$4 sm:$0xff]   ;;  %v8550_v17 = vld [vmem:[%s9875_s0 + $0xbc] ss:$28 sps:$4 sm:$0xff]  }
 0x20c   :  { %6959 = vmatprep.subr.bf16.mxu0 %v8247_v20  ;;  %7263 = vmatprep.subr.bf16.mxu1 %v8249_v21  ;;  %v8271_v20 = vld [vmem:[#allocation6 + $0x78] ss:$12 sps:$4 sm:$0xff]  }
 0x20f   :  { %6960 = vmatpush3.bf16.msra.mxu0 %v8248_v24  ;;  %7264 = vmatpush3.bf16.msra.mxu1 %v8249_v21  ;;  %v8309_v21 = vld [vmem:[#allocation6 + $0x80] ss:$12 sps:$4 sm:$0xff]   ;;  %v8274_v24 = vld [vmem:[#allocation6 + $0x90] ss:$12 sps:$4 sm:$0xff]  }
 0x210   :  { %6961 = vmatprep.subr.bf16.mxu0 %v8250_v27  ;;  %7265 = vmatprep.subr.bf16.mxu1 %v8252_v29  ;;  %v8552_v27 = vld [vmem:[%s9875_s0 + $0xf4] ss:$28 sps:$4 sm:$0xff]  }
 0x211   :  { %3297 = vmatmul.mubr.bf16.gmra.mrb[44].mxu0 %v8526_v33  ;;  %3394 = vmatmul.mubr.bf16.gmra.mrb[44].mxu1 %v8527_v34  ;;  %v8280_v33 = vld [vmem:[#allocation6 + $0xc0] ss:$12 sps:$4 sm:$0xff]   ;;  %v8287_v34 = vld [vmem:[#allocation6 + $0xdc] ss:$12 sps:$4 sm:$0xff]  }
 0x212   :  { %3304 = vmatprep.mubr.bf16.mxu0 %v8528_v35  ;;  %3401 = vmatprep.mubr.bf16.mxu1 %v8529_v36  ;;  %v8554_v35 = vld [vmem:[%s9875_s0 + $0x12c] ss:$28 sps:$4 sm:$0xff]  }
 0x213   :  { %6962 = vmatpush3.bf16.msra.mxu0 %v8251_v30  ;;  %7266 = vmatpush3.bf16.msra.mxu1 %v8252_v29  ;;  %v8277_v29 = vld [vmem:[#allocation6 + $0xa8] ss:$12 sps:$4 sm:$0xff]   ;;  %v8319_v30 = vld [vmem:[#allocation6 + $0xb0] ss:$12 sps:$4 sm:$0xff]   ;;  %v8285_v36 = vld [vmem:[#allocation6 + $0xd8] ss:$12 sps:$4 sm:$0xff]  }
 0x214   :  { %6963 = vmatprep.subr.bf16.mxu0 %v8253_v31  ;;  %7267 = vmatprep.subr.bf16.mxu1 %v8255_v32  ;;  %v8282_v31 = vld [vmem:[#allocation6 + $0xc4] ss:$12 sps:$4 sm:$0xff]  }
 0x217   :  { %6964 = vmatpush3.bf16.msra.mxu0 %v8254_v38  ;;  %7268 = vmatpush3.bf16.msra.mxu1 %v8255_v32  ;;  %v8347_v32 = vld [vmem:[#allocation6 + $0x248] ss:$12 sps:$4 sm:$0xff]  }
 0x218   :  { %4565 = vmatprep.subr.bf16.mxu0 %v8258_v39  ;;  %7029 = vmatprep.subr.bf16.mxu1 %v8283_v40  ;;  %v8292_v38 = vld [vmem:[#allocation6 + $0xf4] ss:$12 sps:$4 sm:$0xff]   ;;  %v8290_v39 = vld [vmem:[#allocation6 + $0xf0] ss:$12 sps:$4 sm:$0xff]   ;;  %v8297_v40 = vld [vmem:[#allocation6 + $0x10c] ss:$12 sps:$4 sm:$0xff]  }
 0x219   :  { %3305 = vmatmul.mubr.bf16.gmra.mrb[48].mxu0 %v8530_v41  ;;  %3402 = vmatmul.mubr.bf16.gmra.mrb[48].mxu1 %v8531_v42  ;;  %v8555_v41 = vld [vmem:[%s9875_s0 + $0x128] ss:$28 sps:$4 sm:$0xff]  }
 0x21a   :  { %3312 = vmatprep.mubr.bf16.mxu0 %v8532_v43  ;;  %3409 = vmatprep.mubr.bf16.mxu1 %v8533_v44  ;;  %v8556_v42 = vld [vmem:[%s9875_s0 + $0x164] ss:$28 sps:$4 sm:$0xff]   ;;  %v8295_v43 = vld [vmem:[#allocation6 + $0x108] ss:$12 sps:$4 sm:$0xff]   ;;  %v8302_v44 = vld [vmem:[#allocation6 + $0x124] ss:$12 sps:$4 sm:$0xff]  }
 0x221   :  { %3313 = vmatmul.mubr.bf16.gmra.mrb[52].mxu0 %v8534_v45  ;;  %3410 = vmatmul.mubr.bf16.gmra.mrb[52].mxu1 %v8535_v47  ;;  %v8300_v45 = vld [vmem:[#allocation6 + $0x120] ss:$12 sps:$4 sm:$0xff]   ;;  %v8307_v47 = vld [vmem:[#allocation6 + $0x13c] ss:$12 sps:$4 sm:$0xff]  }
 0x222   :  { %3320 = vmatprep.mubr.bf16.mxu0 %v8536_v48  ;;  %3417 = vmatprep.mubr.bf16.mxu1 %v8537_v49  ;;  %v8557_v48 = vld [vmem:[%s9875_s0 + $0x160] ss:$28 sps:$4 sm:$0xff]  }
 0x223   :  { %v8558_v49 = vld [vmem:[%s9875_s0 + $0x19c] ss:$28 sps:$4 sm:$0xff]  }
 0x229   :  { %3321 = vmatmul.mubr.bf16.gmra.mrb[56].mxu0 %v8538_v50  ;;  %3418 = vmatmul.mubr.bf16.gmra.mrb[56].mxu1 %v8539_v51  ;;  %v8305_v50 = vld [vmem:[#allocation6 + $0x138] ss:$12 sps:$4 sm:$0xff]   ;;  %v8312_v51 = vld [vmem:[#allocation6 + $0x154] ss:$12 sps:$4 sm:$0xff]  }
 0x22a   :  { %3328 = vmatprep.mubr.bf16.mxu0 %v8540_v52  ;;  %3425 = vmatprep.mubr.bf16.mxu1 %v8541_v53  ;;  %v8310_v52 = vld [vmem:[#allocation6 + $0x150] ss:$12 sps:$4 sm:$0xff]   ;;  %v8317_v53 = vld [vmem:[#allocation6 + $0x16c] ss:$12 sps:$4 sm:$0xff]  }
 0x231   :  { %3329 = vmatmul.mubr.bf16.gmra.mrb[60].mxu0 %v8542_v54  ;;  %3426 = vmatmul.mubr.bf16.gmra.mrb[60].mxu1 %v8543_v59  ;;  %v8559_v54 = vld [vmem:[%s9875_s0 + $0x198] ss:$28 sps:$4 sm:$0xff]  }
 0x232   :  { %3466 = vmatprep.mubr.bf16.mxu0 %v8544_v60  ;;  %7269 = vmatprep.mubr.bf16.mxu1 %v9140_v19  ;;  %v8259_v19 = vld [vmem:[#allocation6 + $0x18] ss:$12 sps:$4 sm:$0xff]   ;;  %v8315_v59 = vld [vmem:[#allocation6 + $0x168] ss:$12 sps:$4 sm:$0xff]  }
 0x233   :  { %v8322_v60 = vld [vmem:[#allocation6 + $0x184] ss:$12 sps:$4 sm:$0xff]  }
 0x239   :  { %3467 = vmatmul.mubr.bf16.vlgmr.msra.gmra.mrb[64].mxu0 %v8545_v1  ;;  %7270 = vmatmul.mubr.bf16.vlgmr.msra.gmra.mrb[64].mxu1 %v9149_v28  ;;  %v8267_v28 = vld [vmem:[#allocation6 + $0x4c] ss:$12 sps:$4 sm:$0xff]  }
 0x23a   :  { %3474 = vmatprep.mubr.bf16.mxu0 %v8546_v2  ;;  %7273 = vmatprep.mubr.bf16.mxu1 %v9158_v37  ;;  %v8547_v37 = vld [vmem:[%s9875_s0 + $0x48] ss:$28 sps:$4 sm:$0xff]  }
 0x23b   :  { %4566 = vmatpush1.bf16.msra.mxu0 %v8256_v61  ;;  %7030 = vmatpush3.bf16.msra.mxu1 %v8284_v62  ;;  %v567_v61 = vlaneseq  ;;  %v9365_v1 = vld [vmem:[#allocation4] sm:$0x1f] }
 0x23c   :  { %4567 = vmatprep.subr.bf16.mxu0 %v8261_v63  ;;  %7031 = vmatprep.subr.bf16.mxu1 %v8288_v0 }
 0x23d   :  { %v9359_v62 = vshrl.u32 %v567_v61, 7 }
 0x23f   :  { %4568 = vmatpush1.bf16.msra.mxu0 %v8259_v19  ;;  %7032 = vmatpush3.bf16.msra.mxu1 %v8289_v3  ;;  %v9362_v63 = vsub.s32 0, %v9359_v62  ;;  %v577_v0 = vsub.s32 2, %v9359_v62  ;;  %v9368_v2 = vsub.s32 1, %v9359_v62  ;;  %v581_v19 = vsub.s32 3, %v9359_v62 }
 0x240   :  { %4569 = vmatprep.subr.bf16.mxu0 %v8264_v4  ;;  %7033 = vmatprep.subr.bf16.mxu1 %v8293_v5 }
 0x241   :  { %3475 = vmatmul.mubr.bf16.gmra.mrb[68].mxu0 %v8547_v37  ;;  %7274 = vmatmul.mubr.bf16.gmra.mrb[68].mxu1 %v9167_v46  ;;  %v8273_v46 = vld [vmem:[#allocation6 + $0x7c] ss:$12 sps:$4 sm:$0xff]   ;;  %v9373_v3 = vrot.slane %v9365_v1, %v9362_v63  ;;  %v9378_v4 = vrot.slane %v9365_v1, %v577_v0  ;;  %v9382_v5 = vrot.slane %v9365_v1, %v9368_v2 }
 0x242   :  { %3482 = vmatprep.mubr.bf16.mxu0 %v8548_v9  ;;  %7277 = vmatprep.mubr.bf16.mxu1 %v9176_v55  ;;  %v8549_v55 = vld [vmem:[%s9875_s0 + $0x80] ss:$28 sps:$4 sm:$0xff]  }
 0x243   :  { %4570 = vmatpush1.bf16.msra.mxu0 %v8262_v6  ;;  %7034 = vmatpush3.bf16.msra.mxu1 %v8294_v7  ;;  %v9385_v6 = vrot.slane %v9365_v1, %v581_v19 }
 0x244   :  { %4571 = vmatprep.subr.bf16.mxu0 %v8267_v28  ;;  %7035 = vmatprep.subr.bf16.mxu1 %v8298_v8 }
 0x247   :  { %4572 = vmatpush1.bf16.msra.mxu0 %v8265_v10  ;;  %7036 = vmatpush3.bf16.msra.mxu1 %v8299_v11 }
 0x248   :  { %4573 = vmatprep.subr.bf16.mxu0 %v8270_v12  ;;  %7037 = vmatprep.subr.bf16.mxu1 %v8303_v13 }
 0x249   :  { %3483 = vmatmul.mubr.bf16.gmra.mrb[72].mxu0 %v8549_v55  ;;  %7278 = vmatmul.mubr.bf16.gmra.mrb[72].mxu1 %v9185_v56  ;;  %v8279_v56 = vld [vmem:[#allocation6 + $0xac] ss:$12 sps:$4 sm:$0xff]  }
 0x24a   :  { %3490 = vmatprep.mubr.bf16.mxu0 %v8550_v17  ;;  %7281 = vmatprep.mubr.bf16.mxu1 %v9194_v57  ;;  %v8551_v57 = vld [vmem:[%s9875_s0 + $0xb8] ss:$28 sps:$4 sm:$0xff]  }
 0x24b   :  { %4574 = vmatpush1.bf16.msra.mxu0 %v8268_v14  ;;  %7038 = vmatpush3.bf16.msra.mxu1 %v8304_v15 }
 0x24c   :  { %4575 = vmatprep.subr.bf16.mxu0 %v8273_v46  ;;  %7039 = vmatprep.subr.bf16.mxu1 %v8308_v16 }
 0x24f   :  { %4576 = vmatpush1.bf16.msra.mxu0 %v8271_v20  ;;  %7040 = vmatpush3.bf16.msra.mxu1 %v8309_v21 }
 0x250   :  { %4577 = vmatprep.subr.bf16.mxu0 %v8276_v22  ;;  %7041 = vmatprep.subr.bf16.mxu1 %v8313_v23 }
 0x251   :  { %3491 = vmatmul.mubr.bf16.gmra.mrb[76].mxu0 %v8551_v57  ;;  %7282 = vmatmul.mubr.bf16.gmra.mrb[76].mxu1 %v9203_v58  ;;  %v8553_v58 = vld [vmem:[%s9875_s0 + $0xf0] ss:$28 sps:$4 sm:$0xff]  }
 0x252   :  { %3498 = vmatprep.mubr.bf16.mxu0 %v8552_v27 }
 0x253   :  { %4578 = vmatpush1.bf16.msra.mxu0 %v8274_v24  ;;  %7042 = vmatpush3.bf16.msra.mxu1 %v8314_v25 }
 0x254   :  { %4579 = vmatprep.subr.bf16.mxu0 %v8279_v56  ;;  %7043 = vmatprep.subr.bf16.mxu1 %v8318_v26 }
 0x257   :  { %4580 = vmatpush1.bf16.msra.mxu0 %v8277_v29  ;;  %7044 = vmatpush3.bf16.msra.mxu1 %v8319_v30 }
 0x258   :  { %4581 = vmatprep.subr.bf16.mxu0 %v8282_v31  ;;  %7093 = vmatprep.subr.bf16.mxu1 %v8347_v32 }
 0x259   :  { %3499 = vmatmul.mubr.bf16.gmra.mrb[80].mxu0 %v8553_v58  ;;  %v8348_v58 = vld [vmem:[#allocation6 + $0x188] ss:$12 sps:$4 sm:$0xff]  }
 0x25a   :  { %3506 = vmatprep.mubr.bf16.mxu0 %v8554_v35 }
 0x25b   :  { %4582 = vmatpush1.bf16.msra.mxu0 %v8280_v33 }
 0x25c   :  { %4583 = vmatprep.subr.bf16.mxu0 %v8287_v34  ;;  %v8320_v34 = vld [vmem:[#allocation6 + $0x180] ss:$12 sps:$4 sm:$0xff]  }
 0x25f   :  { %4584 = vmatpush1.bf16.msra.mxu0 %v8285_v36 }
 0x260   :  { %4585 = vmatprep.subr.bf16.mxu0 %v8292_v38 }
 0x261   :  { %3507 = vmatmul.mubr.bf16.gmra.mrb[84].mxu0 %v8555_v41  ;;  %v8352_v41 = vld [vmem:[#allocation6 + $0x260] ss:$12 sps:$4 sm:$0xff]  }
 0x262   :  { %3514 = vmatprep.mubr.bf16.mxu0 %v8556_v42 }
 0x263   :  { %4586 = vmatpush1.bf16.msra.mxu0 %v8290_v39 }
 0x264   :  { %4587 = vmatprep.subr.bf16.mxu0 %v8297_v40  ;;  %v8325_v40 = vld [vmem:[#allocation6 + $0x19c] ss:$12 sps:$4 sm:$0xff]  }
 0x267   :  { %4588 = vmatpush1.bf16.msra.mxu0 %v8295_v43 }
 0x268   :  { %4589 = vmatprep.subr.bf16.mxu0 %v8302_v44 }
 0x269   :  { %3515 = vmatmul.mubr.bf16.gmra.mrb[88].mxu0 %v8557_v48 }
 0x26a   :  { %3522 = vmatprep.mubr.bf16.mxu0 %v8558_v49 }
 0x26b   :  { %4590 = vmatpush1.bf16.msra.mxu0 %v8300_v45 }
 0x26c   :  { %4591 = vmatprep.subr.bf16.mxu0 %v8307_v47 }
 0x26f   :  { %4592 = vmatpush1.bf16.msra.mxu0 %v8305_v50 }
 0x270   :  { %4593 = vmatprep.subr.bf16.mxu0 %v8312_v51 }
 0x271   :  { %3523 = vmatmul.mubr.bf16.gmra.mrb[92].mxu0 %v8559_v54  ;;  %v8328_v54 = vld [vmem:[#allocation6 + $0x1b4] ss:$12 sps:$4 sm:$0xff]  }
 0x273   :  { %4594 = vmatpush1.bf16.msra.mxu0 %v8310_v52 }
 0x274   :  { %4595 = vmatprep.subr.bf16.mxu0 %v8317_v53  ;;  %v8323_v53 = vld [vmem:[#allocation6 + $0x198] ss:$12 sps:$4 sm:$0xff]  }
 0x277   :  { %4596 = vmatpush1.bf16.msra.mxu0 %v8315_v59  ;;  %v8353_v59 = vld [vmem:[#allocation6 + $0x1a0] ss:$12 sps:$4 sm:$0xff]  }
 0x278   :  { %4678 = vmatprep.subr.bf16.mxu0 %v8322_v60 }
 0x28c   :  { %v2709_v7 = vpop.f32.mrb[0].mxu0  ;;  %v3161_v28 = vpop.f32.mrb[0].mxu1 }
 0x28d   :  { %v7349_v8 = vadd.f32 %v2709_v7, %v9373_v3  ;;  %v7381_v37 = vadd.f32 %v3161_v28, %v9378_v4  ;;  %v2711_v9 = vpop.f32.mrb[1].mxu0  ;;  %v3163_v10 = vpop.f32.mrb[1].mxu1  ;;  %v8357_v28 = vld [vmem:[#allocation6 + $0x278] ss:$12 sps:$4 sm:$0xff]  }
 0x28e   :  { %v7350_v11 = vadd.f32 %v2711_v9, %v9382_v5  ;;  %v7382_v12 = vadd.f32 %v3163_v10, %v9385_v6  ;;  %v2713_v13 = vpop.f32.mrb[2].mxu0  ;;  %v3165_v14 = vpop.f32.mrb[2].mxu1 }
 0x28f   :  { %v7351_v15 = vadd.f32 %v2713_v13, %v9373_v3  ;;  %v7383_v46 = vadd.f32 %v3165_v14, %v9378_v4  ;;  %v2715_v16 = vpop.f32.mrb[3].mxu0  ;;  %v3167_v55 = vpop.f32.mrb[3].mxu1  ;;  %v3628_v21 = vmax.f32 %v7349_v8, 0.0  ;;  %v3630_v22 = vmax.f32 %v7381_v37, 0.0 }
 0x290   :  { %v7352_v17 = vadd.f32 %v2715_v16, %v9382_v5  ;;  %v7384_v20 = vadd.f32 %v3167_v55, %v9385_v6  ;;  %v3629_v25 = vmax.f32 %v7350_v11, 0.0  ;;  %v3631_v56 = vmax.f32 %v7382_v12, 0.0  ;;  %v8326_v16 = vld [vmem:[#allocation6 + $0x1b0] ss:$12 sps:$4 sm:$0xff]   ;;  %v8358_v55 = vld [vmem:[#allocation6 + $0x1b8] ss:$12 sps:$4 sm:$0xff]  }
 0x291   :  { %v3633_v23 = vmax.f32 %v7351_v15, 0.0  ;;  %v3635_v24 = vmax.f32 %v7383_v46, 0.0 }
 0x292   :  { %v3634_v26 = vmax.f32 %v7352_v17, 0.0  ;;  %v3636_v57 = vmax.f32 %v7384_v20, 0.0 }
 0x293   :  { %v3708_v27 = vpack.c.bf16 %v3633_v23, %v3628_v21  ;;  %v9395_v29 = vpack.c.bf16 %v3635_v24, %v3630_v22  ;;  %v8331_v23 = vld [vmem:[#allocation6 + $0x1cc] ss:$12 sps:$4 sm:$0xff]   ;;  %v8362_v24 = vld [vmem:[#allocation6 + $0x290] ss:$12 sps:$4 sm:$0xff]  }
 0x294   :  { %v3709_v30 = vpack.c.bf16 %v3634_v26, %v3629_v25  ;;  %v9397_v31 = vpack.c.bf16 %v3636_v57, %v3631_v56  ;;  %v2719_v32 = vpop.f32.mrb[4].mxu0  ;;  %v3171_v33 = vpop.f32.mrb[4].mxu1 }
 0x295   :  { %v7353_v35 = vadd.f32 %v2719_v32, %v9373_v3  ;;  %v7385_v36 = vadd.f32 %v3171_v33, %v9378_v4  ;;  %v2721_v38 = vpop.f32.mrb[5].mxu0  ;;  %v3173_v39 = vpop.f32.mrb[5].mxu1 }
 0x296   :  { %v7354_v42 = vadd.f32 %v2721_v38, %v9382_v5  ;;  %v7386_v43 = vadd.f32 %v3173_v39, %v9385_v6  ;;  %v2723_v44 = vpop.f32.mrb[6].mxu0  ;;  %v3175_v45 = vpop.f32.mrb[6].mxu1  ;;  %4597 = vmatprep.mubr.bf16.mxu0 %v3709_v30  ;;  %4936 = vmatprep.mubr.bf16.mxu1 %v3709_v30  ;;  %v8363_v38 = vld [vmem:[#allocation6 + $0x1d0] ss:$12 sps:$4 sm:$0xff]  }
 0x297   :  { %v7355_v47 = vadd.f32 %v2723_v44, %v9373_v3  ;;  %v7387_v48 = vadd.f32 %v3175_v45, %v9378_v4  ;;  %v2725_v49 = vpop.f32.mrb[7].mxu0  ;;  %v3177_v50 = vpop.f32.mrb[7].mxu1  ;;  %4598 = vmatmul.mubr.bf16.vlgmr.msra.gmra.mrb[96].mxu0 %v3708_v27  ;;  %4937 = vmatmul.mubr.bf16.vlgmr.msra.gmra.mrb[80].mxu1 %v3708_v27  ;;  %v3638_v60 = vmax.f32 %v7353_v35, 0.0  ;;  %v3640_v61 = vmax.f32 %v7385_v36, 0.0  ;;  %v8329_v35 = vld [vmem:[#allocation6 + $0x1c8] ss:$12 sps:$4 sm:$0xff]  }
 0x298   :  { %v7356_v51 = vadd.f32 %v2725_v49, %v9382_v5  ;;  %v7388_v52 = vadd.f32 %v3177_v50, %v9385_v6  ;;  %4679 = vmatpush1.bf16.msra.mxu0 %v8320_v34  ;;  %7094 = vmatpush3.bf16.msra.mxu1 %v8348_v58  ;;  %v3639_v8 = vmax.f32 %v7354_v42, 0.0  ;;  %v3641_v37 = vmax.f32 %v7386_v43, 0.0  ;;  %v8334_v36 = vld [vmem:[#allocation6 + $0x1e4] ss:$12 sps:$4 sm:$0xff]   ;;  %v8367_v43 = vld [vmem:[#allocation6 + $0x2a8] ss:$12 sps:$4 sm:$0xff]  }
 0x299   :  { %v3643_v19 = vmax.f32 %v7355_v47, 0.0  ;;  %v3645_v7 = vmax.f32 %v7387_v48, 0.0  ;;  %4680 = vmatprep.subr.bf16.mxu0 %v8325_v40  ;;  %7095 = vmatprep.subr.bf16.mxu1 %v8352_v41 }
 0x29a   :  { %v3644_v9 = vmax.f32 %v7356_v51, 0.0  ;;  %v3646_v10 = vmax.f32 %v7388_v52, 0.0 }
 0x29b   :  { %v3713_v11 = vpack.c.bf16 %v3643_v19, %v3638_v60  ;;  %v9407_v12 = vpack.c.bf16 %v3645_v7, %v3640_v61  ;;  %v8368_v60 = vld [vmem:[#allocation6 + $0x1e8] ss:$12 sps:$4 sm:$0xff]  }
 0x29c   :  { %v3714_v13 = vpack.c.bf16 %v3644_v9, %v3639_v8  ;;  %v9409_v14 = vpack.c.bf16 %v3646_v10, %v3641_v37  ;;  %v2729_v15 = vpop.f32.mrb[8].mxu0  ;;  %v3181_v46 = vpop.f32.mrb[8].mxu1  ;;  %4681 = vmatpush1.bf16.msra.mxu0 %v8323_v53  ;;  %7096 = vmatpush3.bf16.msra.mxu1 %v8353_v59  ;;  %v8332_v59 = vld [vmem:[#allocation6 + $0x1e0] ss:$12 sps:$4 sm:$0xff]   ;;  %v8337_v8 = vld [vmem:[#allocation6 + $0x1fc] ss:$12 sps:$4 sm:$0xff]  }
 0x29d   :  { %v7357_v17 = vadd.f32 %v2729_v15, %v9373_v3  ;;  %v7389_v20 = vadd.f32 %v3181_v46, %v9378_v4  ;;  %v2731_v21 = vpop.f32.mrb[9].mxu0  ;;  %v3183_v22 = vpop.f32.mrb[9].mxu1  ;;  %4682 = vmatprep.subr.bf16.mxu0 %v8328_v54  ;;  %7097 = vmatprep.subr.bf16.mxu1 %v8357_v28  ;;  %v8372_v37 = vld [vmem:[#allocation6 + $0x2c0] ss:$12 sps:$4 sm:$0xff]  }
 0x29e   :  { %v7358_v25 = vadd.f32 %v2731_v21, %v9382_v5  ;;  %v7390_v56 = vadd.f32 %v3183_v22, %v9385_v6  ;;  %v2733_v26 = vpop.f32.mrb[10].mxu0  ;;  %v3185_v57 = vpop.f32.mrb[10].mxu1  ;;  %4607 = vmatprep.mubr.bf16.mxu0 %v3714_v13  ;;  %4944 = vmatprep.mubr.bf16.mxu1 %v3714_v13  ;;  %v8335_v21 = vld [vmem:[#allocation6 + $0x1f8] ss:$12 sps:$4 sm:$0xff]   ;;  %v8340_v22 = vld [vmem:[#allocation6 + $0x214] ss:$12 sps:$4 sm:$0xff]  }
 0x29f   :  { %v7359_v27 = vadd.f32 %v2733_v26, %v9373_v3  ;;  %v7391_v30 = vadd.f32 %v3185_v57, %v9378_v4  ;;  %v2735_v32 = vpop.f32.mrb[11].mxu0  ;;  %v3187_v33 = vpop.f32.mrb[11].mxu1  ;;  %4608 = vmatmul.mubr.bf16.gmra.mrb[100].mxu0 %v3713_v11  ;;  %4945 = vmatmul.mubr.bf16.gmra.mrb[84].mxu1 %v3713_v11  ;;  %v3648_v39 = vmax.f32 %v7357_v17, 0.0  ;;  %v3650_v40 = vmax.f32 %v7389_v20, 0.0  ;;  %v8377_v57 = vld [vmem:[#allocation6 + $0x2d8] ss:$12 sps:$4 sm:$0xff]  }
 0x2a0   :  { %v7360_v34 = vadd.f32 %v2735_v32, %v9382_v5  ;;  %v7392_v58 = vadd.f32 %v3187_v33, %v9385_v6  ;;  %4683 = vmatpush1.bf16.msra.mxu0 %v8326_v16  ;;  %7098 = vmatpush3.bf16.msra.mxu1 %v8358_v55  ;;  %v3649_v44 = vmax.f32 %v7358_v25, 0.0  ;;  %v3651_v45 = vmax.f32 %v7390_v56, 0.0 }
 0x2a1   :  { %v3653_v41 = vmax.f32 %v7359_v27, 0.0  ;;  %v3655_v42 = vmax.f32 %v7391_v30, 0.0  ;;  %4684 = vmatprep.subr.bf16.mxu0 %v8331_v23  ;;  %7099 = vmatprep.subr.bf16.mxu1 %v8362_v24  ;;  %v8373_v23 = vld [vmem:[#allocation6 + $0x200] ss:$12 sps:$4 sm:$0xff]  }
 0x2a2   :  { %v3654_v47 = vmax.f32 %v7360_v34, 0.0  ;;  %v3656_v48 = vmax.f32 %v7392_v58, 0.0 }
 0x2a3   :  { %v3718_v49 = vpack.c.bf16 %v3653_v41, %v3648_v39  ;;  %v9419_v50 = vpack.c.bf16 %v3655_v42, %v3650_v40  ;;  %v8338_v40 = vld [vmem:[#allocation6 + $0x210] ss:$12 sps:$4 sm:$0xff]   ;;  %v8378_v41 = vld [vmem:[#allocation6 + $0x218] ss:$12 sps:$4 sm:$0xff]  }
 0x2a4   :  { %v3719_v51 = vpack.c.bf16 %v3654_v47, %v3649_v44  ;;  %v9421_v52 = vpack.c.bf16 %v3656_v48, %v3651_v45  ;;  %v2739_v53 = vpop.f32.mrb[12].mxu0  ;;  %v3191_v54 = vpop.f32.mrb[12].mxu1  ;;  %4685 = vmatpush1.bf16.msra.mxu0 %v8329_v35  ;;  %7100 = vmatpush3.bf16.msra.mxu1 %v8363_v38  ;;  %v8343_v47 = vld [vmem:[#allocation6 + $0x22c] ss:$12 sps:$4 sm:$0xff]   ;;  %v8382_v48 = vld [vmem:[#allocation6 + $0x2f0] ss:$12 sps:$4 sm:$0xff]  }
 0x2a5   :  { %v7361_v61 = vadd.f32 %v2739_v53, %v9373_v3  ;;  %v7393_v19 = vadd.f32 %v3191_v54, %v9378_v4  ;;  %v2741_v7 = vpop.f32.mrb[13].mxu0  ;;  %v3193_v28 = vpop.f32.mrb[13].mxu1  ;;  %4686 = vmatprep.subr.bf16.mxu0 %v8334_v36  ;;  %7101 = vmatprep.subr.bf16.mxu1 %v8367_v43 }
 0x2a6   :  { %v7362_v9 = vadd.f32 %v2741_v7, %v9382_v5  ;;  %v7394_v10 = vadd.f32 %v3193_v28, %v9385_v6  ;;  %v2743_v11 = vpop.f32.mrb[14].mxu0  ;;  %v3195_v13 = vpop.f32.mrb[14].mxu1  ;;  %4617 = vmatprep.mubr.bf16.mxu0 %v3719_v51  ;;  %4952 = vmatprep.mubr.bf16.mxu1 %v3719_v51 }
 0x2a7   :  { %v7363_v15 = vadd.f32 %v2743_v11, %v9373_v3  ;;  %v7395_v46 = vadd.f32 %v3195_v13, %v9378_v4  ;;  %v2745_v16 = vpop.f32.mrb[15].mxu0  ;;  %v3197_v55 = vpop.f32.mrb[15].mxu1  ;;  %4618 = vmatmul.mubr.bf16.gmra.mrb[104].mxu0 %v3718_v49  ;;  %4953 = vmatmul.mubr.bf16.gmra.mrb[88].mxu1 %v3718_v49  ;;  %v3658_v24 = vmax.f32 %v7361_v61, 0.0  ;;  %v3660_v25 = vmax.f32 %v7393_v19, 0.0 }
 0x2a8   :  { %v7364_v17 = vadd.f32 %v2745_v16, %v9382_v5  ;;  %v7396_v20 = vadd.f32 %v3197_v55, %v9385_v6  ;;  %4687 = vmatpush1.bf16.msra.mxu0 %v8332_v59  ;;  %7102 = vmatpush3.bf16.msra.mxu1 %v8368_v60  ;;  %v3659_v27 = vmax.f32 %v7362_v9, 0.0  ;;  %v3661_v30 = vmax.f32 %v7394_v10, 0.0  ;;  %v8383_v9 = vld [vmem:[#allocation6 + $0x230] ss:$12 sps:$4 sm:$0xff]  }
 0x2a9   :  { %v3663_v56 = vmax.f32 %v7363_v15, 0.0  ;;  %v3665_v26 = vmax.f32 %v7395_v46, 0.0  ;;  %4688 = vmatprep.subr.bf16.mxu0 %v8337_v8  ;;  %7103 = vmatprep.subr.bf16.mxu1 %v8372_v37  ;;  %v8341_v8 = vld [vmem:[#allocation6 + $0x228] ss:$12 sps:$4 sm:$0xff]   ;;  %v8346_v37 = vld [vmem:[#allocation6 + $0x244] ss:$12 sps:$4 sm:$0xff]  }
 0x2aa   :  { %v3664_v32 = vmax.f32 %v7364_v17, 0.0  ;;  %v3666_v33 = vmax.f32 %v7396_v20, 0.0  ;;  %v9443_v46 = vld [vmem:[#allocation6 + $0x308] ss:$12 sps:$4 sm:$0xff]  }
 0x2ab   :  { %v3723_v34 = vpack.c.bf16 %v3663_v56, %v3658_v24  ;;  %v9431_v58 = vpack.c.bf16 %v3665_v26, %v3660_v25  ;;  %v8344_v26 = vld [vmem:[#allocation6 + $0x240] ss:$12 sps:$4 sm:$0xff]  }
 0x2ac   :  { %v3724_v35 = vpack.c.bf16 %v3664_v32, %v3659_v27  ;;  %v9433_v36 = vpack.c.bf16 %v3666_v33, %v3661_v30  ;;  %v2749_v38 = vpop.f32.mrb[16].mxu0  ;;  %v3201_v39 = vpop.f32.mrb[16].mxu1  ;;  %4689 = vmatpush1.bf16.msra.mxu0 %v8335_v21  ;;  %7104 = vmatpush3.bf16.msra.mxu1 %v8373_v23  ;;  %v8351_v33 = vld [vmem:[#allocation6 + $0x25c] ss:$12 sps:$4 sm:$0xff]  }
 0x2ad   :  { %v7365_v42 = vadd.f32 %v2749_v38, %v9373_v3  ;;  %v7397_v43 = vadd.f32 %v3201_v39, %v9378_v4  ;;  %v2751_v44 = vpop.f32.mrb[17].mxu0  ;;  %v3203_v45 = vpop.f32.mrb[17].mxu1  ;;  %4690 = vmatprep.subr.bf16.mxu0 %v8340_v22  ;;  %7105 = vmatprep.subr.bf16.mxu1 %v8377_v57 }
 0x2ae   :  { %v7366_v49 = vadd.f32 %v2751_v44, %v9382_v5  ;;  %v7398_v51 = vadd.f32 %v3203_v45, %v9385_v6  ;;  %v2753_v53 = vpop.f32.mrb[18].mxu0  ;;  %v3205_v54 = vpop.f32.mrb[18].mxu1  ;;  %4627 = vmatprep.mubr.bf16.mxu0 %v3724_v35  ;;  %4960 = vmatprep.mubr.bf16.mxu1 %v3724_v35 }
 0x2af   :  { %v7367_v59 = vadd.f32 %v2753_v53, %v9373_v3  ;;  %v7399_v60 = vadd.f32 %v3205_v54, %v9378_v4  ;;  %v2755_v61 = vpop.f32.mrb[19].mxu0  ;;  %v3207_v19 = vpop.f32.mrb[19].mxu1  ;;  %4628 = vmatmul.mubr.bf16.gmra.mrb[108].mxu0 %v3723_v34  ;;  %4961 = vmatmul.mubr.bf16.gmra.mrb[92].mxu1 %v3723_v34  ;;  %v3668_v10 = vmax.f32 %v7365_v42, 0.0  ;;  %v3670_v11 = vmax.f32 %v7397_v43, 0.0  ;;  %v8356_v54 = vld [vmem:[#allocation6 + $0x274] ss:$12 sps:$4 sm:$0xff]  }
 0x2b0   :  { %v7368_v7 = vadd.f32 %v2755_v61, %v9382_v5  ;;  %v7400_v28 = vadd.f32 %v3207_v19, %v9385_v6  ;;  %4691 = vmatpush1.bf16.msra.mxu0 %v8338_v40  ;;  %7106 = vmatpush3.bf16.msra.mxu1 %v8378_v41  ;;  %v3669_v16 = vmax.f32 %v7366_v49, 0.0  ;;  %v3671_v55 = vmax.f32 %v7398_v51, 0.0 }
 0x2b1   :  { %v3673_v13 = vmax.f32 %v7367_v59, 0.0  ;;  %v3675_v15 = vmax.f32 %v7399_v60, 0.0  ;;  %4692 = vmatprep.subr.bf16.mxu0 %v8343_v47  ;;  %7107 = vmatprep.subr.bf16.mxu1 %v8382_v48  ;;  %v8349_v47 = vld [vmem:[#allocation6 + $0x258] ss:$12 sps:$4 sm:$0xff]  }
 0x2b2   :  { %v3674_v17 = vmax.f32 %v7368_v7, 0.0  ;;  %v3676_v20 = vmax.f32 %v7400_v28, 0.0 }
 0x2b3   :  { %v3728_v21 = vpack.c.bf16 %v3673_v13, %v3668_v10  ;;  %v9445_v22 = vpack.c.bf16 %v3675_v15, %v3670_v11  ;;  %v8354_v11 = vld [vmem:[#allocation6 + $0x270] ss:$12 sps:$4 sm:$0xff]  }
 0x2b4   :  { %v3729_v23 = vpack.c.bf16 %v3674_v17, %v3669_v16  ;;  %v9447_v24 = vpack.c.bf16 %v3676_v20, %v3671_v55  ;;  %v2759_v25 = vpop.f32.mrb[20].mxu0  ;;  %v3211_v56 = vpop.f32.mrb[20].mxu1  ;;  %4693 = vmatpush1.bf16.msra.mxu0 %v8341_v8  ;;  %7108 = vmatpush3.bf16.msra.mxu1 %v8383_v9  ;;  %v8361_v17 = vld [vmem:[#allocation6 + $0x28c] ss:$12 sps:$4 sm:$0xff]  }
 0x2b5   :  { %v7369_v57 = vadd.f32 %v2759_v25, %v9373_v3  ;;  %v7401_v27 = vadd.f32 %v3211_v56, %v9378_v4  ;;  %v2761_v30 = vpop.f32.mrb[21].mxu0  ;;  %v3213_v32 = vpop.f32.mrb[21].mxu1  ;;  %4694 = vmatprep.subr.bf16.mxu0 %v8346_v37  ;;  %7285 = vmatprep.subr.bf16.mxu1 %v9443_v46 }
 0x2b6   :  { %v7370_v34 = vadd.f32 %v2761_v30, %v9382_v5  ;;  %v7402_v35 = vadd.f32 %v3213_v32, %v9385_v6  ;;  %v2763_v38 = vpop.f32.mrb[22].mxu0  ;;  %v3215_v39 = vpop.f32.mrb[22].mxu1  ;;  %4637 = vmatprep.mubr.bf16.mxu0 %v3729_v23  ;;  %4968 = vmatprep.mubr.bf16.mxu1 %v3729_v23 }
 0x2b7   :  { %v7371_v40 = vadd.f32 %v2763_v38, %v9373_v3  ;;  %v7403_v41 = vadd.f32 %v3215_v39, %v9378_v4  ;;  %v2765_v42 = vpop.f32.mrb[23].mxu0  ;;  %v3217_v43 = vpop.f32.mrb[23].mxu1  ;;  %4638 = vmatmul.mubr.bf16.gmra.mrb[112].mxu0 %v3728_v21  ;;  %4969 = vmatmul.mubr.bf16.gmra.mrb[96].mxu1 %v3728_v21  ;;  %v3678_v48 = vmax.f32 %v7369_v57, 0.0  ;;  %v3680_v49 = vmax.f32 %v7401_v27, 0.0 }
 0x2b8   :  { %v7372_v44 = vadd.f32 %v2765_v42, %v9382_v5  ;;  %v7404_v45 = vadd.f32 %v3217_v43, %v9385_v6  ;;  %4695 = vmatpush1.bf16.msra.mxu0 %v8344_v26  ;;  %v3679_v59 = vmax.f32 %v7370_v34, 0.0  ;;  %v3681_v60 = vmax.f32 %v7402_v35, 0.0 }
 0x2b9   :  { %v3683_v51 = vmax.f32 %v7371_v40, 0.0  ;;  %v3685_v53 = vmax.f32 %v7403_v41, 0.0  ;;  %4696 = vmatprep.subr.bf16.mxu0 %v8351_v33  ;;  %v8359_v33 = vld [vmem:[#allocation6 + $0x288] ss:$12 sps:$4 sm:$0xff]   ;;  %v8366_v40 = vld [vmem:[#allocation6 + $0x2a4] ss:$12 sps:$4 sm:$0xff]  }
 0x2ba   :  { %v3684_v61 = vmax.f32 %v7372_v44, 0.0  ;;  %v3686_v19 = vmax.f32 %v7404_v45, 0.0 }
 0x2bb   :  { %v3733_v7 = vpack.c.bf16 %v3683_v51, %v3678_v48  ;;  %v9458_v28 = vpack.c.bf16 %v3685_v53, %v3680_v49 }
 0x2bc   :  { %v3734_v8 = vpack.c.bf16 %v3684_v61, %v3679_v59  ;;  %v9460_v37 = vpack.c.bf16 %v3686_v19, %v3681_v60  ;;  %v2769_v9 = vpop.f32.mrb[24].mxu0  ;;  %v3221_v10 = vpop.f32.mrb[24].mxu1  ;;  %4697 = vmatpush1.bf16.msra.mxu0 %v8349_v47 }
 0x2bd   :  { %v7373_v13 = vadd.f32 %v2769_v9, %v9373_v3  ;;  %v7405_v15 = vadd.f32 %v3221_v10, %v9378_v4  ;;  %v2771_v16 = vpop.f32.mrb[25].mxu0  ;;  %v3223_v55 = vpop.f32.mrb[25].mxu1  ;;  %4698 = vmatprep.subr.bf16.mxu0 %v8356_v54  ;;  %v8364_v54 = vld [vmem:[#allocation6 + $0x2a0] ss:$12 sps:$4 sm:$0xff]  }
 0x2be   :  { %v7374_v20 = vadd.f32 %v2771_v16, %v9382_v5  ;;  %v7406_v21 = vadd.f32 %v3223_v55, %v9385_v6  ;;  %v2773_v23 = vpop.f32.mrb[26].mxu0  ;;  %v3225_v25 = vpop.f32.mrb[26].mxu1  ;;  %4647 = vmatprep.mubr.bf16.mxu0 %v3734_v8  ;;  %4976 = vmatprep.mubr.bf16.mxu1 %v3734_v8 }
 0x2bf   :  { %v7375_v56 = vadd.f32 %v2773_v23, %v9373_v3  ;;  %v7407_v26 = vadd.f32 %v3225_v25, %v9378_v4  ;;  %v2775_v57 = vpop.f32.mrb[27].mxu0  ;;  %v3227_v27 = vpop.f32.mrb[27].mxu1  ;;  %4648 = vmatmul.mubr.bf16.gmra.mrb[116].mxu0 %v3733_v7  ;;  %4977 = vmatmul.mubr.bf16.gmra.mrb[100].mxu1 %v3733_v7  ;;  %v3688_v34 = vmax.f32 %v7373_v13, 0.0  ;;  %v3690_v35 = vmax.f32 %v7405_v15, 0.0  ;;  %v8371_v7 = vld [vmem:[#allocation6 + $0x2bc] ss:$12 sps:$4 sm:$0xff]  }
 0x2c0   :  { %v7376_v30 = vadd.f32 %v2775_v57, %v9382_v5  ;;  %v7408_v32 = vadd.f32 %v3227_v27, %v9385_v6  ;;  %4699 = vmatpush1.bf16.msra.mxu0 %v8354_v11  ;;  %v3689_v41 = vmax.f32 %v7374_v20, 0.0  ;;  %v3691_v42 = vmax.f32 %v7406_v21, 0.0  ;;  %v8369_v21 = vld [vmem:[#allocation6 + $0x2b8] ss:$12 sps:$4 sm:$0xff]  }
 0x2c1   :  { %v3693_v38 = vmax.f32 %v7375_v56, 0.0  ;;  %v3695_v39 = vmax.f32 %v7407_v26, 0.0  ;;  %4700 = vmatprep.subr.bf16.mxu0 %v8361_v17  ;;  %v585_v23 = vsub.s32 4, %v9359_v62 }
 0x2c2   :  { %v3694_v43 = vmax.f32 %v7376_v30, 0.0  ;;  %v3696_v44 = vmax.f32 %v7408_v32, 0.0 }
 0x2c3   :  { %v3738_v45 = vpack.c.bf16 %v3693_v38, %v3688_v34  ;;  %v9470_v47 = vpack.c.bf16 %v3695_v39, %v3690_v35  ;;  %v9488_v38 = vrot.slane %v9365_v1, %v585_v23  ;;  %v8403_v23 = vld [vmem:[#allocation6 + $0x320] ss:$12 sps:$4 sm:$0xff]  }
 0x2c4   :  { %v3739_v48 = vpack.c.bf16 %v3694_v43, %v3689_v41  ;;  %v9472_v49 = vpack.c.bf16 %v3696_v44, %v3691_v42  ;;  %v2779_v51 = vpop.f32.mrb[28].mxu0  ;;  %v3231_v53 = vpop.f32.mrb[28].mxu1  ;;  %4701 = vmatpush1.bf16.msra.mxu0 %v8359_v33  ;;  %v8381_v43 = vld [vmem:[#allocation6 + $0x2ec] ss:$12 sps:$4 sm:$0xff]  }
 0x2c5   :  { %v7377_v59 = vadd.f32 %v2779_v51, %v9373_v3  ;;  %v7409_v60 = vadd.f32 %v3231_v53, %v9378_v4  ;;  %v2781_v61 = vpop.f32.mrb[29].mxu0  ;;  %v3233_v19 = vpop.f32.mrb[29].mxu1  ;;  %4702 = vmatprep.subr.bf16.mxu0 %v8366_v40  ;;  %v8374_v40 = vld [vmem:[#allocation6 + $0x2d0] ss:$12 sps:$4 sm:$0xff]  }
 0x2c6   :  { %v7378_v8 = vadd.f32 %v2781_v61, %v9382_v5  ;;  %v7410_v9 = vadd.f32 %v3233_v19, %v9385_v6  ;;  %v2783_v10 = vpop.f32.mrb[30].mxu0  ;;  %v3235_v11 = vpop.f32.mrb[30].mxu1  ;;  %4657 = vmatprep.mubr.bf16.mxu0 %v3739_v48  ;;  %4984 = vmatprep.mubr.bf16.mxu1 %v3739_v48  ;;  %v8379_v61 = vld [vmem:[#allocation6 + $0x2e8] ss:$12 sps:$4 sm:$0xff]   ;;  %v8386_v19 = vld [vmem:[#allocation6 + $0x304] ss:$12 sps:$4 sm:$0xff]  }
 0x2c7   :  { %v7379_v13 = vadd.f32 %v2783_v10, %v9373_v3  ;;  %v7411_v15 = vadd.f32 %v3235_v11, %v9378_v4  ;;  %v2785_v16 = vpop.f32.mrb[31].mxu0  ;;  %v3237_v55 = vpop.f32.mrb[31].mxu1  ;;  %4658 = vmatmul.mubr.bf16.gmra.mrb[120].mxu0 %v3738_v45  ;;  %4985 = vmatmul.mubr.bf16.gmra.mrb[104].mxu1 %v3738_v45  ;;  %v3698_v25 = vmax.f32 %v7377_v59, 0.0  ;;  %v3700_v56 = vmax.f32 %v7409_v60, 0.0  ;;  %v8376_v3 = vld [vmem:[#allocation6 + $0x2d4] ss:$12 sps:$4 sm:$0xff]  }
 0x2c8   :  { %v7380_v17 = vadd.f32 %v2785_v16, %v9382_v5  ;;  %v7412_v20 = vadd.f32 %v3237_v55, %v9385_v6  ;;  %4703 = vmatpush1.bf16.msra.mxu0 %v8364_v54  ;;  %v3699_v27 = vmax.f32 %v7378_v8, 0.0  ;;  %v3701_v4 = vmax.f32 %v7410_v9, 0.0  ;;  %v8384_v16 = vld [vmem:[#allocation6 + $0x300] ss:$12 sps:$4 sm:$0xff]  }
 0x2c9   :  { %v3703_v26 = vmax.f32 %v7379_v13, 0.0  ;;  %v3705_v57 = vmax.f32 %v7411_v15, 0.0  ;;  %4704 = vmatprep.subr.bf16.mxu0 %v8371_v7 }
 0x2ca   :  { %v3704_v30 = vmax.f32 %v7380_v17, 0.0  ;;  %v3706_v32 = vmax.f32 %v7412_v20, 0.0 }
 0x2cb   :  { %v3743_v33 = vpack.c.bf16 %v3703_v26, %v3698_v25  ;;  %v9483_v34 = vpack.c.bf16 %v3705_v57, %v3700_v56 }
 0x2cc   :  { %v3744_v5 = vpack.c.bf16 %v3704_v30, %v3699_v27  ;;  %v9485_v35 = vpack.c.bf16 %v3706_v32, %v3701_v4  ;;  %v6837_v6 = vpop.f32.mrb[32].mxu0  ;;  %4705 = vmatpush1.bf16.msra.mxu0 %v8369_v21  ;;  %v6901_v39 = vpop.f32.mrb[32].mxu1  ;;  %v8387_v27 = vld [vmem:[#allocation6 + $0x318] ss:$12 sps:$4 sm:$0xff]   ;;  %v8392_v32 = vld [vmem:[#allocation6 + $0x334] ss:$12 sps:$4 sm:$0xff]  }
 0x2cd   :  { %v6838_v41 = vpop.f32.mrb[33].mxu0  ;;  %v6902_v42 = vpop.f32.mrb[33].mxu1  ;;  %4706 = vmatprep.subr.bf16.mxu0 %v8376_v3 }
 0x2ce   :  { %v6839_v44 = vadd.f32 %v6838_v41, %v6837_v6  ;;  %v6840_v45 = vpop.f32.mrb[34].mxu0  ;;  %4667 = vmatprep.mubr.bf16.mxu0 %v3744_v5  ;;  %4992 = vmatprep.mubr.bf16.mxu1 %v3744_v5  ;;  %v6903_v48 = vadd.f32 %v6902_v42, %v6901_v39  ;;  %v6904_v51 = vpop.f32.mrb[34].mxu1 }
 0x2cf   :  { %v6841_v53 = vpop.f32.mrb[35].mxu0  ;;  %4668 = vmatmul.mubr.bf16.gmra.mrb[124].mxu0 %v3743_v33  ;;  %4993 = vmatmul.mubr.bf16.gmra.mrb[108].mxu1 %v3743_v33  ;;  %v6905_v54 = vpop.f32.mrb[35].mxu1 }
 0x2d0   :  { %v3275_v59 = vadd.f32 %v6839_v44, %v9488_v38  ;;  %v6842_v1 = vadd.f32 %v6841_v53, %v6840_v45  ;;  %4707 = vmatpush1.bf16.msra.mxu0 %v8374_v40  ;;  %4710 = vmatprep.mubr.bf16.mxu0 %v9397_v31  ;;  %v6906_v60 = vadd.f32 %v6905_v54, %v6904_v51  ;;  %v8395_v44 = vld [vmem:[#allocation6 + $0x34c] ss:$12 sps:$4 sm:$0xff]   ;;  %v8408_v45 = vld [vmem:[#allocation6 + $0x350] ss:$12 sps:$4 sm:$0xff]  }
 0x2d1   :  { %5033 = vmatprep.mubr.bf16.mxu1 %v9397_v31  ;;  %4708 = vmatprep.subr.bf16.mxu0 %v8381_v43  ;;  %v8389_v31 = vld [vmem:[#allocation6 + $0x31c] ss:$12 sps:$4 sm:$0xff]  }
 0x2d2   :  { %v3278_v7 = vadd.f32 %v6842_v1, %v9488_v38  ;;  %v9494_v8 = vadd.f32 %v6903_v48, %v3275_v59  ;;  %v8393_v1 = vld [vmem:[#allocation6 + $0x348] ss:$12 sps:$4 sm:$0xff]  }
 0x2d4   :  { %v9496_v9 = vadd.f32 %v6906_v60, %v3278_v7  ;;  %v6843_v10 = vpop.f32.mrb[36].mxu0  ;;  %4709 = vmatpush1.bf16.msra.mxu0 %v8379_v61  ;;  %v6907_v11 = vpop.f32.mrb[36].mxu1 }
 0x2d5   :  { %v6844_v13 = vpop.f32.mrb[37].mxu0  ;;  %v6908_v15 = vpop.f32.mrb[37].mxu1  ;;  %4791 = vmatprep.subr.bf16.mxu0 %v8386_v19  ;;  %v8398_v19 = vld [vmem:[#allocation6 + $0x364] ss:$12 sps:$4 sm:$0xff]  }
 0x2d6   :  { %v6845_v55 = vadd.f32 %v6844_v13, %v6843_v10  ;;  %v6846_v17 = vpop.f32.mrb[38].mxu0  ;;  %v6909_v20 = vadd.f32 %v6908_v15, %v6907_v11  ;;  %v6910_v21 = vpop.f32.mrb[38].mxu1 }
 0x2d7   :  { %v6847_v25 = vpop.f32.mrb[39].mxu0  ;;  %4711 = vmatmul.mubr.bf16.vlgmr.msra.gmra.mrb[96].mxu0 %v9395_v29  ;;  %5034 = vmatmul.mubr.bf16.vlgmr.msra.gmra.mrb[112].mxu1 %v9395_v29  ;;  %v6911_v56 = vpop.f32.mrb[39].mxu1  ;;  %v8407_v29 = vld [vmem:[#allocation6 + $0x338] ss:$12 sps:$4 sm:$0xff]  }
 0x2d8   :  { %v3283_v26 = vadd.f32 %v6845_v55, %v9488_v38  ;;  %v6848_v57 = vadd.f32 %v6847_v25, %v6846_v17  ;;  %4720 = vmatprep.mubr.bf16.mxu0 %v9409_v14  ;;  %5041 = vmatprep.mubr.bf16.mxu1 %v9409_v14  ;;  %v6912_v3 = vadd.f32 %v6911_v56, %v6910_v21  ;;  %v8390_v14 = vld [vmem:[#allocation6 + $0x330] ss:$12 sps:$4 sm:$0xff]  }
 0x2d9   :  { %4792 = vmatpush1.bf16.msra.mxu0 %v8384_v16  ;;  %7286 = vmatpush3.bf16.msra.mxu1 %v9443_v46  ;;  %v8401_v21 = vld [vmem:[#allocation6 + $0x37c] ss:$12 sps:$4 sm:$0xff]  }
 0x2da   :  { %v3286_v4 = vadd.f32 %v6848_v57, %v9488_v38  ;;  %v9505_v30 = vadd.f32 %v6909_v20, %v3283_v26  ;;  %4793 = vmatprep.subr.bf16.mxu0 %v8389_v31  ;;  %7287 = vmatprep.subr.bf16.mxu1 %v8403_v23  ;;  %v8413_v31 = vld [vmem:[#allocation6 + $0x380] ss:$12 sps:$4 sm:$0xff]  }
 0x2dc   :  { %v9507_v33 = vadd.f32 %v6912_v3, %v3286_v4  ;;  %v6849_v5 = vpop.f32.mrb[40].mxu0  ;;  %v6913_v6 = vpop.f32.mrb[40].mxu1  ;;  %v8399_v3 = vld [vmem:[#allocation6 + $0x378] ss:$12 sps:$4 sm:$0xff]  }
 0x2dd   :  { %v6850_v39 = vpop.f32.mrb[41].mxu0  ;;  %v6914_v40 = vpop.f32.mrb[41].mxu1  ;;  %4794 = vmatpush1.bf16.msra.mxu0 %v8387_v27  ;;  %7288 = vmatpush3.bf16.msra.mxu1 %v8403_v23 }
 0x2de   :  { %v6851_v41 = vadd.f32 %v6850_v39, %v6849_v5  ;;  %v6852_v42 = vpop.f32.mrb[42].mxu0  ;;  %v6915_v46 = vadd.f32 %v6914_v40, %v6913_v6  ;;  %v6916_v43 = vpop.f32.mrb[42].mxu1  ;;  %4795 = vmatprep.subr.bf16.mxu0 %v8392_v32  ;;  %7289 = vmatprep.subr.bf16.mxu1 %v8407_v29  ;;  %v8406_v32 = vld [vmem:[#allocation6 + $0x394] ss:$12 sps:$4 sm:$0xff]  }
 0x2df   :  { %v6853_v48 = vpop.f32.mrb[43].mxu0  ;;  %4721 = vmatmul.mubr.bf16.gmra.mrb[100].mxu0 %v9407_v12  ;;  %5042 = vmatmul.mubr.bf16.gmra.mrb[116].mxu1 %v9407_v12  ;;  %v6917_v51 = vpop.f32.mrb[43].mxu1  ;;  %v8412_v12 = vld [vmem:[#allocation6 + $0x368] ss:$12 sps:$4 sm:$0xff]  }
 0x2e0   :  { %v3291_v53 = vadd.f32 %v6851_v41, %v9488_v38  ;;  %v6854_v54 = vadd.f32 %v6853_v48, %v6852_v42  ;;  %4730 = vmatprep.mubr.bf16.mxu0 %v9421_v52  ;;  %5049 = vmatprep.mubr.bf16.mxu1 %v9421_v52  ;;  %v6918_v59 = vadd.f32 %v6917_v51, %v6916_v43  ;;  %v8396_v52 = vld [vmem:[#allocation6 + $0x360] ss:$12 sps:$4 sm:$0xff]  }
 0x2e1   :  { %4796 = vmatpush1.bf16.msra.mxu0 %v8390_v14  ;;  %7290 = vmatpush3.bf16.msra.mxu1 %v8407_v29  ;;  %v8411_v43 = vld [vmem:[#allocation6 + $0x3ac] ss:$12 sps:$4 sm:$0xff]  }
 0x2e2   :  { %v3294_v60 = vadd.f32 %v6854_v54, %v9488_v38  ;;  %v9515_v61 = vadd.f32 %v6915_v46, %v3291_v53  ;;  %4797 = vmatprep.subr.bf16.mxu0 %v8395_v44  ;;  %7291 = vmatprep.subr.bf16.mxu1 %v8408_v45  ;;  %v8415_v44 = vld [vmem:[#allocation6 + $0x3b0] ss:$12 sps:$4 sm:$0xff]  }
 0x2e4   :  { %v9517_v7 = vadd.f32 %v6918_v59, %v3294_v60  ;;  %v6855_v10 = vpop.f32.mrb[44].mxu0  ;;  %v6919_v11 = vpop.f32.mrb[44].mxu1  ;;  %v8409_v59 = vld [vmem:[#allocation6 + $0x3a8] ss:$12 sps:$4 sm:$0xff]  }
 0x2e5   :  { %v6856_v13 = vpop.f32.mrb[45].mxu0  ;;  %v6920_v15 = vpop.f32.mrb[45].mxu1  ;;  %4798 = vmatpush1.bf16.msra.mxu0 %v8393_v1  ;;  %7292 = vmatpush3.bf16.msra.mxu1 %v8408_v45 }
 0x2e6   :  { %v6857_v16 = vadd.f32 %v6856_v13, %v6855_v10  ;;  %v6858_v55 = vpop.f32.mrb[46].mxu0  ;;  %v6921_v17 = vadd.f32 %v6920_v15, %v6919_v11  ;;  %v6922_v20 = vpop.f32.mrb[46].mxu1  ;;  %4799 = vmatprep.subr.bf16.mxu0 %v8398_v19  ;;  %7293 = vmatprep.subr.bf16.mxu1 %v8412_v12 }
 0x2e7   :  { %v6859_v23 = vpop.f32.mrb[47].mxu0  ;;  %4731 = vmatmul.mubr.bf16.gmra.mrb[104].mxu0 %v9419_v50  ;;  %5050 = vmatmul.mubr.bf16.gmra.mrb[120].mxu1 %v9419_v50  ;;  %v6923_v25 = vpop.f32.mrb[47].mxu1  ;;  %v8414_v50 = vld [vmem:[#allocation6 + $0x398] ss:$12 sps:$4 sm:$0xff]  }
 0x2e8   :  { %v3299_v56 = vadd.f32 %v6857_v16, %v9488_v38  ;;  %v6860_v26 = vadd.f32 %v6859_v23, %v6858_v55  ;;  %4740 = vmatprep.mubr.bf16.mxu0 %v9433_v36  ;;  %5057 = vmatprep.mubr.bf16.mxu1 %v9433_v36  ;;  %v6924_v57 = vadd.f32 %v6923_v25, %v6922_v20  ;;  %v8404_v36 = vld [vmem:[#allocation6 + $0x390] ss:$12 sps:$4 sm:$0xff]  }
 0x2e9   :  { %4800 = vmatpush1.bf16.msra.mxu0 %v8396_v52  ;;  %7294 = vmatpush3.bf16.msra.mxu1 %v8412_v12 }
 0x2ea   :  { %v3302_v27 = vadd.f32 %v6860_v26, %v9488_v38  ;;  %v9525_v4 = vadd.f32 %v6921_v17, %v3299_v56  ;;  %4801 = vmatprep.subr.bf16.mxu0 %v8401_v21  ;;  %7295 = vmatprep.subr.bf16.mxu1 %v8413_v31 }
 0x2ec   :  { %v9527_v29 = vadd.f32 %v6924_v57, %v3302_v27  ;;  %v6861_v5 = vpop.f32.mrb[48].mxu0  ;;  %v6925_v6 = vpop.f32.mrb[48].mxu1 }
 0x2ed   :  { %v6862_v39 = vpop.f32.mrb[49].mxu0  ;;  %v6926_v40 = vpop.f32.mrb[49].mxu1  ;;  %4802 = vmatpush1.bf16.msra.mxu0 %v8399_v3  ;;  %7296 = vmatpush3.bf16.msra.mxu1 %v8413_v31 }
 0x2ee   :  { %v6863_v14 = vadd.f32 %v6862_v39, %v6861_v5  ;;  %v6864_v41 = vpop.f32.mrb[50].mxu0  ;;  %v6927_v42 = vadd.f32 %v6926_v40, %v6925_v6  ;;  %v6928_v46 = vpop.f32.mrb[50].mxu1  ;;  %4803 = vmatprep.subr.bf16.mxu0 %v8406_v32  ;;  %7297 = vmatprep.subr.bf16.mxu1 %v8414_v50 }
 0x2ef   :  { %v6865_v45 = vpop.f32.mrb[51].mxu0  ;;  %4741 = vmatmul.mubr.bf16.gmra.mrb[108].mxu0 %v9431_v58  ;;  %5058 = vmatmul.mubr.bf16.gmra.mrb[124].mxu1 %v9431_v58  ;;  %v6929_v48 = vpop.f32.mrb[51].mxu1 }
 0x2f0   :  { %v3307_v51 = vadd.f32 %v6863_v14, %v9488_v38  ;;  %v6866_v53 = vadd.f32 %v6865_v45, %v6864_v41  ;;  %4750 = vmatprep.mubr.bf16.mxu0 %v9447_v24  ;;  %5065 = vmatprep.mubr.bf16.mxu1 %v9447_v24  ;;  %v6930_v54 = vadd.f32 %v6929_v48, %v6928_v46 }
 0x2f1   :  { %4804 = vmatpush1.bf16.msra.mxu0 %v8404_v36  ;;  %7298 = vmatpush3.bf16.msra.mxu1 %v8414_v50 }
 0x2f2   :  { %v3310_v1 = vadd.f32 %v6866_v53, %v9488_v38  ;;  %v9535_v60 = vadd.f32 %v6927_v42, %v3307_v51  ;;  %4805 = vmatprep.subr.bf16.mxu0 %v8411_v43  ;;  %7299 = vmatprep.subr.bf16.mxu1 %v8415_v44 }
 0x2f4   :  { %v9537_v19 = vadd.f32 %v6930_v54, %v3310_v1  ;;  %v6867_v58 = vpop.f32.mrb[52].mxu0  ;;  %v6931_v12 = vpop.f32.mrb[52].mxu1 }
 0x2f5   :  { %v6868_v10 = vpop.f32.mrb[53].mxu0  ;;  %v6932_v11 = vpop.f32.mrb[53].mxu1  ;;  %4806 = vmatpush1.bf16.msra.mxu0 %v8409_v59  ;;  %7300 = vmatpush3.bf16.msra.mxu1 %v8415_v44 }
 0x2f6   :  { %v6869_v13 = vadd.f32 %v6868_v10, %v6867_v58  ;;  %v6870_v24 = vpop.f32.mrb[54].mxu0  ;;  %v6933_v15 = vadd.f32 %v6932_v11, %v6931_v12  ;;  %v6934_v52 = vpop.f32.mrb[54].mxu1 }
 0x2f7   :  { %v6871_v16 = vpop.f32.mrb[55].mxu0  ;;  %4751 = vmatmul.mubr.bf16.gmra.mrb[112].mxu0 %v9445_v22  ;;  %5066 = vmatmul.mubr.bf16.gmra.mrb[128].mxu1 %v9445_v22  ;;  %v6935_v55 = vpop.f32.mrb[55].mxu1 }
 0x2f8   :  { %v3315_v17 = vadd.f32 %v6869_v13, %v9488_v38  ;;  %v6872_v20 = vadd.f32 %v6871_v16, %v6870_v24  ;;  %4760 = vmatprep.mubr.bf16.mxu0 %v9460_v37  ;;  %5073 = vmatprep.mubr.bf16.mxu1 %v9460_v37  ;;  %v6936_v21 = vadd.f32 %v6935_v55, %v6934_v52 }
 0x2fa   :  { %v3318_v31 = vadd.f32 %v6872_v20, %v9488_v38  ;;  %v9545_v23 = vadd.f32 %v6933_v15, %v3315_v17 }
 0x2fc   :  { %v9547_v25 = vadd.f32 %v6936_v21, %v3318_v31  ;;  %v6873_v56 = vpop.f32.mrb[56].mxu0  ;;  %v6937_v26 = vpop.f32.mrb[56].mxu1 }
 0x2fd   :  { %v6874_v57 = vpop.f32.mrb[57].mxu0  ;;  %v6938_v3 = vpop.f32.mrb[57].mxu1 }
 0x2fe   :  { %v6875_v22 = vadd.f32 %v6874_v57, %v6873_v56  ;;  %v6876_v27 = vpop.f32.mrb[58].mxu0  ;;  %v6939_v32 = vadd.f32 %v6938_v3, %v6937_v26  ;;  %v6940_v50 = vpop.f32.mrb[58].mxu1 }
 0x2ff   :  { %v6877_v5 = vpop.f32.mrb[59].mxu0  ;;  %4761 = vmatmul.mubr.bf16.gmra.mrb[116].mxu0 %v9458_v28  ;;  %5074 = vmatmul.mubr.bf16.gmra.mrb[132].mxu1 %v9458_v28  ;;  %v6941_v37 = vpop.f32.mrb[59].mxu1 }
 0x300   :  { %v3323_v6 = vadd.f32 %v6875_v22, %v9488_v38  ;;  %v6878_v39 = vadd.f32 %v6877_v5, %v6876_v27  ;;  %4770 = vmatprep.mubr.bf16.mxu0 %v9472_v49  ;;  %5081 = vmatprep.mubr.bf16.mxu1 %v9472_v49  ;;  %v6942_v40 = vadd.f32 %v6941_v37, %v6940_v50 }
 0x302   :  { %v3326_v36 = vadd.f32 %v6878_v39, %v9488_v38  ;;  %v9555_v14 = vadd.f32 %v6939_v32, %v3323_v6 }
 0x304   :  { %v9557_v41 = vadd.f32 %v6942_v40, %v3326_v36  ;;  %v6879_v42 = vpop.f32.mrb[60].mxu0  ;;  %v6943_v46 = vpop.f32.mrb[60].mxu1 }
 0x305   :  { %v6880_v43 = vpop.f32.mrb[61].mxu0  ;;  %v6944_v44 = vpop.f32.mrb[61].mxu1 }
 0x306   :  { %v6881_v28 = vadd.f32 %v6880_v43, %v6879_v42  ;;  %v6882_v45 = vpop.f32.mrb[62].mxu0  ;;  %v6945_v48 = vadd.f32 %v6944_v44, %v6943_v46  ;;  %v6946_v51 = vpop.f32.mrb[62].mxu1 }
 0x307   :  { %v6883_v53 = vpop.f32.mrb[63].mxu0  ;;  %4771 = vmatmul.mubr.bf16.gmra.mrb[120].mxu0 %v9470_v47  ;;  %5082 = vmatmul.mubr.bf16.gmra.mrb[136].mxu1 %v9470_v47  ;;  %v6947_v49 = vpop.f32.mrb[63].mxu1 }
 0x308   :  { %v3331_v54 = vadd.f32 %v6881_v28, %v9488_v38  ;;  %v6884_v59 = vadd.f32 %v6883_v53, %v6882_v45  ;;  %4780 = vmatprep.mubr.bf16.mxu0 %v9485_v35  ;;  %5089 = vmatprep.mubr.bf16.mxu1 %v9485_v35  ;;  %v6948_v1 = vadd.f32 %v6947_v49, %v6946_v51 }
 0x30a   :  { %v3334_v58 = vadd.f32 %v6884_v59, %v9488_v38  ;;  %v9565_v12 = vadd.f32 %v6945_v48, %v3331_v54 }
 0x30c   :  { %v9567_v10 = vadd.f32 %v6948_v1, %v3334_v58  ;;  %v6965_v11 = vpop.f32.mrb[64].mxu0  ;;  %v7271_v13 = vpop.f32.mrb[64].mxu1 }
 0x30d   :  { %v6966_v24 = vpop.f32.mrb[65].mxu0  ;;  %v3565_v15 = vpop.f32.mrb[65].mxu1 }
 0x30e   :  { %v6967_v47 = vadd.f32 %v6966_v24, %v6965_v11  ;;  %v6968_v52 = vpop.f32.mrb[66].mxu0  ;;  %v7272_v16 = vpop.f32.mrb[66].mxu1 }
 0x30f   :  { %v6969_v55 = vpop.f32.mrb[67].mxu0  ;;  %4781 = vmatmul.mubr.bf16.gmra.mrb[124].mxu0 %v9483_v34  ;;  %5090 = vmatmul.mubr.bf16.gmra.mrb[140].mxu1 %v9483_v34  ;;  %v3568_v35 = vpop.f32.mrb[67].mxu1 }
 0x310   :  { %v6970_v17 = vadd.f32 %v6969_v55, %v6968_v52  ;;  %v3469_v38 = vadd.f32 %v6967_v47, %v9494_v8  ;;  %4823 = vmatprep.mubr.bf16.mxu0 %v8810_v18 }
 0x312   :  { %v3566_v20 = vadd.f32 %v3565_v15, %v3469_v38  ;;  %v3472_v21 = vadd.f32 %v6970_v17, %v9496_v9 }
 0x314   :  { %v3569_v31 = vadd.f32 %v3568_v35, %v3472_v21  ;;  %v6971_v56 = vpop.f32.mrb[68].mxu0  ;;  %v7275_v26 = vpop.f32.mrb[68].mxu1  ;;  %v3632_v22 = vmax.f32 %v3566_v20, 0.0 }
 0x315   :  { %v6972_v57 = vpop.f32.mrb[69].mxu0  ;;  %v3581_v3 = vpop.f32.mrb[69].mxu1 }
 0x316   :  { %v3637_v27 = vmax.f32 %v3569_v31, 0.0  ;;  %v6973_v32 = vadd.f32 %v6972_v57, %v6971_v56  ;;  %v6974_v50 = vpop.f32.mrb[70].mxu0  ;;  %v7276_v5 = vpop.f32.mrb[70].mxu1 }
 0x317   :  { %v6975_v34 = vpop.f32.mrb[71].mxu0  ;;  %v3584_v37 = vpop.f32.mrb[71].mxu1 }
 0x318   :  { %v3712_v6 = vpack.c.bf16 %v3637_v27, %v3632_v22  ;;  %v3477_v8 = vadd.f32 %v6973_v32, %v9505_v30  ;;  %v6976_v39 = vadd.f32 %v6975_v34, %v6974_v50 }
 0x31a   :  { %v3574_v40 = vadd.f32 %v7271_v13, %v3477_v8  ;;  %v3480_v36 = vadd.f32 %v6976_v39, %v9507_v33  ;;  %4824 = vmatmul.mubr.bf16.vlgmr.msra.gmra.mrb[96].mxu0 %v3712_v6  ;;  %7301 = vmatprep.mubr.bf16.mxu1 %v3712_v6 }
 0x31b   :  { %4833 = vmatprep.mubr.bf16.mxu0 %v8810_v18 }
 0x31c   :  { %v3577_v9 = vadd.f32 %v7272_v16, %v3480_v36  ;;  %v6977_v42 = vpop.f32.mrb[72].mxu0  ;;  %v9577_v46 = vpop.f32.mrb[72].mxu1  ;;  %v3642_v28 = vmax.f32 %v3574_v40, 0.0 }
 0x31d   :  { %v6978_v43 = vpop.f32.mrb[73].mxu0  ;;  %v3597_v44 = vpop.f32.mrb[73].mxu1 }
 0x31e   :  { %v3647_v45 = vmax.f32 %v3577_v9, 0.0  ;;  %v6979_v48 = vadd.f32 %v6978_v43, %v6977_v42  ;;  %v6980_v51 = vpop.f32.mrb[74].mxu0  ;;  %v9579_v53 = vpop.f32.mrb[74].mxu1 }
 0x31f   :  { %v6981_v30 = vpop.f32.mrb[75].mxu0  ;;  %v3600_v49 = vpop.f32.mrb[75].mxu1 }
 0x320   :  { %v6982_v54 = vadd.f32 %v6981_v30, %v6980_v51  ;;  %v3485_v33 = vadd.f32 %v6979_v48, %v9515_v61  ;;  %v3717_v59 = vpack.c.bf16 %v3647_v45, %v3642_v28  ;;  %v8416_v28 = vld [vmem:[#allocation9] ss:$8 sps:$4 sm:$0xff]   ;;  %v8418_v45 = vld [vmem:[#allocation9 + $0x4] ss:$8 sps:$4 sm:$0xff]  }
 0x321   :  { %5567 = vmatprep.subr.bf16.mxu1 %v8418_v45  ;;  %v8454_v45 = vld [vmem:[#allocation9 + $0xc4] ss:$8 sps:$4 sm:$0xff]  }
 0x322   :  { %v3582_v1 = vadd.f32 %v3581_v3, %v3485_v33  ;;  %v3488_v58 = vadd.f32 %v6982_v54, %v9517_v7  ;;  %4834 = vmatmul.mubr.bf16.gmra.mrb[100].mxu0 %v3717_v59  ;;  %7302 = vmatmul.mubr.bf16.vlgmr.msra.gmra.mrb[144].mxu1 %v3717_v59  ;;  %v8419_v59 = vld [vmem:[#allocation9 + $0x10] ss:$8 sps:$4 sm:$0xff]  }
 0x323   :  { %4843 = vmatprep.mubr.bf16.mxu0 %v8810_v18  ;;  %5568 = vmatpush1.bf16.msra.mxu1 %v8416_v28  ;;  %v8449_v28 = vld [vmem:[#allocation9 + $0xb0] ss:$8 sps:$4 sm:$0xff]  }
 0x324   :  { %v3585_v11 = vadd.f32 %v3584_v37, %v3488_v58  ;;  %v6983_v13 = vpop.f32.mrb[76].mxu0  ;;  %v9584_v24 = vpop.f32.mrb[76].mxu1  ;;  %v3652_v52 = vmax.f32 %v3582_v1, 0.0 }
 0x325   :  { %v6984_v15 = vpop.f32.mrb[77].mxu0  ;;  %v9586_v47 = vpop.f32.mrb[77].mxu1 }
 0x326   :  { %v3657_v16 = vmax.f32 %v3585_v11, 0.0  ;;  %v6985_v55 = vadd.f32 %v6984_v15, %v6983_v13  ;;  %v6986_v35 = vpop.f32.mrb[78].mxu0  ;;  %v9588_v61 = vpop.f32.mrb[78].mxu1  ;;  %v8424_v15 = vld [vmem:[#allocation9 + $0x24] ss:$8 sps:$4 sm:$0xff]  }
 0x327   :  { %v6987_v17 = vpop.f32.mrb[79].mxu0  ;;  %v9590_v38 = vpop.f32.mrb[79].mxu1 }
 0x328   :  { %v3722_v7 = vpack.c.bf16 %v3657_v16, %v3652_v52  ;;  %v3493_v20 = vadd.f32 %v6985_v55, %v9525_v4  ;;  %v6988_v21 = vadd.f32 %v6987_v17, %v6986_v35  ;;  %v8422_v52 = vld [vmem:[#allocation9 + $0x20] ss:$8 sps:$4 sm:$0xff]   ;;  %v8427_v17 = vld [vmem:[#allocation9 + $0x34] ss:$8 sps:$4 sm:$0xff]  }
 0x32a   :  { %v3590_v31 = vadd.f32 %v7275_v26, %v3493_v20  ;;  %v3496_v56 = vadd.f32 %v6988_v21, %v9527_v29  ;;  %4844 = vmatmul.mubr.bf16.gmra.mrb[104].mxu0 %v3722_v7  ;;  %7305 = vmatprep.mubr.bf16.mxu1 %v3722_v7  ;;  %v8425_v21 = vld [vmem:[#allocation9 + $0x30] ss:$8 sps:$4 sm:$0xff]  }
 0x32b   :  { %4853 = vmatprep.mubr.bf16.mxu0 %v8810_v18 }
 0x32c   :  { %v3593_v57 = vadd.f32 %v7276_v5, %v3496_v56  ;;  %v6989_v3 = vpop.f32.mrb[80].mxu0  ;;  %v3662_v27 = vmax.f32 %v3590_v31, 0.0 }
 0x32d   :  { %v6990_v22 = vpop.f32.mrb[81].mxu0 }
 0x32e   :  { %v3667_v32 = vmax.f32 %v3593_v57, 0.0  ;;  %v6991_v50 = vadd.f32 %v6990_v22, %v6989_v3  ;;  %v6992_v34 = vpop.f32.mrb[82].mxu0  ;;  %v8430_v22 = vld [vmem:[#allocation9 + $0x44] ss:$8 sps:$4 sm:$0xff]  }
 0x32f   :  { %v6993_v37 = vpop.f32.mrb[83].mxu0 }
 0x330   :  { %v6994_v6 = vadd.f32 %v6993_v37, %v6992_v34  ;;  %v3501_v8 = vadd.f32 %v6991_v50, %v9535_v60  ;;  %v3727_v4 = vpack.c.bf16 %v3667_v32, %v3662_v27  ;;  %v8433_v37 = vld [vmem:[#allocation9 + $0x54] ss:$8 sps:$4 sm:$0xff]  }
 0x332   :  { %v3598_v39 = vadd.f32 %v3597_v44, %v3501_v8  ;;  %v3504_v26 = vadd.f32 %v6994_v6, %v9537_v19  ;;  %4854 = vmatmul.mubr.bf16.gmra.mrb[108].mxu0 %v3727_v4  ;;  %7306 = vmatmul.mubr.bf16.gmra.mrb[148].mxu1 %v3727_v4  ;;  %v8431_v8 = vld [vmem:[#allocation9 + $0x50] ss:$8 sps:$4 sm:$0xff]  }
 0x333   :  { %4863 = vmatprep.mubr.bf16.mxu0 %v8810_v18 }
 0x334   :  { %v3601_v29 = vadd.f32 %v3600_v49, %v3504_v26  ;;  %v6995_v5 = vpop.f32.mrb[84].mxu0  ;;  %v3672_v40 = vmax.f32 %v3598_v39, 0.0  ;;  %v8421_v49 = vld [vmem:[#allocation9 + $0x14] ss:$8 sps:$4 sm:$0xff]   ;;  %v8436_v26 = vld [vmem:[#allocation9 + $0x64] ss:$8 sps:$4 sm:$0xff]  }
 0x335   :  { %v6996_v36 = vpop.f32.mrb[85].mxu0  ;;  %5569 = vmatprep.subr.bf16.mxu1 %v8421_v49 }
 0x336   :  { %v3677_v9 = vmax.f32 %v3601_v29, 0.0  ;;  %v6997_v42 = vadd.f32 %v6996_v36, %v6995_v5  ;;  %v6998_v43 = vpop.f32.mrb[86].mxu0  ;;  %5570 = vmatpush1.bf16.msra.mxu1 %v8419_v59  ;;  %v8442_v5 = vld [vmem:[#allocation9 + $0x84] ss:$8 sps:$4 sm:$0xff]   ;;  %v8443_v36 = vld [vmem:[#allocation9 + $0x90] ss:$8 sps:$4 sm:$0xff]  }
 0x337   :  { %v6999_v48 = vpop.f32.mrb[87].mxu0  ;;  %5571 = vmatprep.subr.bf16.mxu1 %v8424_v15  ;;  %v8460_v59 = vld [vmem:[#allocation9 + $0xe4] ss:$8 sps:$4 sm:$0xff]  }
 0x338   :  { %v3732_v51 = vpack.c.bf16 %v3677_v9, %v3672_v40  ;;  %v3509_v60 = vadd.f32 %v6997_v42, %v9545_v23  ;;  %v7000_v44 = vadd.f32 %v6999_v48, %v6998_v43  ;;  %v8440_v40 = vld [vmem:[#allocation9 + $0x80] ss:$8 sps:$4 sm:$0xff]   ;;  %v8448_v9 = vld [vmem:[#allocation9 + $0xa4] ss:$8 sps:$4 sm:$0xff]   ;;  %v8451_v43 = vld [vmem:[#allocation9 + $0xb4] ss:$8 sps:$4 sm:$0xff]  }
 0x339   :  { %v8446_v42 = vld [vmem:[#allocation9 + $0xa0] ss:$8 sps:$4 sm:$0xff]  }
 0x33a   :  { %v3606_v19 = vadd.f32 %v9577_v46, %v3509_v60  ;;  %v3512_v30 = vadd.f32 %v7000_v44, %v9547_v25  ;;  %4864 = vmatmul.mubr.bf16.gmra.mrb[112].mxu0 %v3732_v51  ;;  %7309 = vmatprep.mubr.bf16.mxu1 %v3732_v51  ;;  %v8452_v48 = vld [vmem:[#allocation9 + $0xc0] ss:$8 sps:$4 sm:$0xff]   ;;  %v8457_v51 = vld [vmem:[#allocation9 + $0xd4] ss:$8 sps:$4 sm:$0xff]  }
 0x33b   :  { %4873 = vmatprep.mubr.bf16.mxu0 %v8810_v18  ;;  %5572 = vmatpush1.bf16.msra.mxu1 %v8422_v52 }
 0x33c   :  { %v3609_v54 = vadd.f32 %v9579_v53, %v3512_v30  ;;  %v7001_v33 = vpop.f32.mrb[88].mxu0  ;;  %v3682_v58 = vmax.f32 %v3606_v19, 0.0  ;;  %5573 = vmatprep.subr.bf16.mxu1 %v8427_v17  ;;  %v8455_v19 = vld [vmem:[#allocation9 + $0xd0] ss:$8 sps:$4 sm:$0xff]  }
 0x33d   :  { %v7002_v1 = vpop.f32.mrb[89].mxu0 }
 0x33e   :  { %v3687_v23 = vmax.f32 %v3609_v54, 0.0  ;;  %v7003_v11 = vadd.f32 %v7002_v1, %v7001_v33  ;;  %v7004_v13 = vpop.f32.mrb[90].mxu0  ;;  %v8458_v1 = vld [vmem:[#allocation9 + $0xe0] ss:$8 sps:$4 sm:$0xff]  }
 0x33f   :  { %v7005_v46 = vpop.f32.mrb[91].mxu0  ;;  %5574 = vmatpush1.bf16.msra.mxu1 %v8425_v21 }
 0x340   :  { %v7006_v25 = vadd.f32 %v7005_v46, %v7004_v13  ;;  %v3517_v16 = vadd.f32 %v7003_v11, %v9555_v14  ;;  %v3737_v55 = vpack.c.bf16 %v3687_v23, %v3682_v58  ;;  %5575 = vmatprep.subr.bf16.mxu1 %v8430_v22  ;;  %v8463_v11 = vld [vmem:[#allocation9 + $0xf4] ss:$8 sps:$4 sm:$0xff]   ;;  %v8461_v46 = vld [vmem:[#allocation9 + $0xf0] ss:$8 sps:$4 sm:$0xff]  }
 0x342   :  { %v3614_v35 = vadd.f32 %v9586_v47, %v3517_v16  ;;  %v3520_v53 = vadd.f32 %v7006_v25, %v9557_v41  ;;  %4874 = vmatmul.mubr.bf16.gmra.mrb[116].mxu0 %v3737_v55  ;;  %7310 = vmatmul.mubr.bf16.gmra.mrb[152].mxu1 %v3737_v55  ;;  %v8428_v41 = vld [vmem:[#allocation9 + $0x40] ss:$8 sps:$4 sm:$0xff]  }
 0x343   :  { %4883 = vmatprep.mubr.bf16.mxu0 %v8810_v18  ;;  %5576 = vmatpush1.bf16.msra.mxu1 %v8428_v41 }
 0x344   :  { %v3617_v7 = vadd.f32 %v9590_v38, %v3520_v53  ;;  %v7007_v20 = vpop.f32.mrb[92].mxu0  ;;  %v3692_v56 = vmax.f32 %v3614_v35, 0.0  ;;  %5577 = vmatprep.subr.bf16.mxu1 %v8433_v37 }
 0x345   :  { %v7008_v31 = vpop.f32.mrb[93].mxu0 }
 0x346   :  { %v3697_v14 = vmax.f32 %v3617_v7, 0.0  ;;  %v7009_v57 = vadd.f32 %v7008_v31, %v7007_v20  ;;  %v7010_v3 = vpop.f32.mrb[94].mxu0  ;;  %v8466_v7 = vld [vmem:[#allocation9 + $0x104] ss:$8 sps:$4 sm:$0xff]  }
 0x347   :  { %v7011_v47 = vpop.f32.mrb[95].mxu0  ;;  %5578 = vmatpush1.bf16.msra.mxu1 %v8431_v8 }
 0x348   :  { %v3742_v27 = vpack.c.bf16 %v3697_v14, %v3692_v56  ;;  %v3525_v32 = vadd.f32 %v7009_v57, %v9565_v12  ;;  %v7012_v50 = vadd.f32 %v7011_v47, %v7010_v3  ;;  %v8434_v12 = vld [vmem:[#allocation9 + $0x60] ss:$8 sps:$4 sm:$0xff]   ;;  %5579 = vmatprep.subr.bf16.mxu1 %v8436_v26 }
 0x34a   :  { %v3622_v34 = vadd.f32 %v9584_v24, %v3525_v32  ;;  %v3528_v38 = vadd.f32 %v7012_v50, %v9567_v10  ;;  %4884 = vmatmul.mubr.bf16.gmra.mrb[120].mxu0 %v3742_v27  ;;  %7313 = vmatprep.mubr.bf16.mxu1 %v3742_v27  ;;  %v8439_v10 = vld [vmem:[#allocation9 + $0x74] ss:$8 sps:$4 sm:$0xff]   ;;  %v8437_v24 = vld [vmem:[#allocation9 + $0x70] ss:$8 sps:$4 sm:$0xff]  }
 0x34b   :  { %4893 = vmatprep.mubr.bf16.mxu0 %v8810_v18  ;;  %5580 = vmatpush1.bf16.msra.mxu1 %v8434_v12 }
 0x34c   :  { %v3625_v6 = vadd.f32 %v9588_v61, %v3528_v38  ;;  %v3702_v4 = vmax.f32 %v3622_v34, 0.0  ;;  %5581 = vmatprep.subr.bf16.mxu1 %v8439_v10  ;;  %v8445_v61 = vld [vmem:[#allocation9 + $0x94] ss:$8 sps:$4 sm:$0xff]  }
 0x34e   :  { %v3707_v39 = vmax.f32 %v3625_v6, 0.0 }
 0x34f   :  { %5582 = vmatpush1.bf16.msra.mxu1 %v8437_v24 }
 0x350   :  { %v3747_v29 = vpack.c.bf16 %v3707_v39, %v3702_v4  ;;  %5583 = vmatprep.subr.bf16.mxu1 %v8442_v5 }
 0x352   :  { %4894 = vmatmul.mubr.bf16.gmra.mrb[124].mxu0 %v3747_v29  ;;  %7314 = vmatmul.mubr.bf16.gmra.mrb[156].mxu1 %v3747_v29 }
 0x353   :  { %5584 = vmatpush1.bf16.msra.mxu1 %v8440_v40 }
 0x354   :  { %5585 = vmatprep.subr.bf16.mxu1 %v8445_v61 }
 0x357   :  { %5586 = vmatpush1.bf16.msra.mxu1 %v8443_v36 }
 0x358   :  { %5587 = vmatprep.subr.bf16.mxu1 %v8448_v9  ;;  %v9629_v9 = vld [vmem:[#allocation7] sm:$0x7] }
 0x35b   :  { %5588 = vmatpush1.bf16.msra.mxu1 %v8446_v42 }
 0x35c   :  { %5589 = vmatprep.subr.bf16.mxu1 %v8451_v43 }
 0x35f   :  { %5590 = vmatpush1.bf16.msra.mxu1 %v8449_v28  ;;  %v9636_v28 = vrot.slane %v9629_v9, %v577_v0 }
 0x360   :  { %5591 = vmatprep.subr.bf16.mxu1 %v8454_v45 }
 0x363   :  { %5592 = vmatpush1.bf16.msra.mxu1 %v8452_v48 }
 0x364   :  { %5593 = vmatprep.subr.bf16.mxu1 %v8457_v51 }
 0x367   :  { %5594 = vmatpush1.bf16.msra.mxu1 %v8455_v19 }
 0x368   :  { %5595 = vmatprep.subr.bf16.mxu1 %v8460_v59 }
 0x36a   :  { %v7045_v60 = vpop.f32.mrb[80].mxu1 }
 0x36b   :  { %v7046_v44 = vpop.f32.mrb[81].mxu1  ;;  %5596 = vmatpush1.bf16.msra.mxu1 %v8458_v1 }
 0x36c   :  { %v7047_v30 = vadd.f32 %v7046_v44, %v7045_v60  ;;  %v7048_v49 = vpop.f32.mrb[82].mxu1  ;;  %5597 = vmatprep.subr.bf16.mxu1 %v8463_v11 }
 0x36d   :  { %v7049_v54 = vpop.f32.mrb[83].mxu1 }
 0x36e   :  { %v7050_v33 = vadd.f32 %v7049_v54, %v7048_v49  ;;  %v4939_v51 = vadd.f32 %v7047_v30, %v9636_v28 }
 0x36f   :  { %5598 = vmatpush1.bf16.msra.mxu1 %v8461_v46 }
 0x370   :  { %5680 = vmatprep.subr.bf16.mxu1 %v8466_v7  ;;  %v4942_v49 = vadd.f32 %v7050_v33, %v9636_v28 }
 0x372   :  { %v7051_v58 = vpop.f32.mrb[84].mxu1 }
 0x373   :  { %v7052_v23 = vpop.f32.mrb[85].mxu1 }
 0x374   :  { %v7053_v13 = vadd.f32 %v7052_v23, %v7051_v58  ;;  %v7054_v15 = vpop.f32.mrb[86].mxu1 }
 0x375   :  { %v7055_v52 = vpop.f32.mrb[87].mxu1 }
 0x376   :  { %v7056_v25 = vadd.f32 %v7055_v52, %v7054_v15  ;;  %v4947_v62 = vadd.f32 %v7053_v13, %v9636_v28 }
 0x378   :  { %v4950_v46 = vadd.f32 %v7056_v25, %v9636_v28 }
 0x37a   :  { %v7057_v16 = vpop.f32.mrb[88].mxu1 }
 0x37b   :  { %v7058_v55 = vpop.f32.mrb[89].mxu1 }
 0x37c   :  { %v7059_v35 = vadd.f32 %v7058_v55, %v7057_v16  ;;  %v7060_v53 = vpop.f32.mrb[90].mxu1 }
 0x37d   :  { %v7061_v17 = vpop.f32.mrb[91].mxu1 }
 0x37e   :  { %v7062_v20 = vadd.f32 %v7061_v17, %v7060_v53  ;;  %v4955_v53 = vadd.f32 %v7059_v35, %v9636_v28 }
 0x382   :  { %v7063_v21 = vpop.f32.mrb[92].mxu1 }
 0x383   :  { %v7064_v31 = vpop.f32.mrb[93].mxu1 }
 0x384   :  { %v7065_v56 = vadd.f32 %v7064_v31, %v7063_v21  ;;  %v7066_v14 = vpop.f32.mrb[94].mxu1  ;;  %v4958_v31 = vadd.f32 %v7062_v20, %v9636_v28 }
 0x385   :  { %v7067_v57 = vpop.f32.mrb[95].mxu1 }
 0x386   :  { %v9613_v3 = vadd.f32 %v7067_v57, %v7066_v14 }
 0x388   :  { %v4966_v35 = vadd.f32 %v9613_v3, %v9636_v28 }
 0x38a   :  { %v7069_v22 = vpop.f32.mrb[96].mxu1 }
 0x38b   :  { %v7070_v47 = vpop.f32.mrb[97].mxu1 }
 0x38c   :  { %v9615_v41 = vadd.f32 %v7070_v47, %v7069_v22  ;;  %v7072_v27 = vpop.f32.mrb[98].mxu1  ;;  %v4963_v47 = vadd.f32 %v7065_v56, %v9636_v28 }
 0x38d   :  { %v7073_v32 = vpop.f32.mrb[99].mxu1 }
 0x38e   :  { %v9617_v50 = vadd.f32 %v7073_v32, %v7072_v27 }
 0x390   :  { %v4974_v56 = vadd.f32 %v9617_v50, %v9636_v28 }
 0x392   :  { %v7075_v34 = vpop.f32.mrb[100].mxu1 }
 0x393   :  { %v7076_v38 = vpop.f32.mrb[101].mxu1 }
 0x394   :  { %v9619_v37 = vadd.f32 %v7076_v38, %v7075_v34  ;;  %v7078_v6 = vpop.f32.mrb[102].mxu1 }
 0x395   :  { %v7079_v8 = vpop.f32.mrb[103].mxu1 }
 0x396   :  { %v9621_v4 = vadd.f32 %v7079_v8, %v7078_v6 }
 0x39a   :  { %v7081_v39 = vpop.f32.mrb[104].mxu1 }
 0x39b   :  { %v7082_v26 = vpop.f32.mrb[105].mxu1 }
 0x39c   :  { %v9623_v12 = vadd.f32 %v7082_v26, %v7081_v39  ;;  %v7084_v29 = vpop.f32.mrb[106].mxu1  ;;  %v4971_v26 = vadd.f32 %v9615_v41, %v9636_v28  ;;  %v4982_v41 = vadd.f32 %v9621_v4, %v9636_v28 }
 0x39d   :  { %v7085_v10 = vpop.f32.mrb[107].mxu1 }
 0x39e   :  { %v9625_v24 = vadd.f32 %v7085_v10, %v7084_v29 }
 0x3a2   :  { %v7087_v5 = vpop.f32.mrb[108].mxu1 }
 0x3a3   :  { %v7088_v40 = vpop.f32.mrb[109].mxu1 }
 0x3a4   :  { %v9627_v61 = vadd.f32 %v7088_v40, %v7087_v5  ;;  %v7090_v36 = vpop.f32.mrb[110].mxu1 }
 0x3a5   :  { %v7091_v42 = vpop.f32.mrb[111].mxu1 }
 0x3a6   :  { %v9631_v43 = vadd.f32 %v7091_v42, %v7090_v36 }
 0x3aa   :  { %v7109_v45 = vpop.f32.mrb[112].mxu1 }
 0x3ab   :  { %v7110_v48 = vpop.f32.mrb[113].mxu1 }
 0x3ac   :  { %v7111_v60 = vadd.f32 %v7110_v48, %v7109_v45  ;;  %v7112_v44 = vpop.f32.mrb[114].mxu1  ;;  %v4979_v48 = vadd.f32 %v9619_v37, %v9636_v28  ;;  %v4990_v37 = vadd.f32 %v9625_v24, %v9636_v28 }
 0x3ad   :  { %v7113_v19 = vpop.f32.mrb[115].mxu1 }
 0x3ae   :  { %v7114_v54 = vadd.f32 %v7113_v19, %v7112_v44  ;;  %v9640_v59 = vadd.f32 %v7111_v60, %v4939_v51 }
 0x3b0   :  { %v9642_v1 = vadd.f32 %v7114_v54, %v4942_v49 }
 0x3b2   :  { %v7115_v58 = vpop.f32.mrb[116].mxu1 }
 0x3b3   :  { %v7116_v23 = vpop.f32.mrb[117].mxu1 }
 0x3b4   :  { %v7117_v0 = vadd.f32 %v7116_v23, %v7115_v58  ;;  %v7118_v11 = vpop.f32.mrb[118].mxu1  ;;  %v4987_v23 = vadd.f32 %v9623_v12, %v9636_v28  ;;  %v4998_v12 = vadd.f32 %v9631_v43, %v9636_v28 }
 0x3b5   :  { %v7119_v15 = vpop.f32.mrb[119].mxu1 }
 0x3b6   :  { %v7120_v30 = vadd.f32 %v7119_v15, %v7118_v11  ;;  %v9646_v52 = vadd.f32 %v7117_v0, %v4947_v62 }
 0x3b8   :  { %v9648_v16 = vadd.f32 %v7120_v30, %v4950_v46 }
 0x3ba   :  { %v7121_v33 = vpop.f32.mrb[120].mxu1 }
 0x3bb   :  { %v7122_v55 = vpop.f32.mrb[121].mxu1 }
 0x3bc   :  { %v7123_v17 = vadd.f32 %v7122_v55, %v7121_v33  ;;  %v7124_v7 = vpop.f32.mrb[122].mxu1  ;;  %v4995_v55 = vadd.f32 %v9627_v61, %v9636_v28 }
 0x3bd   :  { %v7125_v21 = vpop.f32.mrb[123].mxu1 }
 0x3be   :  { %v7126_v13 = vadd.f32 %v7125_v21, %v7124_v7  ;;  %v9652_v14 = vadd.f32 %v7123_v17, %v4955_v53 }
 0x3c0   :  { %v9654_v57 = vadd.f32 %v7126_v13, %v4958_v31  ;;  %v9697_v13 = vrot.slane %v9629_v9, %v9362_v63 }
 0x3c2   :  { %v7127_v25 = vpop.f32.mrb[124].mxu1 }
 0x3c3   :  { %v7128_v22 = vpop.f32.mrb[125].mxu1 }
 0x3c4   :  { %v7129_v27 = vadd.f32 %v7128_v22, %v7127_v25  ;;  %v7130_v32 = vpop.f32.mrb[126].mxu1  ;;  %v9701_v25 = vrot.slane %v9629_v9, %v9368_v2 }
 0x3c5   :  { %v7131_v34 = vpop.f32.mrb[127].mxu1 }
 0x3c6   :  { %v7132_v38 = vadd.f32 %v7131_v34, %v7130_v32  ;;  %v9659_v6 = vadd.f32 %v7129_v27, %v4963_v47  ;;  %v8488_v34 = vld [vmem:[#allocation12 + $0x40] sm:$0xff]  }
 0x3c7   :  { %7173 = vmatprep.subr.bf16.mxu0 %v8488_v34 }
 0x3c8   :  { %v9661_v8 = vadd.f32 %v7132_v38, %v4966_v35  ;;  %v8489_v35 = vld [vmem:[#allocation12] sm:$0xff]   ;;  %v8490_v38 = vld [vmem:[#allocation12 + $0x48] sm:$0xff]  }
 0x3c9   :  { %7174 = vmatpush3.bf16.msra.mxu0 %v8489_v35 }
 0x3ca   :  { %v7133_v20 = vpop.f32.mrb[128].mxu1  ;;  %7175 = vmatprep.subr.bf16.mxu0 %v8490_v38  ;;  %v8470_v38 = vld [vmem:[#allocation9 + $0x120] ss:$8 sps:$4 sm:$0xff]  }
 0x3cb   :  { %v7134_v39 = vpop.f32.mrb[129].mxu1 }
 0x3cc   :  { %v7135_v29 = vadd.f32 %v7134_v39, %v7133_v20  ;;  %v7136_v10 = vpop.f32.mrb[130].mxu1 }
 0x3cd   :  { %v7137_v5 = vpop.f32.mrb[131].mxu1 }
 0x3ce   :  { %v7138_v40 = vadd.f32 %v7137_v5, %v7136_v10  ;;  %v9667_v36 = vadd.f32 %v7135_v29, %v4971_v26  ;;  %v8491_v10 = vld [vmem:[#allocation12 + $0x8] sm:$0xff]  }
 0x3cf   :  { %7176 = vmatpush3.bf16.msra.mxu0 %v8491_v10  ;;  %v8497_v10 = vld [vmem:[#allocation12 + $0x20] sm:$0xff]  }
 0x3d0   :  { %v9669_v3 = vadd.f32 %v7138_v40, %v4974_v56  ;;  %v8492_v56 = vld [vmem:[#allocation12 + $0x50] sm:$0xff]  }
 0x3d1   :  { %7177 = vmatprep.subr.bf16.mxu0 %v8492_v56 }
 0x3d2   :  { %v7139_v42 = vpop.f32.mrb[132].mxu1 }
 0x3d3   :  { %v7140_v45 = vpop.f32.mrb[133].mxu1 }
 0x3d4   :  { %v7141_v51 = vadd.f32 %v7140_v45, %v7139_v42  ;;  %v7142_v60 = vpop.f32.mrb[134].mxu1 }
 0x3d5   :  { %v7143_v44 = vpop.f32.mrb[135].mxu1 }
 0x3d6   :  { %v7144_v19 = vadd.f32 %v7143_v44, %v7142_v60  ;;  %v9675_v49 = vadd.f32 %v7141_v51, %v4979_v48  ;;  %v8464_v48 = vld [vmem:[#allocation9 + $0x100] ss:$8 sps:$4 sm:$0xff]  }
 0x3d8   :  { %v9677_v50 = vadd.f32 %v7144_v19, %v4982_v41  ;;  %v8469_v19 = vld [vmem:[#allocation9 + $0x114] ss:$8 sps:$4 sm:$0xff]  }
 0x3da   :  { %v7145_v54 = vpop.f32.mrb[136].mxu1 }
 0x3db   :  { %v7146_v58 = vpop.f32.mrb[137].mxu1 }
 0x3dc   :  { %v7147_v62 = vadd.f32 %v7146_v58, %v7145_v54  ;;  %v7148_v0 = vpop.f32.mrb[138].mxu1 }
 0x3dd   :  { %v7149_v11 = vpop.f32.mrb[139].mxu1 }
 0x3de   :  { %v7150_v15 = vadd.f32 %v7149_v11, %v7148_v0  ;;  %v9683_v46 = vadd.f32 %v7147_v62, %v4987_v23  ;;  %v8493_v0 = vld [vmem:[#allocation12 + $0x10] sm:$0xff]  }
 0x3df   :  { %7178 = vmatpush3.bf16.msra.mxu0 %v8493_v0 }
 0x3e0   :  { %v9685_v4 = vadd.f32 %v7150_v15, %v4990_v37 }
 0x3e2   :  { %v7151_v30 = vpop.f32.mrb[140].mxu1 }
 0x3e3   :  { %v7152_v33 = vpop.f32.mrb[141].mxu1 }
 0x3e4   :  { %v7153_v53 = vadd.f32 %v7152_v33, %v7151_v30  ;;  %v7154_v17 = vpop.f32.mrb[142].mxu1 }
 0x3e5   :  { %v7155_v7 = vpop.f32.mrb[143].mxu1 }
 0x3e6   :  { %v7156_v21 = vadd.f32 %v7155_v7, %v7154_v17  ;;  %v9691_v31 = vadd.f32 %v7153_v53, %v4995_v55 }
 0x3e8   :  { %v9693_v24 = vadd.f32 %v7156_v21, %v4998_v12  ;;  %v8472_v21 = vld [vmem:[#allocation9 + $0x124] ss:$8 sps:$4 sm:$0xff]  }
 0x3ed   :  { %v4825_v61 = vpop.f32.mrb[96].mxu0 }
 0x3ee   :  { %v7413_v22 = vadd.f32 %v4825_v61, %v9697_v13  ;;  %v4827_v47 = vpop.f32.mrb[97].mxu0 }
 0x3ef   :  { %v7414_v27 = vadd.f32 %v4827_v47, %v9701_v25  ;;  %v4829_v43 = vpop.f32.mrb[98].mxu0 }
 0x3f0   :  { %v7415_v28 = vadd.f32 %v4829_v43, %v9697_v13  ;;  %v4831_v32 = vpop.f32.mrb[99].mxu0  ;;  %v5195_v39 = vmax.f32 %v7413_v22, 0.0 }
 0x3f1   :  { %v7416_v20 = vadd.f32 %v4831_v32, %v9701_v25  ;;  %v5196_v9 = vmax.f32 %v7414_v27, 0.0  ;;  %v8495_v27 = vld [vmem:[#allocation12 + $0x18] sm:$0xff]   ;;  %v8496_v32 = vld [vmem:[#allocation12 + $0x60] sm:$0xff]  }
 0x3f2   :  { %v5198_v26 = vmax.f32 %v7415_v28, 0.0 }
 0x3f3   :  { %v5199_v29 = vmax.f32 %v7416_v20, 0.0 }
 0x3f4   :  { %v5243_v5 = vpack.c.bf16 %v5198_v26, %v5195_v39  ;;  %v8475_v26 = vld [vmem:[#allocation9 + $0x134] ss:$8 sps:$4 sm:$0xff]  }
 0x3f5   :  { %v5244_v40 = vpack.c.bf16 %v5199_v29, %v5196_v9  ;;  %v4835_v42 = vpop.f32.mrb[100].mxu0  ;;  %v7303_v45 = vpop.f32.mrb[144].mxu1 }
 0x3f6   :  { %v7417_v51 = vadd.f32 %v4835_v42, %v9697_v13  ;;  %v5141_v60 = vadd.f32 %v7303_v45, %v9646_v52  ;;  %v4837_v44 = vpop.f32.mrb[101].mxu0  ;;  %v5132_v41 = vpop.f32.mrb[145].mxu1  ;;  %v8494_v52 = vld [vmem:[#allocation12 + $0x58] sm:$0xff]  }
 0x3f7   :  { %v7418_v54 = vadd.f32 %v4837_v44, %v9701_v25  ;;  %v5133_v58 = vadd.f32 %v5132_v41, %v9640_v59  ;;  %v4839_v23 = vpop.f32.mrb[102].mxu0  ;;  %v7304_v62 = vpop.f32.mrb[146].mxu1  ;;  %5599 = vmatprep.mubr.bf16.mxu1 %v5244_v40  ;;  %v8467_v59 = vld [vmem:[#allocation9 + $0x110] ss:$8 sps:$4 sm:$0xff]   ;;  %7179 = vmatprep.subr.bf16.mxu0 %v8494_v52 }
 0x3f8   :  { %v7419_v11 = vadd.f32 %v4839_v23, %v9697_v13  ;;  %v5144_v37 = vadd.f32 %v7304_v62, %v9648_v16  ;;  %v4841_v15 = vpop.f32.mrb[103].mxu0  ;;  %v5135_v30 = vpop.f32.mrb[147].mxu1  ;;  %5600 = vmatmul.mubr.bf16.vlgmr.msra.gmra.mrb[160].mxu1 %v5243_v5  ;;  %v5201_v53 = vmax.f32 %v7417_v51, 0.0  ;;  %v5203_v17 = vmax.f32 %v5141_v60, 0.0  ;;  %7180 = vmatpush3.bf16.msra.mxu0 %v8495_v27  ;;  %v8498_v40 = vld [vmem:[#allocation12 + $0x68] sm:$0xff]  }
 0x3f9   :  { %v7420_v33 = vadd.f32 %v4841_v15, %v9701_v25  ;;  %v5136_v55 = vadd.f32 %v5135_v30, %v9642_v1  ;;  %5681 = vmatpush1.bf16.msra.mxu1 %v8464_v48  ;;  %v5202_v61 = vmax.f32 %v7418_v54, 0.0  ;;  %v5197_v22 = vmax.f32 %v5133_v58, 0.0  ;;  %7181 = vmatprep.subr.bf16.mxu0 %v8496_v32  ;;  %v8473_v45 = vld [vmem:[#allocation9 + $0x130] ss:$8 sps:$4 sm:$0xff]   ;;  %v8478_v60 = vld [vmem:[#allocation9 + $0x144] ss:$8 sps:$4 sm:$0xff]  }
 0x3fa   :  { %v5204_v7 = vmax.f32 %v7419_v11, 0.0  ;;  %v5206_v12 = vmax.f32 %v5144_v37, 0.0  ;;  %5682 = vmatprep.subr.bf16.mxu1 %v8469_v19  ;;  %v8499_v19 = vld [vmem:[#allocation12 + $0x28] sm:$0xff]   ;;  %v8500_v58 = vld [vmem:[#allocation12 + $0x70] sm:$0xff]  }
 0x3fb   :  { %v5205_v16 = vmax.f32 %v7420_v33, 0.0  ;;  %v5200_v47 = vmax.f32 %v5136_v55, 0.0  ;;  %v8476_v11 = vld [vmem:[#allocation9 + $0x140] ss:$8 sps:$4 sm:$0xff]   ;;  %v8481_v33 = vld [vmem:[#allocation9 + $0x154] ss:$8 sps:$4 sm:$0xff]  }
 0x3fc   :  { %v5246_v43 = vpack.c.bf16 %v5204_v7, %v5201_v53  ;;  %v9715_v28 = vpack.c.bf16 %v5206_v12, %v5203_v17  ;;  %7182 = vmatpush3.bf16.msra.mxu0 %v8497_v10  ;;  %v8501_v7 = vld [vmem:[#allocation12 + $0x30] sm:$0xff]   ;;  %v8482_v10 = vld [vmem:[#allocation9 + $0x160] ss:$8 sps:$4 sm:$0xff]  }
 0x3fd   :  { %v5247_v1 = vpack.c.bf16 %v5205_v16, %v5202_v61  ;;  %v9717_v34 = vpack.c.bf16 %v5200_v47, %v5197_v22  ;;  %v4845_v35 = vpop.f32.mrb[104].mxu0  ;;  %5683 = vmatpush1.bf16.msra.mxu1 %v8467_v59  ;;  %7183 = vmatprep.subr.bf16.mxu0 %v8498_v40  ;;  %v8479_v47 = vld [vmem:[#allocation9 + $0x150] ss:$8 sps:$4 sm:$0xff]   ;;  %v8487_v40 = vld [vmem:[#allocation9 + $0x174] ss:$8 sps:$4 sm:$0xff]  }
 0x3fe   :  { %v7421_v20 = vadd.f32 %v4845_v35, %v9697_v13  ;;  %v4847_v39 = vpop.f32.mrb[105].mxu0  ;;  %5684 = vmatprep.subr.bf16.mxu1 %v8472_v21 }
 0x3ff   :  { %v7422_v9 = vadd.f32 %v4847_v39, %v9701_v25  ;;  %v4849_v29 = vpop.f32.mrb[106].mxu0  ;;  %5609 = vmatprep.mubr.bf16.mxu1 %v5247_v1  ;;  %v8484_v1 = vld [vmem:[#allocation9 + $0x164] ss:$8 sps:$4 sm:$0xff]  }
 0x400   :  { %v7423_v5 = vadd.f32 %v4849_v29, %v9697_v13  ;;  %v4851_v56 = vpop.f32.mrb[107].mxu0  ;;  %5610 = vmatmul.mubr.bf16.gmra.mrb[164].mxu1 %v5246_v43  ;;  %v5207_v48 = vmax.f32 %v7421_v20, 0.0  ;;  %7184 = vmatpush3.bf16.msra.mxu0 %v8499_v19 }
 0x401   :  { %v7424_v42 = vadd.f32 %v4851_v56, %v9701_v25  ;;  %5685 = vmatpush1.bf16.msra.mxu1 %v8470_v38  ;;  %v5208_v44 = vmax.f32 %v7422_v9, 0.0  ;;  %7185 = vmatprep.subr.bf16.mxu0 %v8500_v58 }
 0x402   :  { %v5210_v51 = vmax.f32 %v7423_v5, 0.0  ;;  %5686 = vmatprep.subr.bf16.mxu1 %v8475_v26 }
 0x403   :  { %v5211_v41 = vmax.f32 %v7424_v42, 0.0 }
 0x404   :  { %v5249_v54 = vpack.c.bf16 %v5210_v51, %v5207_v48  ;;  %7186 = vmatpush3.bf16.msra.mxu0 %v8501_v7 }
 0x405   :  { %v5250_v23 = vpack.c.bf16 %v5211_v41, %v5208_v44  ;;  %v4855_v62 = vpop.f32.mrb[108].mxu0  ;;  %v7307_v0 = vpop.f32.mrb[148].mxu1  ;;  %5687 = vmatpush1.bf16.msra.mxu1 %v8473_v45  ;;  %v8485_v44 = vld [vmem:[#allocation9 + $0x170] ss:$8 sps:$4 sm:$0xff]  }
 0x406   :  { %v7425_v37 = vadd.f32 %v4855_v62, %v9697_v13  ;;  %v5157_v15 = vadd.f32 %v7307_v0, %v9659_v6  ;;  %v4857_v30 = vpop.f32.mrb[109].mxu0  ;;  %v5148_v52 = vpop.f32.mrb[149].mxu1  ;;  %5688 = vmatprep.subr.bf16.mxu1 %v8478_v60 }
 0x407   :  { %v7426_v55 = vadd.f32 %v4857_v30, %v9701_v25  ;;  %v5149_v59 = vadd.f32 %v5148_v52, %v9652_v14  ;;  %v4859_v53 = vpop.f32.mrb[110].mxu0  ;;  %v7308_v17 = vpop.f32.mrb[150].mxu1  ;;  %5619 = vmatprep.mubr.bf16.mxu1 %v5250_v23 }
 0x408   :  { %v7427_v12 = vadd.f32 %v4859_v53, %v9697_v13  ;;  %v5160_v21 = vadd.f32 %v7308_v17, %v9661_v8  ;;  %v4861_v61 = vpop.f32.mrb[111].mxu0  ;;  %v5151_v22 = vpop.f32.mrb[151].mxu1  ;;  %5620 = vmatmul.mubr.bf16.gmra.mrb[168].mxu1 %v5249_v54  ;;  %v5213_v14 = vmax.f32 %v7425_v37, 0.0  ;;  %v5215_v27 = vmax.f32 %v5157_v15, 0.0 }
 0x409   :  { %v7428_v6 = vadd.f32 %v4861_v61, %v9701_v25  ;;  %v5152_v16 = vadd.f32 %v5151_v22, %v9654_v57  ;;  %5689 = vmatpush1.bf16.msra.mxu1 %v8476_v11  ;;  %v5214_v35 = vmax.f32 %v7426_v55, 0.0  ;;  %v5209_v38 = vmax.f32 %v5149_v59, 0.0 }
 0x40a   :  { %v5216_v43 = vmax.f32 %v7427_v12, 0.0  ;;  %v5218_v32 = vmax.f32 %v5160_v21, 0.0  ;;  %5690 = vmatprep.subr.bf16.mxu1 %v8481_v33 }
 0x40b   :  { %v5217_v20 = vmax.f32 %v7428_v6, 0.0  ;;  %v5212_v8 = vmax.f32 %v5152_v16, 0.0 }
 0x40c   :  { %v5252_v39 = vpack.c.bf16 %v5216_v43, %v5213_v14  ;;  %v9731_v26 = vpack.c.bf16 %v5218_v32, %v5215_v27 }
 0x40d   :  { %v5253_v9 = vpack.c.bf16 %v5217_v20, %v5214_v35  ;;  %v9733_v29 = vpack.c.bf16 %v5212_v8, %v5209_v38  ;;  %v4865_v57 = vpop.f32.mrb[112].mxu0  ;;  %5691 = vmatpush1.bf16.msra.mxu1 %v8479_v47 }
 0x40e   :  { %v7429_v5 = vadd.f32 %v4865_v57, %v9697_v13  ;;  %v4867_v56 = vpop.f32.mrb[113].mxu0  ;;  %5692 = vmatprep.subr.bf16.mxu1 %v8484_v1 }
 0x40f   :  { %v7430_v42 = vadd.f32 %v4867_v56, %v9701_v25  ;;  %v4869_v45 = vpop.f32.mrb[114].mxu0  ;;  %5629 = vmatprep.mubr.bf16.mxu1 %v5253_v9 }
 0x410   :  { %v7431_v48 = vadd.f32 %v4869_v45, %v9697_v13  ;;  %v4871_v51 = vpop.f32.mrb[115].mxu0  ;;  %5630 = vmatmul.mubr.bf16.gmra.mrb[172].mxu1 %v5252_v39  ;;  %v5219_v41 = vmax.f32 %v7429_v5, 0.0 }
 0x411   :  { %v7432_v60 = vadd.f32 %v4871_v51, %v9701_v25  ;;  %5693 = vmatpush1.bf16.msra.mxu1 %v8482_v10  ;;  %v5220_v54 = vmax.f32 %v7430_v42, 0.0 }
 0x412   :  { %v5222_v19 = vmax.f32 %v7431_v48, 0.0  ;;  %5694 = vmatprep.subr.bf16.mxu1 %v8487_v40 }
 0x413   :  { %v5223_v58 = vmax.f32 %v7432_v60, 0.0 }
 0x414   :  { %v5255_v23 = vpack.c.bf16 %v5222_v19, %v5219_v41 }
 0x415   :  { %v5256_v62 = vpack.c.bf16 %v5223_v58, %v5220_v54  ;;  %v4875_v0 = vpop.f32.mrb[116].mxu0  ;;  %v7311_v11 = vpop.f32.mrb[152].mxu1  ;;  %5695 = vmatpush1.bf16.msra.mxu1 %v8485_v44 }
 0x416   :  { %v7433_v37 = vadd.f32 %v4875_v0, %v9697_v13  ;;  %v5173_v15 = vadd.f32 %v7311_v11, %v9675_v49  ;;  %v4877_v30 = vpop.f32.mrb[117].mxu0  ;;  %v5164_v52 = vpop.f32.mrb[153].mxu1 }
 0x417   :  { %v7434_v33 = vadd.f32 %v4877_v30, %v9701_v25  ;;  %v5165_v55 = vadd.f32 %v5164_v52, %v9667_v36  ;;  %v4879_v59 = vpop.f32.mrb[118].mxu0  ;;  %v7312_v53 = vpop.f32.mrb[154].mxu1  ;;  %5639 = vmatprep.mubr.bf16.mxu1 %v5256_v62 }
 0x418   :  { %v7435_v17 = vadd.f32 %v4879_v59, %v9697_v13  ;;  %v5176_v7 = vadd.f32 %v7312_v53, %v9677_v50  ;;  %v4881_v12 = vpop.f32.mrb[119].mxu0  ;;  %v5167_v21 = vpop.f32.mrb[155].mxu1  ;;  %5640 = vmatmul.mubr.bf16.gmra.mrb[176].mxu1 %v5255_v23  ;;  %v5225_v22 = vmax.f32 %v7433_v37, 0.0  ;;  %v5227_v6 = vmax.f32 %v5173_v15, 0.0 }
 0x419   :  { %v7436_v61 = vadd.f32 %v4881_v12, %v9701_v25  ;;  %v5168_v49 = vadd.f32 %v5167_v21, %v9669_v3  ;;  %v5226_v14 = vmax.f32 %v7434_v33, 0.0  ;;  %v5221_v36 = vmax.f32 %v5165_v55, 0.0 }
 0x41a   :  { %v5228_v16 = vmax.f32 %v7435_v17, 0.0  ;;  %v5230_v47 = vmax.f32 %v5176_v7, 0.0 }
 0x41b   :  { %v5229_v27 = vmax.f32 %v7436_v61, 0.0  ;;  %v5224_v43 = vmax.f32 %v5168_v49, 0.0 }
 0x41c   :  { %v5258_v32 = vpack.c.bf16 %v5228_v16, %v5225_v22  ;;  %v5260_v1 = vpack.c.bf16 %v5230_v47, %v5227_v6 }
 0x41d   :  { %v5259_v35 = vpack.c.bf16 %v5229_v27, %v5226_v14  ;;  %v5257_v38 = vpack.c.bf16 %v5224_v43, %v5221_v36  ;;  %v4885_v50 = vpop.f32.mrb[120].mxu0 }
 0x41e   :  { %v7437_v20 = vadd.f32 %v4885_v50, %v9697_v13  ;;  %v4887_v8 = vpop.f32.mrb[121].mxu0 }
 0x41f   :  { %v7438_v39 = vadd.f32 %v4887_v8, %v9701_v25  ;;  %v4889_v9 = vpop.f32.mrb[122].mxu0  ;;  %5649 = vmatprep.mubr.bf16.mxu1 %v5259_v35 }
 0x420   :  { %v7439_v3 = vadd.f32 %v4889_v9, %v9697_v13  ;;  %v4891_v57 = vpop.f32.mrb[123].mxu0  ;;  %5650 = vmatmul.mubr.bf16.gmra.mrb[180].mxu1 %v5258_v32  ;;  %v5231_v5 = vmax.f32 %v7437_v20, 0.0  ;;  %v8505_v20 = vld [vmem:[#allocation15 + $0x8] sm:$0xff]  }
 0x421   :  { %v7440_v10 = vadd.f32 %v4891_v57, %v9701_v25  ;;  %v5232_v40 = vmax.f32 %v7438_v39, 0.0 }
 0x422   :  { %v5234_v56 = vmax.f32 %v7439_v3, 0.0 }
 0x423   :  { %v5235_v42 = vmax.f32 %v7440_v10, 0.0 }
 0x424   :  { %v5261_v45 = vpack.c.bf16 %v5234_v56, %v5231_v5  ;;  %v8506_v56 = vld [vmem:[#allocation15 + $0x10] sm:$0xff]  }
 0x425   :  { %v5262_v48 = vpack.c.bf16 %v5235_v42, %v5232_v40  ;;  %v4895_v51 = vpop.f32.mrb[124].mxu0  ;;  %v7315_v60 = vpop.f32.mrb[156].mxu1 }
 0x426   :  { %v7441_v44 = vadd.f32 %v4895_v51, %v9697_v13  ;;  %v5189_v41 = vadd.f32 %v7315_v60, %v9691_v31  ;;  %v4897_v19 = vpop.f32.mrb[125].mxu0  ;;  %v5180_v54 = vpop.f32.mrb[157].mxu1 }
 0x427   :  { %v7442_v58 = vadd.f32 %v4897_v19, %v9701_v25  ;;  %v5181_v23 = vadd.f32 %v5180_v54, %v9683_v46  ;;  %v4899_v62 = vpop.f32.mrb[126].mxu0  ;;  %v7316_v0 = vpop.f32.mrb[158].mxu1  ;;  %5659 = vmatprep.mubr.bf16.mxu1 %v5262_v48 }
 0x428   :  { %v7443_v11 = vadd.f32 %v4899_v62, %v9697_v13  ;;  %v5192_v37 = vadd.f32 %v7316_v0, %v9693_v24  ;;  %v4901_v15 = vpop.f32.mrb[127].mxu0  ;;  %v5183_v30 = vpop.f32.mrb[159].mxu1  ;;  %5660 = vmatmul.mubr.bf16.gmra.mrb[184].mxu1 %v5261_v45  ;;  %v5237_v33 = vmax.f32 %v7441_v44, 0.0  ;;  %v5239_v55 = vmax.f32 %v5189_v41, 0.0  ;;  %v8503_v24 = vld [vmem:[#allocation12 + $0x38] sm:$0xff]  }
 0x429   :  { %v7444_v52 = vadd.f32 %v4901_v15, %v9701_v25  ;;  %v5184_v31 = vadd.f32 %v5183_v30, %v9685_v4  ;;  %v5238_v17 = vmax.f32 %v7442_v58, 0.0  ;;  %v5233_v46 = vmax.f32 %v5181_v23, 0.0  ;;  %v8502_v4 = vld [vmem:[#allocation12 + $0x78] sm:$0xff]   ;;  %v8504_v25 = vld [vmem:[#allocation15] sm:$0xff]  }
 0x42a   :  { %v5240_v59 = vmax.f32 %v7443_v11, 0.0  ;;  %v5242_v53 = vmax.f32 %v5192_v37, 0.0  ;;  %7187 = vmatprep.subr.bf16.mxu0 %v8502_v4 }
 0x42b   :  { %v5241_v7 = vmax.f32 %v7444_v52, 0.0  ;;  %v5236_v12 = vmax.f32 %v5184_v31, 0.0  ;;  %7188 = vmatpush3.bf16.msra.mxu0 %v8503_v24 }
 0x42c   :  { %v5264_v21 = vpack.c.bf16 %v5240_v59, %v5237_v33  ;;  %v5266_v61 = vpack.c.bf16 %v5242_v53, %v5239_v55  ;;  %7317 = vmatprep.subr.bf16.mxu0 %v8504_v25 }
 0x42d   :  { %v5265_v13 = vpack.c.bf16 %v5241_v7, %v5238_v17  ;;  %v5263_v49 = vpack.c.bf16 %v5236_v12, %v5233_v46 }
 0x42f   :  { %5669 = vmatprep.mubr.bf16.mxu1 %v5265_v13 }
 0x430   :  { %5670 = vmatmul.mubr.bf16.gmra.mrb[188].mxu1 %v5264_v21 }
 0x431   :  { %5712 = vmatprep.mubr.bf16.mxu1 %v8810_v18 }
 0x438   :  { %5713 = vmatmul.mubr.bf16.vlgmr.msra.gmra.mrb[160].mxu1 %v9717_v34 }
 0x439   :  { %5722 = vmatprep.mubr.bf16.mxu1 %v8810_v18 }
 0x440   :  { %5723 = vmatmul.mubr.bf16.gmra.mrb[164].mxu1 %v9715_v28  ;;  %v5315_v28 = vld [vmem:[#allocation10] sm:$0x3] }
 0x441   :  { %5732 = vmatprep.mubr.bf16.mxu1 %v8810_v18  ;;  %v9772_v34 = vrot.slane %v5315_v28, %v9362_v63 }
 0x448   :  { %5733 = vmatmul.mubr.bf16.gmra.mrb[168].mxu1 %v9733_v29 }
 0x449   :  { %5742 = vmatprep.mubr.bf16.mxu1 %v8810_v18 }
 0x450   :  { %5743 = vmatmul.mubr.bf16.gmra.mrb[172].mxu1 %v9731_v26  ;;  %v9775_v26 = vrot.slane %v5315_v28, %v9368_v2 }
 0x451   :  { %5752 = vmatprep.mubr.bf16.mxu1 %v8810_v18 }
 0x458   :  { %5753 = vmatmul.mubr.bf16.gmra.mrb[176].mxu1 %v5257_v38 }
 0x459   :  { %5762 = vmatprep.mubr.bf16.mxu1 %v8810_v18 }
 0x460   :  { %5763 = vmatmul.mubr.bf16.gmra.mrb[180].mxu1 %v5260_v1 }
 0x461   :  { %5772 = vmatprep.mubr.bf16.mxu1 %v8810_v18 }
 0x468   :  { %5773 = vmatmul.mubr.bf16.gmra.mrb[184].mxu1 %v5263_v49 }
 0x469   :  { %5782 = vmatprep.mubr.bf16.mxu1 %v8810_v18 }
 0x470   :  { %5783 = vmatmul.mubr.bf16.gmra.mrb[188].mxu1 %v5266_v61 }
 0x50b   :  { %v5714_v29 = vpop.f32.mrb[160].mxu1 }
 0x50c   :  { %v7445_v22 = vadd.f32 %v5714_v29, %v9772_v34  ;;  %v5716_v6 = vpop.f32.mrb[161].mxu1 }
 0x50d   :  { %v7446_v18 = vadd.f32 %v5716_v6, %v9775_v26  ;;  %v5718_v16 = vpop.f32.mrb[162].mxu1 }
 0x50e   :  { %v7447_v47 = vadd.f32 %v5718_v16, %v9772_v34  ;;  %v5720_v14 = vpop.f32.mrb[163].mxu1  ;;  %v5793_v27 = vmax.f32 %v7445_v22, 0.0 }
 0x50f   :  { %v7448_v36 = vadd.f32 %v5720_v14, %v9775_v26  ;;  %v5794_v32 = vmax.f32 %v7446_v18, 0.0 }
 0x510   :  { %v5795_v43 = vmax.f32 %v7447_v47, 0.0 }
 0x511   :  { %v5796_v63 = vmax.f32 %v7448_v36, 0.0 }
 0x512   :  { %v5825_v1 = vpack.c.bf16 %v5795_v43, %v5793_v27 }
 0x513   :  { %v5826_v35 = vpack.c.bf16 %v5796_v63, %v5794_v32  ;;  %v5724_v2 = vpop.f32.mrb[164].mxu1 }
 0x514   :  { %v7449_v38 = vadd.f32 %v5724_v2, %v9772_v34  ;;  %v5726_v50 = vpop.f32.mrb[165].mxu1 }
 0x515   :  { %v7450_v8 = vadd.f32 %v5726_v50, %v9775_v26  ;;  %v5728_v39 = vpop.f32.mrb[166].mxu1  ;;  %6008 = vmatprep.mubr.bf16.mxu0 %v5826_v35 }
 0x516   :  { %v7451_v9 = vadd.f32 %v5728_v39, %v9772_v34  ;;  %v5730_v3 = vpop.f32.mrb[167].mxu1  ;;  %6009 = vmatmul.mubr.bf16.vlgmr.msra.gmra.mrb[128].mxu0 %v5825_v1  ;;  %v5797_v10 = vmax.f32 %v7449_v38, 0.0 }
 0x517   :  { %v7452_v57 = vadd.f32 %v5730_v3, %v9775_v26  ;;  %7318 = vmatpush3.bf16.msra.mxu0 %v8504_v25  ;;  %v5798_v40 = vmax.f32 %v7450_v8, 0.0 }
 0x518   :  { %v5799_v5 = vmax.f32 %v7451_v9, 0.0  ;;  %7319 = vmatprep.subr.bf16.mxu0 %v8505_v20 }
 0x519   :  { %v5800_v42 = vmax.f32 %v7452_v57, 0.0 }
 0x51a   :  { %v5827_v45 = vpack.c.bf16 %v5799_v5, %v5797_v10 }
 0x51b   :  { %v5828_v48 = vpack.c.bf16 %v5800_v42, %v5798_v40  ;;  %v5734_v51 = vpop.f32.mrb[168].mxu1  ;;  %7320 = vmatpush3.bf16.msra.mxu0 %v8505_v20 }
 0x51c   :  { %v7453_v60 = vadd.f32 %v5734_v51, %v9772_v34  ;;  %v5736_v44 = vpop.f32.mrb[169].mxu1  ;;  %7321 = vmatprep.subr.bf16.mxu0 %v8506_v56 }
 0x51d   :  { %v7454_v41 = vadd.f32 %v5736_v44, %v9775_v26  ;;  %v5738_v19 = vpop.f32.mrb[170].mxu1  ;;  %6016 = vmatprep.mubr.bf16.mxu0 %v5828_v48 }
 0x51e   :  { %v7455_v54 = vadd.f32 %v5738_v19, %v9772_v34  ;;  %v5740_v58 = vpop.f32.mrb[171].mxu1  ;;  %6017 = vmatmul.mubr.bf16.gmra.mrb[132].mxu0 %v5827_v45  ;;  %v5801_v62 = vmax.f32 %v7453_v60, 0.0 }
 0x51f   :  { %v7456_v23 = vadd.f32 %v5740_v58, %v9775_v26  ;;  %7322 = vmatpush3.bf16.msra.mxu0 %v8506_v56  ;;  %v5802_v11 = vmax.f32 %v7454_v41, 0.0 }
 0x520   :  { %v5803_v0 = vmax.f32 %v7455_v54, 0.0 }
 0x521   :  { %v5804_v37 = vmax.f32 %v7456_v23, 0.0 }
 0x522   :  { %v5829_v15 = vpack.c.bf16 %v5803_v0, %v5801_v62 }
 0x523   :  { %v5830_v30 = vpack.c.bf16 %v5804_v37, %v5802_v11  ;;  %v5744_v52 = vpop.f32.mrb[172].mxu1 }
 0x524   :  { %v7457_v31 = vadd.f32 %v5744_v52, %v9772_v34  ;;  %v5746_v33 = vpop.f32.mrb[173].mxu1 }
 0x525   :  { %v7458_v55 = vadd.f32 %v5746_v33, %v9775_v26  ;;  %v5748_v59 = vpop.f32.mrb[174].mxu1  ;;  %6024 = vmatprep.mubr.bf16.mxu0 %v5830_v30 }
 0x526   :  { %v7459_v53 = vadd.f32 %v5748_v59, %v9772_v34  ;;  %v5750_v17 = vpop.f32.mrb[175].mxu1  ;;  %6025 = vmatmul.mubr.bf16.gmra.mrb[136].mxu0 %v5829_v15  ;;  %v5805_v7 = vmax.f32 %v7457_v31, 0.0 }
 0x527   :  { %v7460_v46 = vadd.f32 %v5750_v17, %v9775_v26  ;;  %v5806_v21 = vmax.f32 %v7458_v55, 0.0 }
 0x528   :  { %v5807_v12 = vmax.f32 %v7459_v53, 0.0 }
 0x529   :  { %v5808_v61 = vmax.f32 %v7460_v46, 0.0 }
 0x52a   :  { %v5831_v13 = vpack.c.bf16 %v5807_v12, %v5805_v7  ;;  %v8507_v7 = vld [vmem:[#allocation15 + $0x18] sm:$0xff]   ;;  %v8508_v12 = vld [vmem:[#allocation15 + $0x20] sm:$0xff]  }
 0x52b   :  { %v5832_v49 = vpack.c.bf16 %v5808_v61, %v5806_v21  ;;  %v5754_v4 = vpop.f32.mrb[176].mxu1  ;;  %7323 = vmatprep.subr.bf16.mxu0 %v8507_v7  ;;  %v8509_v21 = vld [vmem:[#allocation15 + $0x28] sm:$0xff]  }
 0x52c   :  { %v7461_v24 = vadd.f32 %v5754_v4, %v9772_v34  ;;  %v5756_v25 = vpop.f32.mrb[177].mxu1  ;;  %7324 = vmatpush3.bf16.msra.mxu0 %v8507_v7 }
 0x52d   :  { %v7462_v28 = vadd.f32 %v5756_v25, %v9775_v26  ;;  %v5758_v29 = vpop.f32.mrb[178].mxu1  ;;  %6032 = vmatprep.mubr.bf16.mxu0 %v5832_v49  ;;  %7325 = vmatprep.subr.bf16.mxu0 %v8508_v12 }
 0x52e   :  { %v7463_v22 = vadd.f32 %v5758_v29, %v9772_v34  ;;  %v5760_v6 = vpop.f32.mrb[179].mxu1  ;;  %6033 = vmatmul.mubr.bf16.gmra.mrb[140].mxu0 %v5831_v13  ;;  %v5809_v16 = vmax.f32 %v7461_v24, 0.0  ;;  %v9809_v13 = vld [vmem:[#allocation13] ss:$0 sm:$0xff] }
 0x52f   :  { %v7464_v18 = vadd.f32 %v5760_v6, %v9775_v26  ;;  %v5810_v14 = vmax.f32 %v7462_v28, 0.0 }
 0x530   :  { %v5811_v47 = vmax.f32 %v7463_v22, 0.0  ;;  %7326 = vmatpush3.bf16.msra.mxu0 %v8508_v12 }
 0x531   :  { %v5812_v36 = vmax.f32 %v7464_v18, 0.0  ;;  %7327 = vmatprep.subr.bf16.mxu0 %v8509_v21 }
 0x532   :  { %v5833_v27 = vpack.c.bf16 %v5811_v47, %v5809_v16 }
 0x533   :  { %v5834_v43 = vpack.c.bf16 %v5812_v36, %v5810_v14  ;;  %v5764_v32 = vpop.f32.mrb[180].mxu1 }
 0x534   :  { %v7465_v63 = vadd.f32 %v5764_v32, %v9772_v34  ;;  %v5766_v1 = vpop.f32.mrb[181].mxu1  ;;  %7328 = vmatpush3.bf16.msra.mxu0 %v8509_v21 }
 0x535   :  { %v7466_v35 = vadd.f32 %v5766_v1, %v9775_v26  ;;  %v5768_v2 = vpop.f32.mrb[182].mxu1  ;;  %6040 = vmatprep.mubr.bf16.mxu0 %v5834_v43 }
 0x536   :  { %v7467_v38 = vadd.f32 %v5768_v2, %v9772_v34  ;;  %v5770_v50 = vpop.f32.mrb[183].mxu1  ;;  %6041 = vmatmul.mubr.bf16.gmra.mrb[144].mxu0 %v5833_v27  ;;  %v5813_v8 = vmax.f32 %v7465_v63, 0.0 }
 0x537   :  { %v7468_v20 = vadd.f32 %v5770_v50, %v9775_v26  ;;  %v5814_v9 = vmax.f32 %v7466_v35, 0.0 }
 0x538   :  { %v5815_v39 = vmax.f32 %v7467_v38, 0.0 }
 0x539   :  { %v5816_v3 = vmax.f32 %v7468_v20, 0.0 }
 0x53a   :  { %v5835_v57 = vpack.c.bf16 %v5815_v39, %v5813_v8 }
 0x53b   :  { %v5836_v10 = vpack.c.bf16 %v5816_v3, %v5814_v9  ;;  %v5774_v5 = vpop.f32.mrb[184].mxu1 }
 0x53c   :  { %v7469_v56 = vadd.f32 %v5774_v5, %v9772_v34  ;;  %v5776_v40 = vpop.f32.mrb[185].mxu1 }
 0x53d   :  { %v7470_v42 = vadd.f32 %v5776_v40, %v9775_v26  ;;  %v5778_v45 = vpop.f32.mrb[186].mxu1  ;;  %6048 = vmatprep.mubr.bf16.mxu0 %v5836_v10 }
 0x53e   :  { %v7471_v48 = vadd.f32 %v5778_v45, %v9772_v34  ;;  %v5780_v51 = vpop.f32.mrb[187].mxu1  ;;  %6049 = vmatmul.mubr.bf16.gmra.mrb[148].mxu0 %v5835_v57  ;;  %v5817_v44 = vmax.f32 %v7469_v56, 0.0 }
 0x53f   :  { %v7472_v60 = vadd.f32 %v5780_v51, %v9775_v26  ;;  %v5818_v19 = vmax.f32 %v7470_v42, 0.0 }
 0x540   :  { %v5819_v41 = vmax.f32 %v7471_v48, 0.0 }
 0x541   :  { %v5820_v54 = vmax.f32 %v7472_v60, 0.0 }
 0x542   :  { %v5837_v58 = vpack.c.bf16 %v5819_v41, %v5817_v44 }
 0x543   :  { %v5838_v23 = vpack.c.bf16 %v5820_v54, %v5818_v19  ;;  %v5784_v62 = vpop.f32.mrb[188].mxu1 }
 0x544   :  { %v7473_v0 = vadd.f32 %v5784_v62, %v9772_v34  ;;  %v5786_v11 = vpop.f32.mrb[189].mxu1 }
 0x545   :  { %v7474_v37 = vadd.f32 %v5786_v11, %v9775_v26  ;;  %v5788_v15 = vpop.f32.mrb[190].mxu1  ;;  %6056 = vmatprep.mubr.bf16.mxu0 %v5838_v23 }
 0x546   :  { %v7475_v30 = vadd.f32 %v5788_v15, %v9772_v34  ;;  %v5790_v52 = vpop.f32.mrb[191].mxu1  ;;  %6057 = vmatmul.mubr.bf16.gmra.mrb[152].mxu0 %v5837_v58  ;;  %v5821_v33 = vmax.f32 %v7473_v0, 0.0  ;;  %v8510_v34 = vld [vmem:[#allocation15 + $0x30] sm:$0xff]  }
 0x547   :  { %v7476_v31 = vadd.f32 %v5790_v52, %v9775_v26  ;;  %v5822_v59 = vmax.f32 %v7474_v37, 0.0  ;;  %7329 = vmatprep.subr.bf16.mxu0 %v8510_v34  ;;  %v8511_v26 = vld [vmem:[#allocation15 + $0x38] sm:$0xff]  }
 0x548   :  { %v5823_v55 = vmax.f32 %v7475_v30, 0.0  ;;  %7330 = vmatpush3.bf16.msra.mxu0 %v8510_v34 }
 0x549   :  { %v5824_v53 = vmax.f32 %v7476_v31, 0.0  ;;  %7331 = vmatprep.subr.bf16.mxu0 %v8511_v26 }
 0x54a   :  { %v5839_v17 = vpack.c.bf16 %v5823_v55, %v5821_v33 }
 0x54b   :  { %v5840_v46 = vpack.c.bf16 %v5824_v53, %v5822_v59 }
 0x54c   :  { %7332 = vmatpush3.bf16.msra.mxu0 %v8511_v26 }
 0x54d   :  { %6064 = vmatprep.mubr.bf16.mxu0 %v5840_v46 }
 0x54e   :  { %6065 = vmatmul.mubr.bf16.gmra.mrb[156].mxu0 %v5839_v17 }
 0x5e9   :  { %v7189_v61 = vpop.f32.mrb[128].mxu0 }
 0x5ea   :  { %v7190_v49 = vpop.f32.mrb[129].mxu0 }
 0x5eb   :  { %v7191_v4 = vadd.f32 %v7190_v49, %v7189_v61  ;;  %v7192_v24 = vpop.f32.mrb[130].mxu0 }
 0x5ec   :  { %v7193_v25 = vpop.f32.mrb[131].mxu0 }
 0x5ed   :  { %v6011_v28 = vadd.f32 %v7191_v4, %v9809_v13  ;;  %v7194_v29 = vadd.f32 %v7193_v25, %v7192_v24 }
 0x5ef   :  { %v6014_v22 = vadd.f32 %v7194_v29, %v9809_v13  ;;  %v6073_v6 = vmax.f32 %v6011_v28, 0.0 }
 0x5f1   :  { %v6074_v18 = vmax.f32 %v6014_v22, 0.0  ;;  %v7195_v16 = vpop.f32.mrb[132].mxu0 }
 0x5f2   :  { %v7196_v47 = vpop.f32.mrb[133].mxu0 }
 0x5f3   :  { %v7197_v14 = vadd.f32 %v7196_v47, %v7195_v16  ;;  %v7198_v36 = vpop.f32.mrb[134].mxu0  ;;  %v6089_v27 = vpack.c.bf16 %v6074_v18, %v6073_v6 }
 0x5f4   :  { %v7199_v43 = vpop.f32.mrb[135].mxu0 }
 0x5f5   :  { %v6019_v32 = vadd.f32 %v7197_v14, %v9809_v13  ;;  %v7200_v63 = vadd.f32 %v7199_v43, %v7198_v36  ;;  %7333 = vmatprep.mubr.bf16.mxu0 %v6089_v27 }
 0x5f7   :  { %v6022_v1 = vadd.f32 %v7200_v63, %v9809_v13  ;;  %v6075_v35 = vmax.f32 %v6019_v32, 0.0 }
 0x5f9   :  { %v6076_v2 = vmax.f32 %v6022_v1, 0.0  ;;  %v7201_v38 = vpop.f32.mrb[136].mxu0 }
 0x5fa   :  { %v7202_v50 = vpop.f32.mrb[137].mxu0 }
 0x5fb   :  { %v6090_v20 = vpack.c.bf16 %v6076_v2, %v6075_v35  ;;  %v7203_v8 = vadd.f32 %v7202_v50, %v7201_v38  ;;  %v7204_v39 = vpop.f32.mrb[138].mxu0 }
 0x5fc   :  { %v7205_v9 = vpop.f32.mrb[139].mxu0 }
 0x5fd   :  { %v6027_v3 = vadd.f32 %v7203_v8, %v9809_v13  ;;  %v7206_v57 = vadd.f32 %v7205_v9, %v7204_v39  ;;  %7334 = vmatmul.mubr.bf16.vlgmr.msra.gmra.mrb[160].mxu0 %v6090_v20  ;;  %v6812_v39 = vld [vmem:[#allocation16] ss:$0 sm:$0xff] }
 0x5ff   :  { %v6030_v10 = vadd.f32 %v7206_v57, %v9809_v13  ;;  %v6077_v5 = vmax.f32 %v6027_v3, 0.0 }
 0x601   :  { %v6078_v56 = vmax.f32 %v6030_v10, 0.0  ;;  %v7207_v40 = vpop.f32.mrb[140].mxu0 }
 0x602   :  { %v7208_v42 = vpop.f32.mrb[141].mxu0 }
 0x603   :  { %v7209_v45 = vadd.f32 %v7208_v42, %v7207_v40  ;;  %v7210_v48 = vpop.f32.mrb[142].mxu0  ;;  %v6091_v51 = vpack.c.bf16 %v6078_v56, %v6077_v5 }
 0x604   :  { %v7211_v60 = vpop.f32.mrb[143].mxu0 }
 0x605   :  { %v6035_v44 = vadd.f32 %v7209_v45, %v9809_v13  ;;  %v7212_v41 = vadd.f32 %v7211_v60, %v7210_v48  ;;  %7337 = vmatprep.mubr.bf16.mxu0 %v6091_v51 }
 0x607   :  { %v6038_v19 = vadd.f32 %v7212_v41, %v9809_v13  ;;  %v6079_v54 = vmax.f32 %v6035_v44, 0.0 }
 0x609   :  { %v6080_v58 = vmax.f32 %v6038_v19, 0.0  ;;  %v7213_v23 = vpop.f32.mrb[144].mxu0 }
 0x60a   :  { %v7214_v62 = vpop.f32.mrb[145].mxu0 }
 0x60b   :  { %v7215_v0 = vadd.f32 %v7214_v62, %v7213_v23  ;;  %v7216_v11 = vpop.f32.mrb[146].mxu0  ;;  %v6092_v37 = vpack.c.bf16 %v6080_v58, %v6079_v54 }
 0x60c   :  { %v7217_v15 = vpop.f32.mrb[147].mxu0 }
 0x60d   :  { %v6043_v30 = vadd.f32 %v7215_v0, %v9809_v13  ;;  %v7218_v52 = vadd.f32 %v7217_v15, %v7216_v11  ;;  %7338 = vmatmul.mubr.bf16.gmra.mrb[164].mxu0 %v6092_v37 }
 0x60f   :  { %v6046_v31 = vadd.f32 %v7218_v52, %v9809_v13  ;;  %v6081_v33 = vmax.f32 %v6043_v30, 0.0 }
 0x611   :  { %v6082_v55 = vmax.f32 %v6046_v31, 0.0  ;;  %v7219_v59 = vpop.f32.mrb[148].mxu0 }
 0x612   :  { %v7220_v53 = vpop.f32.mrb[149].mxu0 }
 0x613   :  { %v7221_v17 = vadd.f32 %v7220_v53, %v7219_v59  ;;  %v7222_v46 = vpop.f32.mrb[150].mxu0  ;;  %v6093_v7 = vpack.c.bf16 %v6082_v55, %v6081_v33 }
 0x614   :  { %v7223_v12 = vpop.f32.mrb[151].mxu0 }
 0x615   :  { %v6051_v21 = vadd.f32 %v7221_v17, %v9809_v13  ;;  %v7224_v34 = vadd.f32 %v7223_v12, %v7222_v46  ;;  %7341 = vmatprep.mubr.bf16.mxu0 %v6093_v7 }
 0x617   :  { %v6054_v26 = vadd.f32 %v7224_v34, %v9809_v13  ;;  %v6083_v61 = vmax.f32 %v6051_v21, 0.0 }
 0x619   :  { %v6084_v49 = vmax.f32 %v6054_v26, 0.0  ;;  %v7225_v4 = vpop.f32.mrb[152].mxu0 }
 0x61a   :  { %v7226_v24 = vpop.f32.mrb[153].mxu0 }
 0x61b   :  { %v7227_v25 = vadd.f32 %v7226_v24, %v7225_v4  ;;  %v7228_v28 = vpop.f32.mrb[154].mxu0  ;;  %v6094_v29 = vpack.c.bf16 %v6084_v49, %v6083_v61 }
 0x61c   :  { %v7229_v22 = vpop.f32.mrb[155].mxu0 }
 0x61d   :  { %v6059_v6 = vadd.f32 %v7227_v25, %v9809_v13  ;;  %v7230_v18 = vadd.f32 %v7229_v22, %v7228_v28  ;;  %7342 = vmatmul.mubr.bf16.gmra.mrb[168].mxu0 %v6094_v29 }
 0x61f   :  { %v6062_v16 = vadd.f32 %v7230_v18, %v9809_v13  ;;  %v6085_v47 = vmax.f32 %v6059_v6, 0.0 }
 0x621   :  { %v6086_v14 = vmax.f32 %v6062_v16, 0.0  ;;  %v7231_v36 = vpop.f32.mrb[156].mxu0 }
 0x622   :  { %v7232_v27 = vpop.f32.mrb[157].mxu0 }
 0x623   :  { %v7233_v43 = vadd.f32 %v7232_v27, %v7231_v36  ;;  %v7234_v32 = vpop.f32.mrb[158].mxu0  ;;  %v6095_v63 = vpack.c.bf16 %v6086_v14, %v6085_v47 }
 0x624   :  { %v7235_v1 = vpop.f32.mrb[159].mxu0 }
 0x625   :  { %v6067_v35 = vadd.f32 %v7233_v43, %v9809_v13  ;;  %v7236_v2 = vadd.f32 %v7235_v1, %v7234_v32  ;;  %7345 = vmatprep.mubr.bf16.mxu0 %v6095_v63 }
 0x627   :  { %v6070_v38 = vadd.f32 %v7236_v2, %v9809_v13  ;;  %v6087_v50 = vmax.f32 %v6067_v35, 0.0 }
 0x629   :  { %v6088_v20 = vmax.f32 %v6070_v38, 0.0 }
 0x62b   :  { %v6096_v8 = vpack.c.bf16 %v6088_v20, %v6087_v50 }
 0x62d   :  { %7346 = vmatmul.mubr.bf16.gmra.mrb[172].mxu0 %v6096_v8 }
 0x6d0   :  { %v7335_v9 = vpop.f32.mrb[160].mxu0 }
 0x6d1   :  { %v6211_v3 = vadd.f32 %v7335_v9, %v6812_v39  ;;  %v6202_v57 = vpop.f32.mrb[161].mxu0 }
 0x6d2   :  { %v6203_v10 = vadd.f32 %v6812_v39, %v6202_v57  ;;  %v7336_v5 = vpop.f32.mrb[162].mxu0 }
 0x6d3   :  { %6267 = vst [vmem:[%s9886_s11 + $0x10] sm:$0xff] %v6211_v3  ;;  %v6214_v56 = vadd.f32 %v7336_v5, %v6812_v39  ;;  %v6205_v40 = vpop.f32.mrb[163].mxu0 }
 0x6d4   :  { %6265 = vst [vmem:[%s9886_s11] sm:$0xff] %v6203_v10  ;;  %v6206_v13 = vadd.f32 %v6812_v39, %v6205_v40 }
 0x6d5   :  { %6268 = vst [vmem:[%s9886_s11 + $0x18] sm:$0xff] %v6214_v56 }
 0x6d6   :  { %6266 = vst [vmem:[%s9886_s11 + $0x8] sm:$0xff] %v6206_v13 }
 0x6e0   :  { %v7339_v42 = vpop.f32.mrb[164].mxu0 }
 0x6e1   :  { %v6227_v45 = vadd.f32 %v7339_v42, %v6812_v39  ;;  %v6218_v48 = vpop.f32.mrb[165].mxu0 }
 0x6e2   :  { %v6219_v51 = vadd.f32 %v6812_v39, %v6218_v48  ;;  %v7340_v60 = vpop.f32.mrb[166].mxu0 }
 0x6e3   :  { %6271 = vst [vmem:[%s9886_s11 + $0x30] sm:$0xff] %v6227_v45  ;;  %v6230_v44 = vadd.f32 %v7340_v60, %v6812_v39  ;;  %v6221_v41 = vpop.f32.mrb[167].mxu0 }
 0x6e4   :  { %6269 = vst [vmem:[%s9886_s11 + $0x20] sm:$0xff] %v6219_v51  ;;  %v6222_v19 = vadd.f32 %v6812_v39, %v6221_v41 }
 0x6e5   :  { %6272 = vst [vmem:[%s9886_s11 + $0x38] sm:$0xff] %v6230_v44 }
 0x6e6   :  { %6270 = vst [vmem:[%s9886_s11 + $0x28] sm:$0xff] %v6222_v19 }
 0x6f0   :  { %v7343_v54 = vpop.f32.mrb[168].mxu0 }
 0x6f1   :  { %v6243_v58 = vadd.f32 %v7343_v54, %v6812_v39  ;;  %v6234_v23 = vpop.f32.mrb[169].mxu0 }
 0x6f2   :  { %v6235_v62 = vadd.f32 %v6812_v39, %v6234_v23  ;;  %v7344_v0 = vpop.f32.mrb[170].mxu0 }
 0x6f3   :  { %6275 = vst [vmem:[%s9886_s11 + $0x50] sm:$0xff] %v6243_v58  ;;  %v6246_v11 = vadd.f32 %v7344_v0, %v6812_v39  ;;  %v6237_v37 = vpop.f32.mrb[171].mxu0 }
 0x6f4   :  { %6273 = vst [vmem:[%s9886_s11 + $0x40] sm:$0xff] %v6235_v62  ;;  %v6238_v15 = vadd.f32 %v6812_v39, %v6237_v37 }
 0x6f5   :  { %6276 = vst [vmem:[%s9886_s11 + $0x58] sm:$0xff] %v6246_v11 }
 0x6f6   :  { %6274 = vst [vmem:[%s9886_s11 + $0x48] sm:$0xff] %v6238_v15 }
 0x700   :  { %v7347_v30 = vpop.f32.mrb[172].mxu0 }
 0x701   :  { %v6259_v52 = vadd.f32 %v7347_v30, %v6812_v39  ;;  %v6250_v31 = vpop.f32.mrb[173].mxu0 }
 0x702   :  { %v6251_v33 = vadd.f32 %v6812_v39, %v6250_v31  ;;  %v7348_v55 = vpop.f32.mrb[174].mxu0 }
 0x703   :  { %6279 = vst [vmem:[%s9886_s11 + $0x70] sm:$0xff] %v6259_v52  ;;  %v6262_v59 = vadd.f32 %v7348_v55, %v6812_v39  ;;  %v6253_v53 = vpop.f32.mrb[175].mxu0 }
 0x704   :  { %6277 = vst [vmem:[%s9886_s11 + $0x60] sm:$0xff] %v6251_v33  ;;  %v6254_v17 = vadd.f32 %v6812_v39, %v6253_v53 }
 0x705   :  { %6280 = vst [vmem:[%s9886_s11 + $0x78] sm:$0xff] %v6262_v59 }
 0x706   :  { %6278 = vst [vmem:[%s9886_s11 + $0x68] sm:$0xff] %v6254_v17 }
 0x707   :  { %6285 = vsyncpa [#allocation3], 1 }
 0x708   :  { %6286 = vsyncpa [#allocation5], 1 }
 0x709   :  { %6287 = vsyncpa [#allocation8], 1 }
 0x70a   :  { %6288 = vsyncpa [#allocation11], 1 }
 0x70b   :  { %6289 = vsyncpa [#allocation14], 1 }
 0x70c   :  { %6290 = vsyncpa [#allocation17], 1 }

</bundles_post_ra>
